<compile_context>
chip_gen: v6e
topology: v6e:2x2x1
jax: 0.10.0
libtpu: 0.0.40
codegen_flags: <defaults>
</compile_context>

<pallas_src>
import numpy as np

import jax
import jax.numpy as jnp
from jax.experimental import pallas as pl
from jax.experimental.pallas import tpu as pltpu


B = 8                     # images per grid step
BF = jnp.bfloat16
F32 = jnp.float32


# ---------------------------------------------------------------------------
# Fused forward kernel (B images per grid step)
# ---------------------------------------------------------------------------
def _net_kernel(x_ref, w1_ref, b1_ref, s1e_ref, s1o_ref,
                w2_ref, b2_ref, s2e_ref, s2o_ref,
                wf1_ref, bf1_ref, wf2_ref, bf2_ref, wf3_ref, bf3_ref,
                o_ref):
    # ---- conv1 + bias + ReLU: one K-concatenated banded matmul --------------
    # LHS row b*32+oh holds, in lane stripe [i*128, i*128+128), image row oh+i
    # (lane = w*3 + c, lanes 96..127 zero).  Rows oh >= 28 are junk and are
    # never selected downstream.
    lhs1 = jnp.concatenate(
        [x_ref[:, i:i + 32, :].reshape(B * 32, 128) for i in range(5)],
        axis=1).astype(BF)                                        # (B*32, 640)
    y1 = jnp.dot(lhs1, w1_ref[...], preferred_element_type=F32)   # (B*32, 256)
    y1 = jnp.maximum(y1 + b1_ref[...], 0.0)

    # ---- maxpool 2x2 #1: W via lane-parity max, H via even/odd row-select dots
    w1p = jnp.maximum(y1[:, 0:128], y1[:, 128:256]).astype(BF)    # (B*32, 128)
    p1 = jnp.maximum(
        jnp.dot(s1e_ref[...], w1p, preferred_element_type=F32),
        jnp.dot(s1o_ref[...], w1p, preferred_element_type=F32))   # (B*24, 128)

    # ---- conv2 + bias + ReLU: one K-concatenated banded matmul --------------
    p1r = p1.reshape(B, 24, 128)          # rows 0..13 valid, 14..23 exact zeros
    lhs2 = jnp.concatenate(
        [p1r[:, i:i + 16, :].reshape(B * 16, 128) for i in range(5)],
        axis=1).astype(BF)                                        # (B*16, 640)
    y2 = jnp.dot(lhs2, w2_ref[...], preferred_element_type=F32)   # (B*16, 256)
    y2 = jnp.maximum(y2 + b2_ref[...], 0.0)

    # ---- maxpool 2x2 #2 (h-grouped output rows: row = h*B + b) --------------
    w2p = jnp.maximum(y2[:, 0:128], y2[:, 128:256]).astype(BF)    # (B*16, 128)
    p2 = jnp.maximum(
        jnp.dot(s2e_ref[...], w2p, preferred_element_type=F32),
        jnp.dot(s2o_ref[...], w2p, preferred_element_type=F32))   # (5*B, 128)

    # ---- fc1 + ReLU: 5 sublane-tile-aligned (B,128)@(128,128) dots ----------
    acc = jnp.zeros((B, 128), F32)
    for h in range(5):
        acc = acc + jnp.dot(p2[h * B:(h + 1) * B, :].astype(BF), wf1_ref[h],
                            preferred_element_type=F32)
    h1 = jnp.maximum(acc + bf1_ref[...], 0.0).astype(BF)

    # ---- fc2 + ReLU, fc3 (all lane-padded to 128) ----------------------------
    h2 = jnp.maximum(
        jnp.dot(h1, wf2_ref[...], preferred_element_type=F32) + bf2_ref[...],
        0.0).astype(BF)
    o_ref[...] = (jnp.dot(h2, wf3_ref[...], preferred_element_type=F32)
                  + bf3_ref[...])                                  # (B, 128)


# ---------------------------------------------------------------------------
# Parameters: PyTorch-style init, then one-time conversion to kernel layouts
# ---------------------------------------------------------------------------
def init_params(key, l1=120, l2=84):
    ks = jax.random.split(key, 10)

    def u(k, shape, fan_in):
        bound = 1.0 / jnp.sqrt(jnp.float32(fan_in))
        return jax.random.uniform(k, shape, jnp.float32, -bound, bound)

    return {
        "conv1_w": u(ks[0], (6, 3, 5, 5), 3 * 25),
        "conv1_b": u(ks[1], (6,), 3 * 25),
        "conv2_w": u(ks[2], (16, 6, 5, 5), 6 * 25),
        "conv2_b": u(ks[3], (16,), 6 * 25),
        "fc1_w":   u(ks[4], (l1, 16 * 5 * 5), 16 * 5 * 5),
        "fc1_b":   u(ks[5], (l1,), 16 * 5 * 5),
        "fc2_w":   u(ks[6], (l2, l1), l1),
        "fc2_b":   u(ks[7], (l2,), l1),
        "fc3_w":   u(ks[8], (10, l2), l2),
        "fc3_b":   u(ks[9], (10,), l2),
    }


def prepare_params(params):
    """One-time conversion of PyTorch-layout params to kernel matmul layouts."""
    w1 = np.asarray(params["conv1_w"], np.float32)   # (6, 3, 5, 5)
    b1 = np.asarray(params["conv1_b"], np.float32)
    w2 = np.asarray(params["conv2_w"], np.float32)   # (16, 6, 5, 5)
    b2 = np.asarray(params["conv2_b"], np.float32)
    f1 = np.asarray(params["fc1_w"], np.float32)     # (l1, 400) cols = c*25+h*5+w
    g1 = np.asarray(params["fc1_b"], np.float32)
    f2 = np.asarray(params["fc2_w"], np.float32)     # (l2, l1)
    g2 = np.asarray(params["fc2_b"], np.float32)
    f3 = np.asarray(params["fc3_w"], np.float32)     # (10, l2)
    g3 = np.asarray(params["fc3_b"], np.float32)
    l1, l2 = f1.shape[0], f2.shape[0]
    assert l1 <= 128 and l2 <= 128

    # conv1 K-concatenated banded weights: row = i*128 + (w*3 + c),
    # output col = (ow%2)*128 + oc*14 + ow//2  (parity-split for the W-pool)
    W1c = np.zeros((640, 256), np.float32)
    for i in range(5):
        for j in range(5):
            for ow in range(28):
                col0 = (ow % 2) * 128 + (ow // 2)
                r0 = i * 128 + (ow + j) * 3
                for oc in range(6):
                    W1c[r0:r0 + 3, col0 + 14 * oc] = w1[oc, :, i, j]
    b1t = np.zeros((1, 256), np.float32)
    b1t[0, 0:84] = np.repeat(b1, 14)
    b1t[0, 128:212] = np.repeat(b1, 14)

    # conv2 K-concatenated banded weights: row = i*128 + (c1*14 + w),
    # output col = (ow%2)*128 + oc2*5 + ow//2
    W2c = np.zeros((640, 256), np.float32)
    for i in range(5):
        for j in range(5):
            for ow in range(10):
                col0 = (ow % 2) * 128 + (ow // 2)
                for c1 in range(6):
                    r = i * 128 + c1 * 14 + ow + j
                    W2c[r, col0 + 5 * np.arange(16)] = w2[:, c1, i, j]
    b2t = np.zeros((1, 256), np.float32)
    b2t[0, 0:80] = np.repeat(b2, 5)
    b2t[0, 128:208] = np.repeat(b2, 5)

    # Block-diagonal (over the B-image step batch) even/odd H-pool selectors.
    # Pool-1 output: 24 rows / image (rows 14..23 zero) so conv2's band slices
    # stay in-bounds without in-kernel padding.
    S1e = np.zeros((B * 24, B * 32), np.float32)
    S1o = np.zeros((B * 24, B * 32), np.float32)
    for b in range(B):
        for ph in range(14):
            S1e[b * 24 + ph, b * 32 + 2 * ph] = 1.0
            S1o[b * 24 + ph, b * 32 + 2 * ph + 1] = 1.0
    # Pool-2 output is h-grouped: row = h*B + b, so fc1 slices are 8-row aligned.
    S2e = np.zeros((5 * B, B * 16), np.float32)
    S2o = np.zeros((5 * B, B * 16), np.float32)
    for b in range(B):
        for ph in range(5):
            S2e[ph * B + b, b * 16 + 2 * ph] = 1.0
            S2o[ph * B + b, b * 16 + 2 * ph + 1] = 1.0

    # fc1: fold torch flatten order (c*25 + h*5 + w) into per-h weight slabs
    # indexed by the pooled-2 lane layout (c*5 + w); N padded to 128.
    Wf1 = np.zeros((5, 128, 128), np.float32)
    cw = (np.arange(16)[:, None] * 25 + np.arange(5)[None, :]).reshape(-1)
    for h in range(5):
        Wf1[h, 0:80, :l1] = f1[:, cw + h * 5].T
    bf1 = np.zeros((1, 128), np.float32); bf1[0, :l1] = g1

    Wf2 = np.zeros((128, 128), np.float32); Wf2[:l1, :l2] = f2.T
    bf2 = np.zeros((1, 128), np.float32); bf2[0, :l2] = g2
    Wf3 = np.zeros((128, 128), np.float32); Wf3[:l2, :10] = f3.T
    bf3 = np.zeros((1, 128), np.float32); bf3[0, :10] = g3

    bf = jnp.bfloat16
    return {
        "W1c": jnp.asarray(W1c, bf), "b1t": jnp.asarray(b1t),
        "S1e": jnp.asarray(S1e, bf), "S1o": jnp.asarray(S1o, bf),
        "W2c": jnp.asarray(W2c, bf), "b2t": jnp.asarray(b2t),
        "S2e": jnp.asarray(S2e, bf), "S2o": jnp.asarray(S2o, bf),
        "Wf1": jnp.asarray(Wf1, bf), "bf1": jnp.asarray(bf1),
        "Wf2": jnp.asarray(Wf2, bf), "bf2": jnp.asarray(bf2),
        "Wf3": jnp.asarray(Wf3, bf), "bf3": jnp.asarray(bf3),
    }


# ---------------------------------------------------------------------------
# Forward pass (mirrors Net.forward) — a single fused pallas_call
# ---------------------------------------------------------------------------
def net_forward(kp, x):
    n = x.shape[0]
    # One boundary transpose to channels-last slabs (N, 32, 96), col = w*3+c;
    # pad lanes 96->128, rows 32->36 (conv-band slack), batch -> multiple of B.
    x2 = jnp.transpose(x, (0, 2, 3, 1)).reshape(n, 32, 96).astype(jnp.float32)
    pad_n = (-n) % B
    x2 = jnp.pad(x2, ((0, pad_n), (0, 4), (0, 32)))
    n_pad = n + pad_n

    c2 = lambda i: (0, 0)
    c3 = lambda i: (0, 0, 0)
    out = pl.pallas_call(
        _net_kernel,
        out_shape=jax.ShapeDtypeStruct((n_pad, 128), jnp.float32),
        grid=(n_pad // B,),
        in_specs=[
            pl.BlockSpec((B, 36, 128), lambda i: (i, 0, 0)),  # images
            pl.BlockSpec((640, 256), c2),                     # conv1 banded W
            pl.BlockSpec((1, 256), c2),                       # conv1 bias
            pl.BlockSpec((B * 24, B * 32), c2),               # pool1 even sel
            pl.BlockSpec((B * 24, B * 32), c2),               # pool1 odd sel
            pl.BlockSpec((640, 256), c2),                     # conv2 banded W
            pl.BlockSpec((1, 256), c2),                       # conv2 bias
            pl.BlockSpec((5 * B, B * 16), c2),                # pool2 even sel
            pl.BlockSpec((5 * B, B * 16), c2),                # pool2 odd sel
            pl.BlockSpec((5, 128, 128), c3),                  # fc1 per-h W
            pl.BlockSpec((1, 128), c2),                       # fc1 bias
            pl.BlockSpec((128, 128), c2),                     # fc2 W (padded)
            pl.BlockSpec((1, 128), c2),                       # fc2 bias
            pl.BlockSpec((128, 128), c2),                     # fc3 W (padded)
            pl.BlockSpec((1, 128), c2),                       # fc3 bias
        ],
        out_specs=pl.BlockSpec((B, 128), lambda i: (i, 0)),   # lane-dense logits
        compiler_params=pltpu.CompilerParams(
            dimension_semantics=("parallel",)),
    )(x2, kp["W1c"], kp["b1t"], kp["S1e"], kp["S1o"],
      kp["W2c"], kp["b2t"], kp["S2e"], kp["S2o"],
      kp["Wf1"], kp["bf1"], kp["Wf2"], kp["bf2"], kp["Wf3"], kp["bf3"])
    return out[:n, :10]


if __name__ == "__main__":
    key = jax.random.PRNGKey(0)
    pkey, xkey = jax.random.split(key)
    params = init_params(pkey)
    kparams = prepare_params(params)          # one-time layout conversion
    # Net's fc1 (16*5*5) implies 3x32x32 inputs; batch 16 -> grid length 2.
    x = jax.random.normal(xkey, (16, 3, 32, 32), jnp.float32)
    out = jax.jit(net_forward)(kparams, x)
    out = jax.block_until_ready(out)
    assert out.shape == (16, 10) and out.dtype == jnp.float32
    print("KERNEL_OK")
</pallas_src>

<mosaic_0001>
module attributes {stable_mosaic.version = 11 : i64} {
  func.func @_net_kernel(%arg0: i32, %arg1: memref<8x36x128xf32, #tpu.memory_space<vmem>>, %arg2: memref<640x256xbf16, #tpu.memory_space<vmem>>, %arg3: memref<1x256xf32, #tpu.memory_space<vmem>>, %arg4: memref<192x256xbf16, #tpu.memory_space<vmem>>, %arg5: memref<192x256xbf16, #tpu.memory_space<vmem>>, %arg6: memref<640x256xbf16, #tpu.memory_space<vmem>>, %arg7: memref<1x256xf32, #tpu.memory_space<vmem>>, %arg8: memref<40x128xbf16, #tpu.memory_space<vmem>>, %arg9: memref<40x128xbf16, #tpu.memory_space<vmem>>, %arg10: memref<5x128x128xbf16, #tpu.memory_space<vmem>>, %arg11: memref<1x128xf32, #tpu.memory_space<vmem>>, %arg12: memref<128x128xbf16, #tpu.memory_space<vmem>>, %arg13: memref<1x128xf32, #tpu.memory_space<vmem>>, %arg14: memref<128x128xbf16, #tpu.memory_space<vmem>>, %arg15: memref<1x128xf32, #tpu.memory_space<vmem>>, %arg16: memref<8x128xf32, #tpu.memory_space<vmem>>) attributes {dimension_semantics = [#tpu.dimension_semantics<parallel>], iteration_bounds = array<i64: 2>, scalar_prefetch = 0 : i64, scratch_operands = 0 : i64, tpu.core_type = #tpu.core_type<tc>, window_params = [{transform_indices = @transform_0, window_bounds = array<i64: 8, 36, 128>}, {pipeline_mode = #tpu.pipeline_mode<synchronous>, transform_indices = @transform_1, window_bounds = array<i64: 640, 256>}, {pipeline_mode = #tpu.pipeline_mode<synchronous>, transform_indices = @transform_2, window_bounds = array<i64: 1, 256>}, {pipeline_mode = #tpu.pipeline_mode<synchronous>, transform_indices = @transform_3, window_bounds = array<i64: 192, 256>}, {pipeline_mode = #tpu.pipeline_mode<synchronous>, transform_indices = @transform_4, window_bounds = array<i64: 192, 256>}, {pipeline_mode = #tpu.pipeline_mode<synchronous>, transform_indices = @transform_5, window_bounds = array<i64: 640, 256>}, {pipeline_mode = #tpu.pipeline_mode<synchronous>, transform_indices = @transform_6, window_bounds = array<i64: 1, 256>}, {pipeline_mode = #tpu.pipeline_mode<synchronous>, transform_indices = @transform_7, window_bounds = array<i64: 40, 128>}, {pipeline_mode = #tpu.pipeline_mode<synchronous>, transform_indices = @transform_8, window_bounds = array<i64: 40, 128>}, {pipeline_mode = #tpu.pipeline_mode<synchronous>, transform_indices = @transform_9, window_bounds = array<i64: 5, 128, 128>}, {pipeline_mode = #tpu.pipeline_mode<synchronous>, transform_indices = @transform_10, window_bounds = array<i64: 1, 128>}, {pipeline_mode = #tpu.pipeline_mode<synchronous>, transform_indices = @transform_11, window_bounds = array<i64: 128, 128>}, {pipeline_mode = #tpu.pipeline_mode<synchronous>, transform_indices = @transform_12, window_bounds = array<i64: 1, 128>}, {pipeline_mode = #tpu.pipeline_mode<synchronous>, transform_indices = @transform_13, window_bounds = array<i64: 128, 128>}, {pipeline_mode = #tpu.pipeline_mode<synchronous>, transform_indices = @transform_14, window_bounds = array<i64: 1, 128>}, {transform_indices = @transform_15, window_bounds = array<i64: 8, 128>}]} {
    %c0 = arith.constant 0 : index
    %c0_0 = arith.constant 0 : index
    %c0_1 = arith.constant 0 : index
    %0 = vector.load %arg1[%c0, %c0_0, %c0_1] : memref<8x36x128xf32, #tpu.memory_space<vmem>>, vector<8x32x128xf32>
    %1 = vector.shape_cast %0 : vector<8x32x128xf32> to vector<256x128xf32>
    %c0_2 = arith.constant 0 : index
    %c1 = arith.constant 1 : index
    %c0_3 = arith.constant 0 : index
    %2 = vector.load %arg1[%c0_2, %c1, %c0_3] : memref<8x36x128xf32, #tpu.memory_space<vmem>>, vector<8x32x128xf32>
    %3 = vector.shape_cast %2 : vector<8x32x128xf32> to vector<256x128xf32>
    %c0_4 = arith.constant 0 : index
    %c2 = arith.constant 2 : index
    %c0_5 = arith.constant 0 : index
    %4 = vector.load %arg1[%c0_4, %c2, %c0_5] : memref<8x36x128xf32, #tpu.memory_space<vmem>>, vector<8x32x128xf32>
    %5 = vector.shape_cast %4 : vector<8x32x128xf32> to vector<256x128xf32>
    %c0_6 = arith.constant 0 : index
    %c3 = arith.constant 3 : index
    %c0_7 = arith.constant 0 : index
    %6 = vector.load %arg1[%c0_6, %c3, %c0_7] : memref<8x36x128xf32, #tpu.memory_space<vmem>>, vector<8x32x128xf32>
    %7 = vector.shape_cast %6 : vector<8x32x128xf32> to vector<256x128xf32>
    %c0_8 = arith.constant 0 : index
    %c4 = arith.constant 4 : index
    %c0_9 = arith.constant 0 : index
    %8 = vector.load %arg1[%c0_8, %c4, %c0_9] : memref<8x36x128xf32, #tpu.memory_space<vmem>>, vector<8x32x128xf32>
    %9 = vector.shape_cast %8 : vector<8x32x128xf32> to vector<256x128xf32>
    %10 = tpu.concatenate %1, %3, %5, %7, %9 in 1 : vector<256x128xf32>, vector<256x128xf32>, vector<256x128xf32>, vector<256x128xf32>, vector<256x128xf32> -> vector<256x640xf32>
    %11 = arith.truncf %10 : vector<256x640xf32> to vector<256x640xbf16>
    %c0_10 = arith.constant 0 : index
    %c0_11 = arith.constant 0 : index
    %12 = vector.load %arg2[%c0_10, %c0_11] : memref<640x256xbf16, #tpu.memory_space<vmem>>, vector<640x256xbf16>
    %cst = arith.constant dense<0.000000e+00> : vector<256x256xf32>
    %13 = tpu.matmul %11, %12, %cst {dimension_numbers = #tpu.dot_dimension_numbers<[1], [0], [0], [1], [0, 0, 1, 1], [], []>} : vector<256x640xbf16>, vector<640x256xbf16>, vector<256x256xf32> -> vector<256x256xf32>
    %c0_12 = arith.constant 0 : index
    %c0_13 = arith.constant 0 : index
    %14 = vector.load %arg3[%c0_12, %c0_13] : memref<1x256xf32, #tpu.memory_space<vmem>>, vector<1x256xf32>
    %15 = vector.broadcast %14 : vector<1x256xf32> to vector<256x256xf32>
    %16 = arith.addf %13, %15 : vector<256x256xf32>
    %cst_14 = arith.constant 0.000000e+00 : f32
    %17 = vector.broadcast %cst_14 : f32 to vector<256x256xf32>
    %18 = arith.maximumf %16, %17 : vector<256x256xf32>
    %19 = vector.extract_strided_slice %18 {offsets = [0, 0], sizes = [256, 128], strides = [1, 1]} : vector<256x256xf32> to vector<256x128xf32>
    %20 = vector.extract_strided_slice %18 {offsets = [0, 128], sizes = [256, 128], strides = [1, 1]} : vector<256x256xf32> to vector<256x128xf32>
    %21 = arith.maximumf %19, %20 : vector<256x128xf32>
    %22 = arith.truncf %21 : vector<256x128xf32> to vector<256x128xbf16>
    %c0_15 = arith.constant 0 : index
    %c0_16 = arith.constant 0 : index
    %23 = vector.load %arg4[%c0_15, %c0_16] : memref<192x256xbf16, #tpu.memory_space<vmem>>, vector<192x256xbf16>
    %cst_17 = arith.constant dense<0.000000e+00> : vector<192x128xf32>
    %24 = tpu.matmul %23, %22, %cst_17 {dimension_numbers = #tpu.dot_dimension_numbers<[1], [0], [0], [1], [0, 0, 1, 1], [], []>} : vector<192x256xbf16>, vector<256x128xbf16>, vector<192x128xf32> -> vector<192x128xf32>
    %c0_18 = arith.constant 0 : index
    %c0_19 = arith.constant 0 : index
    %25 = vector.load %arg5[%c0_18, %c0_19] : memref<192x256xbf16, #tpu.memory_space<vmem>>, vector<192x256xbf16>
    %cst_20 = arith.constant dense<0.000000e+00> : vector<192x128xf32>
    %26 = tpu.matmul %25, %22, %cst_20 {dimension_numbers = #tpu.dot_dimension_numbers<[1], [0], [0], [1], [0, 0, 1, 1], [], []>} : vector<192x256xbf16>, vector<256x128xbf16>, vector<192x128xf32> -> vector<192x128xf32>
    %27 = arith.maximumf %24, %26 : vector<192x128xf32>
    %28 = vector.shape_cast %27 : vector<192x128xf32> to vector<8x24x128xf32>
    %29 = vector.extract_strided_slice %28 {offsets = [0, 0, 0], sizes = [8, 16, 128], strides = [1, 1, 1]} : vector<8x24x128xf32> to vector<8x16x128xf32>
    %30 = vector.shape_cast %29 : vector<8x16x128xf32> to vector<128x128xf32>
    %31 = vector.extract_strided_slice %28 {offsets = [0, 1, 0], sizes = [8, 16, 128], strides = [1, 1, 1]} : vector<8x24x128xf32> to vector<8x16x128xf32>
    %32 = vector.shape_cast %31 : vector<8x16x128xf32> to vector<128x128xf32>
    %33 = vector.extract_strided_slice %28 {offsets = [0, 2, 0], sizes = [8, 16, 128], strides = [1, 1, 1]} : vector<8x24x128xf32> to vector<8x16x128xf32>
    %34 = vector.shape_cast %33 : vector<8x16x128xf32> to vector<128x128xf32>
    %35 = vector.extract_strided_slice %28 {offsets = [0, 3, 0], sizes = [8, 16, 128], strides = [1, 1, 1]} : vector<8x24x128xf32> to vector<8x16x128xf32>
    %36 = vector.shape_cast %35 : vector<8x16x128xf32> to vector<128x128xf32>
    %37 = vector.extract_strided_slice %28 {offsets = [0, 4, 0], sizes = [8, 16, 128], strides = [1, 1, 1]} : vector<8x24x128xf32> to vector<8x16x128xf32>
    %38 = vector.shape_cast %37 : vector<8x16x128xf32> to vector<128x128xf32>
    %39 = tpu.concatenate %30, %32, %34, %36, %38 in 1 : vector<128x128xf32>, vector<128x128xf32>, vector<128x128xf32>, vector<128x128xf32>, vector<128x128xf32> -> vector<128x640xf32>
    %40 = arith.truncf %39 : vector<128x640xf32> to vector<128x640xbf16>
    %c0_21 = arith.constant 0 : index
    %c0_22 = arith.constant 0 : index
    %41 = vector.load %arg6[%c0_21, %c0_22] : memref<640x256xbf16, #tpu.memory_space<vmem>>, vector<640x256xbf16>
    %cst_23 = arith.constant dense<0.000000e+00> : vector<128x256xf32>
    %42 = tpu.matmul %40, %41, %cst_23 {dimension_numbers = #tpu.dot_dimension_numbers<[1], [0], [0], [1], [0, 0, 1, 1], [], []>} : vector<128x640xbf16>, vector<640x256xbf16>, vector<128x256xf32> -> vector<128x256xf32>
    %c0_24 = arith.constant 0 : index
    %c0_25 = arith.constant 0 : index
    %43 = vector.load %arg7[%c0_24, %c0_25] : memref<1x256xf32, #tpu.memory_space<vmem>>, vector<1x256xf32>
    %44 = vector.broadcast %43 : vector<1x256xf32> to vector<128x256xf32>
    %45 = arith.addf %42, %44 : vector<128x256xf32>
    %cst_26 = arith.constant 0.000000e+00 : f32
    %46 = vector.broadcast %cst_26 : f32 to vector<128x256xf32>
    %47 = arith.maximumf %45, %46 : vector<128x256xf32>
    %48 = vector.extract_strided_slice %47 {offsets = [0, 0], sizes = [128, 128], strides = [1, 1]} : vector<128x256xf32> to vector<128x128xf32>
    %49 = vector.extract_strided_slice %47 {offsets = [0, 128], sizes = [128, 128], strides = [1, 1]} : vector<128x256xf32> to vector<128x128xf32>
    %50 = arith.maximumf %48, %49 : vector<128x128xf32>
    %51 = arith.truncf %50 : vector<128x128xf32> to vector<128x128xbf16>
    %c0_27 = arith.constant 0 : index
    %c0_28 = arith.constant 0 : index
    %52 = vector.load %arg8[%c0_27, %c0_28] : memref<40x128xbf16, #tpu.memory_space<vmem>>, vector<40x128xbf16>
    %cst_29 = arith.constant dense<0.000000e+00> : vector<40x128xf32>
    %53 = tpu.matmul %52, %51, %cst_29 {dimension_numbers = #tpu.dot_dimension_numbers<[1], [0], [0], [1], [0, 0, 1, 1], [], []>} : vector<40x128xbf16>, vector<128x128xbf16>, vector<40x128xf32> -> vector<40x128xf32>
    %c0_30 = arith.constant 0 : index
    %c0_31 = arith.constant 0 : index
    %54 = vector.load %arg9[%c0_30, %c0_31] : memref<40x128xbf16, #tpu.memory_space<vmem>>, vector<40x128xbf16>
    %cst_32 = arith.constant dense<0.000000e+00> : vector<40x128xf32>
    %55 = tpu.matmul %54, %51, %cst_32 {dimension_numbers = #tpu.dot_dimension_numbers<[1], [0], [0], [1], [0, 0, 1, 1], [], []>} : vector<40x128xbf16>, vector<128x128xbf16>, vector<40x128xf32> -> vector<40x128xf32>
    %56 = arith.maximumf %53, %55 : vector<40x128xf32>
    %cst_33 = arith.constant 0.000000e+00 : f32
    %57 = vector.broadcast %cst_33 : f32 to vector<8x128xf32>
    %58 = vector.extract_strided_slice %56 {offsets = [0, 0], sizes = [8, 128], strides = [1, 1]} : vector<40x128xf32> to vector<8x128xf32>
    %59 = arith.truncf %58 : vector<8x128xf32> to vector<8x128xbf16>
    %c0_34 = arith.constant 0 : index
    %c0_35 = arith.constant 0 : index
    %c0_36 = arith.constant 0 : index
    %60 = vector.load %arg10[%c0_34, %c0_35, %c0_36] : memref<5x128x128xbf16, #tpu.memory_space<vmem>>, vector<1x128x128xbf16>
    %61 = vector.shape_cast %60 : vector<1x128x128xbf16> to vector<128x128xbf16>
    %cst_37 = arith.constant dense<0.000000e+00> : vector<8x128xf32>
    %62 = tpu.matmul %59, %61, %cst_37 {dimension_numbers = #tpu.dot_dimension_numbers<[1], [0], [0], [1], [0, 0, 1, 1], [], []>} : vector<8x128xbf16>, vector<128x128xbf16>, vector<8x128xf32> -> vector<8x128xf32>
    %63 = arith.addf %57, %62 : vector<8x128xf32>
    %64 = vector.extract_strided_slice %56 {offsets = [8, 0], sizes = [8, 128], strides = [1, 1]} : vector<40x128xf32> to vector<8x128xf32>
    %65 = arith.truncf %64 : vector<8x128xf32> to vector<8x128xbf16>
    %c1_38 = arith.constant 1 : index
    %c0_39 = arith.constant 0 : index
    %c0_40 = arith.constant 0 : index
    %66 = vector.load %arg10[%c1_38, %c0_39, %c0_40] : memref<5x128x128xbf16, #tpu.memory_space<vmem>>, vector<1x128x128xbf16>
    %67 = vector.shape_cast %66 : vector<1x128x128xbf16> to vector<128x128xbf16>
    %cst_41 = arith.constant dense<0.000000e+00> : vector<8x128xf32>
    %68 = tpu.matmul %65, %67, %cst_41 {dimension_numbers = #tpu.dot_dimension_numbers<[1], [0], [0], [1], [0, 0, 1, 1], [], []>} : vector<8x128xbf16>, vector<128x128xbf16>, vector<8x128xf32> -> vector<8x128xf32>
    %69 = arith.addf %63, %68 : vector<8x128xf32>
    %70 = vector.extract_strided_slice %56 {offsets = [16, 0], sizes = [8, 128], strides = [1, 1]} : vector<40x128xf32> to vector<8x128xf32>
    %71 = arith.truncf %70 : vector<8x128xf32> to vector<8x128xbf16>
    %c2_42 = arith.constant 2 : index
    %c0_43 = arith.constant 0 : index
    %c0_44 = arith.constant 0 : index
    %72 = vector.load %arg10[%c2_42, %c0_43, %c0_44] : memref<5x128x128xbf16, #tpu.memory_space<vmem>>, vector<1x128x128xbf16>
    %73 = vector.shape_cast %72 : vector<1x128x128xbf16> to vector<128x128xbf16>
    %cst_45 = arith.constant dense<0.000000e+00> : vector<8x128xf32>
    %74 = tpu.matmul %71, %73, %cst_45 {dimension_numbers = #tpu.dot_dimension_numbers<[1], [0], [0], [1], [0, 0, 1, 1], [], []>} : vector<8x128xbf16>, vector<128x128xbf16>, vector<8x128xf32> -> vector<8x128xf32>
    %75 = arith.addf %69, %74 : vector<8x128xf32>
    %76 = vector.extract_strided_slice %56 {offsets = [24, 0], sizes = [8, 128], strides = [1, 1]} : vector<40x128xf32> to vector<8x128xf32>
    %77 = arith.truncf %76 : vector<8x128xf32> to vector<8x128xbf16>
    %c3_46 = arith.constant 3 : index
    %c0_47 = arith.constant 0 : index
    %c0_48 = arith.constant 0 : index
    %78 = vector.load %arg10[%c3_46, %c0_47, %c0_48] : memref<5x128x128xbf16, #tpu.memory_space<vmem>>, vector<1x128x128xbf16>
    %79 = vector.shape_cast %78 : vector<1x128x128xbf16> to vector<128x128xbf16>
    %cst_49 = arith.constant dense<0.000000e+00> : vector<8x128xf32>
    %80 = tpu.matmul %77, %79, %cst_49 {dimension_numbers = #tpu.dot_dimension_numbers<[1], [0], [0], [1], [0, 0, 1, 1], [], []>} : vector<8x128xbf16>, vector<128x128xbf16>, vector<8x128xf32> -> vector<8x128xf32>
    %81 = arith.addf %75, %80 : vector<8x128xf32>
    %82 = vector.extract_strided_slice %56 {offsets = [32, 0], sizes = [8, 128], strides = [1, 1]} : vector<40x128xf32> to vector<8x128xf32>
    %83 = arith.truncf %82 : vector<8x128xf32> to vector<8x128xbf16>
    %c4_50 = arith.constant 4 : index
    %c0_51 = arith.constant 0 : index
    %c0_52 = arith.constant 0 : index
    %84 = vector.load %arg10[%c4_50, %c0_51, %c0_52] : memref<5x128x128xbf16, #tpu.memory_space<vmem>>, vector<1x128x128xbf16>
    %85 = vector.shape_cast %84 : vector<1x128x128xbf16> to vector<128x128xbf16>
    %cst_53 = arith.constant dense<0.000000e+00> : vector<8x128xf32>
    %86 = tpu.matmul %83, %85, %cst_53 {dimension_numbers = #tpu.dot_dimension_numbers<[1], [0], [0], [1], [0, 0, 1, 1], [], []>} : vector<8x128xbf16>, vector<128x128xbf16>, vector<8x128xf32> -> vector<8x128xf32>
    %87 = arith.addf %81, %86 : vector<8x128xf32>
    %c0_54 = arith.constant 0 : index
    %c0_55 = arith.constant 0 : index
    %88 = vector.load %arg11[%c0_54, %c0_55] : memref<1x128xf32, #tpu.memory_space<vmem>>, vector<1x128xf32>
    %89 = vector.broadcast %88 : vector<1x128xf32> to vector<8x128xf32>
    %90 = arith.addf %87, %89 : vector<8x128xf32>
    %cst_56 = arith.constant 0.000000e+00 : f32
    %91 = vector.broadcast %cst_56 : f32 to vector<8x128xf32>
    %92 = arith.maximumf %90, %91 : vector<8x128xf32>
    %93 = arith.truncf %92 : vector<8x128xf32> to vector<8x128xbf16>
    %c0_57 = arith.constant 0 : index
    %c0_58 = arith.constant 0 : index
    %94 = vector.load %arg12[%c0_57, %c0_58] : memref<128x128xbf16, #tpu.memory_space<vmem>>, vector<128x128xbf16>
    %cst_59 = arith.constant dense<0.000000e+00> : vector<8x128xf32>
    %95 = tpu.matmul %93, %94, %cst_59 {dimension_numbers = #tpu.dot_dimension_numbers<[1], [0], [0], [1], [0, 0, 1, 1], [], []>} : vector<8x128xbf16>, vector<128x128xbf16>, vector<8x128xf32> -> vector<8x128xf32>
    %c0_60 = arith.constant 0 : index
    %c0_61 = arith.constant 0 : index
    %96 = vector.load %arg13[%c0_60, %c0_61] : memref<1x128xf32, #tpu.memory_space<vmem>>, vector<1x128xf32>
    %97 = vector.broadcast %96 : vector<1x128xf32> to vector<8x128xf32>
    %98 = arith.addf %95, %97 : vector<8x128xf32>
    %cst_62 = arith.constant 0.000000e+00 : f32
    %99 = vector.broadcast %cst_62 : f32 to vector<8x128xf32>
    %100 = arith.maximumf %98, %99 : vector<8x128xf32>
    %101 = arith.truncf %100 : vector<8x128xf32> to vector<8x128xbf16>
    %c0_63 = arith.constant 0 : index
    %c0_64 = arith.constant 0 : index
    %102 = vector.load %arg14[%c0_63, %c0_64] : memref<128x128xbf16, #tpu.memory_space<vmem>>, vector<128x128xbf16>
    %cst_65 = arith.constant dense<0.000000e+00> : vector<8x128xf32>
    %103 = tpu.matmul %101, %102, %cst_65 {dimension_numbers = #tpu.dot_dimension_numbers<[1], [0], [0], [1], [0, 0, 1, 1], [], []>} : vector<8x128xbf16>, vector<128x128xbf16>, vector<8x128xf32> -> vector<8x128xf32>
    %c0_66 = arith.constant 0 : index
    %c0_67 = arith.constant 0 : index
    %104 = vector.load %arg15[%c0_66, %c0_67] : memref<1x128xf32, #tpu.memory_space<vmem>>, vector<1x128xf32>
    %105 = vector.broadcast %104 : vector<1x128xf32> to vector<8x128xf32>
    %106 = arith.addf %103, %105 : vector<8x128xf32>
    %c0_68 = arith.constant 0 : index
    %c0_69 = arith.constant 0 : index
    %107 = vector.load %arg16[%c0_68, %c0_69] : memref<8x128xf32, #tpu.memory_space<vmem>>, vector<8x128xf32>
    tpu.vector_store %arg16[%c0_68, %c0_69], %106 {strides = array<i32>} : memref<8x128xf32, #tpu.memory_space<vmem>>, vector<8x128xf32>,
    return
  }
  func.func @transform_0(%arg0: i32) -> (i32, i32, i32) {
    %c0_i32 = arith.constant 0 : i32
    %c0_i32_0 = arith.constant 0 : i32
    %c0_i32_1 = arith.constant 0 : i32
    return %arg0, %c0_i32, %c0_i32_0 : i32, i32, i32
  }
  func.func @transform_1(%arg0: i32) -> (i32, i32) {
    %c0_i32 = arith.constant 0 : i32
    %c0_i32_0 = arith.constant 0 : i32
    %c0_i32_1 = arith.constant 0 : i32
    return %c0_i32, %c0_i32_0 : i32, i32
  }
  func.func @transform_2(%arg0: i32) -> (i32, i32) {
    %c0_i32 = arith.constant 0 : i32
    %c0_i32_0 = arith.constant 0 : i32
    %c0_i32_1 = arith.constant 0 : i32
    return %c0_i32, %c0_i32_0 : i32, i32
  }
  func.func @transform_3(%arg0: i32) -> (i32, i32) {
    %c0_i32 = arith.constant 0 : i32
    %c0_i32_0 = arith.constant 0 : i32
    %c0_i32_1 = arith.constant 0 : i32
    return %c0_i32, %c0_i32_0 : i32, i32
  }
  func.func @transform_4(%arg0: i32) -> (i32, i32) {
    %c0_i32 = arith.constant 0 : i32
    %c0_i32_0 = arith.constant 0 : i32
    %c0_i32_1 = arith.constant 0 : i32
    return %c0_i32, %c0_i32_0 : i32, i32
  }
  func.func @transform_5(%arg0: i32) -> (i32, i32) {
    %c0_i32 = arith.constant 0 : i32
    %c0_i32_0 = arith.constant 0 : i32
    %c0_i32_1 = arith.constant 0 : i32
    return %c0_i32, %c0_i32_0 : i32, i32
  }
  func.func @transform_6(%arg0: i32) -> (i32, i32) {
    %c0_i32 = arith.constant 0 : i32
    %c0_i32_0 = arith.constant 0 : i32
    %c0_i32_1 = arith.constant 0 : i32
    return %c0_i32, %c0_i32_0 : i32, i32
  }
  func.func @transform_7(%arg0: i32) -> (i32, i32) {
    %c0_i32 = arith.constant 0 : i32
    %c0_i32_0 = arith.constant 0 : i32
    %c0_i32_1 = arith.constant 0 : i32
    return %c0_i32, %c0_i32_0 : i32, i32
  }
  func.func @transform_8(%arg0: i32) -> (i32, i32) {
    %c0_i32 = arith.constant 0 : i32
    %c0_i32_0 = arith.constant 0 : i32
    %c0_i32_1 = arith.constant 0 : i32
    return %c0_i32, %c0_i32_0 : i32, i32
  }
  func.func @transform_9(%arg0: i32) -> (i32, i32, i32) {
    %c0_i32 = arith.constant 0 : i32
    %c0_i32_0 = arith.constant 0 : i32
    %c0_i32_1 = arith.constant 0 : i32
    %c0_i32_2 = arith.constant 0 : i32
    return %c0_i32, %c0_i32_0, %c0_i32_1 : i32, i32, i32
  }
  func.func @transform_10(%arg0: i32) -> (i32, i32) {
    %c0_i32 = arith.constant 0 : i32
    %c0_i32_0 = arith.constant 0 : i32
    %c0_i32_1 = arith.constant 0 : i32
    return %c0_i32, %c0_i32_0 : i32, i32
  }
  func.func @transform_11(%arg0: i32) -> (i32, i32) {
    %c0_i32 = arith.constant 0 : i32
    %c0_i32_0 = arith.constant 0 : i32
    %c0_i32_1 = arith.constant 0 : i32
    return %c0_i32, %c0_i32_0 : i32, i32
  }
  func.func @transform_12(%arg0: i32) -> (i32, i32) {
    %c0_i32 = arith.constant 0 : i32
    %c0_i32_0 = arith.constant 0 : i32
    %c0_i32_1 = arith.constant 0 : i32
    return %c0_i32, %c0_i32_0 : i32, i32
  }
  func.func @transform_13(%arg0: i32) -> (i32, i32) {
    %c0_i32 = arith.constant 0 : i32
    %c0_i32_0 = arith.constant 0 : i32
    %c0_i32_1 = arith.constant 0 : i32
    return %c0_i32, %c0_i32_0 : i32, i32
  }
  func.func @transform_14(%arg0: i32) -> (i32, i32) {
    %c0_i32 = arith.constant 0 : i32
    %c0_i32_0 = arith.constant 0 : i32
    %c0_i32_1 = arith.constant 0 : i32
    return %c0_i32, %c0_i32_0 : i32, i32
  }
  func.func @transform_15(%arg0: i32) -> (i32, i32) {
    %c0_i32 = arith.constant 0 : i32
    %c0_i32_0 = arith.constant 0 : i32
    return %arg0, %c0_i32 : i32, i32
  }
}

</mosaic_0001>

<bundles_post_ra>
// kernel: net_forward.1
= control target key start
LH: loop header
LB: loop body
LE: loop exit
PB: predicated region body
PF: predicated region fallthrough
CT: control target
= control target key end

     0   :  { %20 = vsyncpa [#allocation3], 0  ;;  %s8141_s0 = inlined_call_operand.vmem [shape: f32[16,36,128], index: 0, kind: input, shape index: {}]   ;;  %s8142_s1 = inlined_call_operand.vmem [shape: bf16[640,256], index: 1, kind: input, shape index: {}]   ;;  %s8143_s2 = inlined_call_operand.vmem [shape: f32[1,256], index: 2, kind: input, shape index: {}]   ;;  %s8144_s3 = inlined_call_operand.vmem [shape: bf16[192,256], index: 3, kind: input, shape index: {}]   ;;  %s8145_s4 = inlined_call_operand.vmem [shape: bf16[192,256], index: 4, kind: input, shape index: {}]   ;;  %s8146_s5 = inlined_call_operand.vmem [shape: bf16[640,256], index: 5, kind: input, shape index: {}]   ;;  %s8147_s6 = inlined_call_operand.vmem [shape: f32[1,256], index: 6, kind: input, shape index: {}]   ;;  %s8148_s7 = inlined_call_operand.vmem [shape: bf16[40,128], index: 7, kind: input, shape index: {}]   ;;  %s8149_s8 = inlined_call_operand.vmem [shape: bf16[40,128], index: 8, kind: input, shape index: {}]   ;;  %s8150_s9 = inlined_call_operand.vmem [shape: bf16[5,128,128], index: 9, kind: input, shape index: {}]   ;;  %s8151_s10 = inlined_call_operand.vmem [shape: f32[1,128], index: 10, kind: input, shape index: {}]   ;;  %s8152_s11 = inlined_call_operand.vmem [shape: bf16[128,128], index: 11, kind: input, shape index: {}]   ;;  %s8153_s12 = inlined_call_operand.vmem [shape: f32[1,128], index: 12, kind: input, shape index: {}]   ;;  %s8154_s13 = inlined_call_operand.vmem [shape: bf16[128,128], index: 13, kind: input, shape index: {}]   ;;  %s8155_s14 = inlined_call_operand.vmem [shape: f32[1,128], index: 14, kind: input, shape index: {}]   ;;  %s8156_s15 = inlined_call_operand.hbm [shape: f32[16,128], index: 15, kind: output, shape index: {}]  }
   0x1   :  { %22 = vsyncpa [#allocation3 + $0x1], 0  ;;  %s6038_s18 = smov 0   ;;  %s6040_s19 = smov 0  }
   0x2   :  { %s6042_s20 = smov 0   ;;  %s6044_s21 = smov 0  }
   0x3 LB: > { %8172 = sst [smem:[#allocation5_spill]] %s5940_s18  ;;  %s6059_s22 = sadd.s32 4294967295, %s5952_s21   ;;  %s5952_s21 = sphi %s6044_s21, %s8247_s21   ;;  %s5948_s20 = sphi %s6042_s20, %s8249_s20   ;;  %s5944_s19 = sphi %s6040_s19, %s8251_s19   ;;  %s5940_s18 = sphi %s6038_s18, %s8250_s18  }
   0x4   : > { %8173 = sst [smem:[#allocation6_spill]] %s5948_s20  ;;  %s4670_s23 = sadd.s32 4294967294, %s5952_s21  }
   0x5   : > { %s6063_s24 = sadd.s32 1, %s5952_s21   ;;  %s355_s25 = sadd.s32 1, %s5948_s20 }
   0x6   : > { %8174 = sst [smem:[#allocation7_spill]] %s6063_s24  ;;  %s352_s26 = ssub.s32 %s5952_s21, %s6063_s24 }
   0x7   : > { %p365_p0 = scmp.ne.s32.totalorder %s5948_s20, %s5944_s19  ;;  %p353_p1 = scmp.eq.s32.totalorder %s352_s26, 0 }
   0x8   : > { %p366_p2 = scmp.eq.s32.totalorder %s6059_s22, 1  ;;  %p371_p3 = scmp.ne.s32.totalorder %s5944_s19, %s5940_s18 }
   0x9   : > { %p372_p4 = scmp.eq.s32.totalorder %s4670_s23, 1  ;;  %p4673_p7 = scmp.ge.s32.totalorder %s5952_s21, 1 }
   0xa   : > { %s6074_s27 = scalar_select %p353_p1, %s5948_s20, %s355_s25  }
   0xb   : > { %p6076_p5 = por %p366_p2, %p365_p0  ;;  %p6080_p6 = por %p372_p4, %p371_p3 }
   0xc   : > { %8175 = sst [smem:[#allocation8_spill]] %s6074_s27  ;;  %p442_p8 = scmp.lt.s32.totalorder %s5952_s21, 3 }
   0xd   : > { %s8177_s29 = scalar_select %p6080_p6, 1, 0 }
   0xe   : > { %p443_p9 = pnand %p4673_p7, %p442_p8 }
   0xf   : > { %8178 = sst [smem:[#allocation9_spill]] %s8177_s29 }
  0x10   : > { %446 = sbr.rel (%p443_p9) target bundleno = 2144 (0x860), region = 80 }
  0x15   : > { %v5518_v0 = vld [vmem:[%s8142_s1 + $0x74] ss:$8 sps:$4 sm:$0xff]   ;;  %v5520_v1 = vld [vmem:[%s8142_s1 + $0x70] ss:$8 sps:$4 sm:$0xff]   ;;  %v5524_v4 = vld [vmem:[%s8142_s1 + $0x64] ss:$8 sps:$4 sm:$0xff]  }
  0x16   : > { %1231 = vmatprep.subr.bf16.mxu0 %v5518_v0  ;;  %v5521_v2 = vld [vmem:[%s8142_s1 + $0x174] ss:$8 sps:$4 sm:$0xff]   ;;  %v5523_v3 = vld [vmem:[%s8142_s1 + $0x170] ss:$8 sps:$4 sm:$0xff]   ;;  %v5526_v5 = vld [vmem:[%s8142_s1 + $0x60] ss:$8 sps:$4 sm:$0xff]  }
  0x17   : > { %1232 = vmatpush1.bf16.msra.mxu0 %v5520_v1  ;;  %1424 = vmatprep.subr.bf16.mxu1 %v5521_v2  ;;  %v5527_v6 = vld [vmem:[%s8142_s1 + $0x164] ss:$8 sps:$4 sm:$0xff]   ;;  %v5529_v7 = vld [vmem:[%s8142_s1 + $0x160] ss:$8 sps:$4 sm:$0xff]   ;;  %v5530_v8 = vld [vmem:[%s8142_s1 + $0x54] ss:$8 sps:$4 sm:$0xff]  }
  0x18   : > { %1425 = vmatpush1.bf16.msra.mxu1 %v5523_v3  ;;  %1233 = vmatprep.subr.bf16.mxu0 %v5524_v4  ;;  %v5532_v9 = vld [vmem:[%s8142_s1 + $0x50] ss:$8 sps:$4 sm:$0xff]   ;;  %v5533_v10 = vld [vmem:[%s8142_s1 + $0x154] ss:$8 sps:$4 sm:$0xff]   ;;  %v5536_v11 = vld [vmem:[%s8142_s1 + $0x44] ss:$8 sps:$4 sm:$0xff]  }
  0x19   : > { %1426 = vmatprep.subr.bf16.mxu1 %v5527_v6  ;;  %v5535_v12 = vld [vmem:[%s8142_s1 + $0x150] ss:$8 sps:$4 sm:$0xff]   ;;  %v5539_v13 = vld [vmem:[%s8142_s1 + $0x144] ss:$8 sps:$4 sm:$0xff]   ;;  %v5538_v14 = vld [vmem:[%s8142_s1 + $0x40] ss:$8 sps:$4 sm:$0xff]  }
  0x1a   : > { %v5542_v15 = vld [vmem:[%s8142_s1 + $0x34] ss:$8 sps:$4 sm:$0xff]   ;;  %v5541_v16 = vld [vmem:[%s8142_s1 + $0x140] ss:$8 sps:$4 sm:$0xff]   ;;  %v5544_v18 = vld [vmem:[%s8142_s1 + $0x30] ss:$8 sps:$4 sm:$0xff]  }
  0x1b   : > { %1234 = vmatpush1.bf16.msra.mxu0 %v5526_v5  ;;  %v5545_v17 = vld [vmem:[%s8142_s1 + $0x134] ss:$8 sps:$4 sm:$0xff]   ;;  %v5548_v19 = vld [vmem:[%s8142_s1 + $0x24] ss:$8 sps:$4 sm:$0xff]   ;;  %v5547_v20 = vld [vmem:[%s8142_s1 + $0x130] ss:$8 sps:$4 sm:$0xff]  }
  0x1c   : > { %1235 = vmatprep.subr.bf16.mxu0 %v5530_v8  ;;  %1427 = vmatpush1.bf16.msra.mxu1 %v5529_v7  ;;  %v5551_v21 = vld [vmem:[%s8142_s1 + $0x124] ss:$8 sps:$4 sm:$0xff]   ;;  %v5550_v22 = vld [vmem:[%s8142_s1 + $0x20] ss:$8 sps:$4 sm:$0xff]   ;;  %v5554_v23 = vld [vmem:[%s8142_s1 + $0x14] ss:$8 sps:$4 sm:$0xff]  }
  0x1d   : > { %1428 = vmatprep.subr.bf16.mxu1 %v5533_v10  ;;  %v5553_v24 = vld [vmem:[%s8142_s1 + $0x120] ss:$8 sps:$4 sm:$0xff]   ;;  %v5557_v25 = vld [vmem:[%s8142_s1 + $0x114] ss:$8 sps:$4 sm:$0xff]   ;;  %v5556_v26 = vld [vmem:[%s8142_s1 + $0x10] ss:$8 sps:$4 sm:$0xff]  }
  0x1e   : > { %v5560_v27 = vld [vmem:[%s8142_s1 + $0x4] ss:$8 sps:$4 sm:$0xff]   ;;  %s4675_s20 = sshll.u32 %s6059_s22, 3  ;;  %v5559_v28 = vld [vmem:[%s8142_s1 + $0x110] ss:$8 sps:$4 sm:$0xff]   ;;  %vm2573_vm0 = vcmask 1045504  }
  0x1f   : > { %1236 = vmatpush1.bf16.msra.mxu0 %v5532_v9  ;;  %v5563_v29 = vld [vmem:[%s8142_s1 + $0x104] ss:$8 sps:$4 sm:$0xff]   ;;  %v5562_v30 = vld [vmem:[%s8142_s1] ss:$8 sps:$4 sm:$0xff]   ;;  %p492_p10 = scmp.lt.s32.totalorder %s4675_s20, 15  ;;  %vm2687_vm1 = vcmask 1043456  }
  0x20   : > { %1237 = vmatprep.subr.bf16.mxu0 %v5536_v11  ;;  %1429 = vmatpush1.bf16.msra.mxu1 %v5535_v12  ;;  %v5566_v31 = vld [vmem:[%s8142_s1 + $0xf4] ss:$8 sps:$4 sm:$0xff]   ;;  %v5565_v32 = vld [vmem:[%s8142_s1 + $0x100] ss:$8 sps:$4 sm:$0xff]   ;;  %v5568_v34 = vld [vmem:[%s8142_s1 + $0xf0] ss:$8 sps:$4 sm:$0xff]  }
  0x21   : > { %1430 = vmatprep.subr.bf16.mxu1 %v5539_v13  ;;  %v5569_v33 = vld [vmem:[%s8142_s1 + $0x1f4] ss:$8 sps:$4 sm:$0xff]   ;;  %s8253_s20 = smov (!%p492_p10, %s4675_s20), 15  ;;  %v5572_v35 = vld [vmem:[%s8142_s1 + $0xe4] ss:$8 sps:$4 sm:$0xff]   ;;  %vm2516_vm2 = vcmask 1046528  }
  0x22   : > { %v5571_v36 = vld [vmem:[%s8142_s1 + $0x1f0] ss:$8 sps:$4 sm:$0xff]   ;;  %v5575_v37 = vld [vmem:[%s8142_s1 + $0x1e4] ss:$8 sps:$4 sm:$0xff]   ;;  %v5574_v38 = vld [vmem:[%s8142_s1 + $0xe0] ss:$8 sps:$4 sm:$0xff]  }
  0x23   : > { %1238 = vmatpush1.bf16.msra.mxu0 %v5538_v14  ;;  %s5475_s16 = smul.u32 40, %s8253_s20  ;;  %v5578_v39 = vld [vmem:[%s8142_s1 + $0xd4] ss:$8 sps:$4 sm:$0xff]   ;;  %v5577_v40 = vld [vmem:[%s8142_s1 + $0x1e0] ss:$8 sps:$4 sm:$0xff]   ;;  %vm2630_vm3 = vcmask 1044480  }
  0x24   : > { %1239 = vmatprep.subr.bf16.mxu0 %v5542_v15  ;;  %1431 = vmatpush1.bf16.msra.mxu1 %v5541_v16  ;;  %v5581_v41 = vld [vmem:[%s8142_s1 + $0x1d4] ss:$8 sps:$4 sm:$0xff]   ;;  %v5580_v42 = vld [vmem:[%s8142_s1 + $0xd0] ss:$8 sps:$4 sm:$0xff]   ;;  %v5584_v43 = vld [vmem:[%s8142_s1 + $0xc4] ss:$8 sps:$4 sm:$0xff]  }
  0x25   : > { %1432 = vmatprep.subr.bf16.mxu1 %v5545_v17  ;;  %s6219_s18 = scalar_lea.vmem %s8141_s0, %s5475_s16  ;;  %v5583_v44 = vld [vmem:[%s8142_s1 + $0x1d0] ss:$8 sps:$4 sm:$0xff]   ;;  %v5587_v45 = vld [vmem:[%s8142_s1 + $0x1c4] ss:$8 sps:$4 sm:$0xff]   ;;  %v5586_v48 = vld [vmem:[%s8142_s1 + $0xc0] ss:$8 sps:$4 sm:$0xff]  }
  0x26   : > { %v531_v46 = vld [vmem:[%s6219_s18 + $0x1] sm:$0xff]  ;;  %v532_v47 = vld [vmem:[%s6219_s18 + $0x9] sm:$0xff]  ;;  %v5590_v50 = vld [vmem:[%s8142_s1 + $0xb4] ss:$8 sps:$4 sm:$0xff]   ;;  %vm5956_vm4 = vmmov 0   ;;  %s488_s16 = sand.u32 1, %s5944_s19  }
  0x27   : > { %1240 = vmatpush1.bf16.msra.mxu0 %v5544_v18  ;;  %v660_v49 = vpack.c.bf16 %v532_v47, %v531_v46  ;;  %v595_v51 = vld [vmem:[%s6219_s18 + $0x3] sm:$0xff]  ;;  %v596_v52 = vld [vmem:[%s6219_s18 + $0xb] sm:$0xff]  ;;  %v5593_v55 = vld [vmem:[%s8142_s1 + $0x1b4] ss:$8 sps:$4 sm:$0xff]   ;;  %s4674_s29 = sshll.u32 %s488_s16, 3  ;;  %s5015_s17 = sshll.u32 %s6059_s22, 7 }
  0x28   : > { %1241 = vmatprep.subr.bf16.mxu0 %v5548_v19  ;;  %1433 = vmatpush1.bf16.msra.mxu1 %v5547_v20  ;;  %v5589_v53 = vld [vmem:[%s8142_s1 + $0x1c0] ss:$8 sps:$4 sm:$0xff]   ;;  %v662_v54 = vpack.c.bf16 %v596_v52, %v595_v51  ;;  %v5592_v56 = vld [vmem:[%s8142_s1 + $0xb0] ss:$8 sps:$4 sm:$0xff]   ;;  %v5596_v57 = vld [vmem:[%s8142_s1 + $0xa4] ss:$8 sps:$4 sm:$0xff]   ;;  %s8100_s24 = scalar_lea.hbm %s8156_s15, %s5015_s17 }
  0x29   : > { %1434 = vmatprep.subr.bf16.mxu1 %v5551_v21  ;;  %1263 = vmatprep.mubr.bf16.mxu0 %v660_v49  ;;  %v5595_v58 = vld [vmem:[%s8142_s1 + $0x1b0] ss:$8 sps:$4 sm:$0xff]   ;;  %v5599_v59 = vld [vmem:[%s8142_s1 + $0x1a4] ss:$8 sps:$4 sm:$0xff]   ;;  %v5598_v60 = vld [vmem:[%s8142_s1 + $0xa0] ss:$8 sps:$4 sm:$0xff]  }
  0x2a   : > { %1456 = vmatprep.mubr.bf16.mxu1 %v662_v54  ;;  %v5602_v61 = vld [vmem:[%s8142_s1 + $0x94] ss:$8 sps:$4 sm:$0xff]   ;;  %v5601_v62 = vld [vmem:[%s8142_s1 + $0x1a0] ss:$8 sps:$4 sm:$0xff]   ;;  %v5604_v0 = vld [vmem:[%s8142_s1 + $0x90] ss:$8 sps:$4 sm:$0xff]  }
  0x2b   : > { %1242 = vmatpush1.bf16.msra.mxu0 %v5550_v22  ;;  %v5605_v63 = vld [vmem:[%s8142_s1 + $0x194] ss:$8 sps:$4 sm:$0xff]   ;;  %v5608_v1 = vld [vmem:[%s8142_s1 + $0x84] ss:$8 sps:$4 sm:$0xff]   ;;  %v5607_v2 = vld [vmem:[%s8142_s1 + $0x190] ss:$8 sps:$4 sm:$0xff]  }
  0x2c   : > { %1243 = vmatprep.subr.bf16.mxu0 %v5554_v23  ;;  %1435 = vmatpush1.bf16.msra.mxu1 %v5553_v24  ;;  %v5611_v3 = vld [vmem:[%s8142_s1 + $0x184] ss:$8 sps:$4 sm:$0xff]   ;;  %v5610_v4 = vld [vmem:[%s8142_s1 + $0x80] ss:$8 sps:$4 sm:$0xff]   ;;  %v533_v7 = vld [vmem:[%s6219_s18 + $0x11] sm:$0xff]  ;;  %s490_s23 = scalar_lea.vmem [#allocation2], %s4674_s29 }
  0x2d   : > { %1436 = vmatprep.subr.bf16.mxu1 %v5557_v25  ;;  %v499_v5 = vld [vmem:[%s6219_s18] sm:$0xff]  ;;  %v500_v6 = vld [vmem:[%s6219_s18 + $0x8] sm:$0xff]  ;;  %v597_v13 = vld [vmem:[%s6219_s18 + $0x13] sm:$0xff]  ;;  %s4611_s25 = sshll.u32 %s490_s23, 4  ;;  %s5957_s22 = smov [#allocation2]   ;;  %s8102_s25 = int_to_ptr.vmem [resolvable:$true] %s4611_s25 }
  0x2e   : > { %v534_v8 = vld [vmem:[%s6219_s18 + $0x19] sm:$0xff]  ;;  %v563_v10 = vld [vmem:[%s6219_s18 + $0x2] sm:$0xff]  ;;  %v564_v11 = vld [vmem:[%s6219_s18 + $0xa] sm:$0xff]  ;;  %v659_v12 = vpack.c.bf16 %v500_v6, %v499_v5  ;;  %s5892_s20 = scalar_lea.vmem %s8102_s25, 128  ;;  %s5896_s29 = sshll.u32 %s5957_s22, 4  ;;  %s5897_s29 = int_to_ptr.vmem [resolvable:$false] %s5896_s29 }
  0x2f   : > { %1244 = vmatpush1.bf16.msra.mxu0 %v5556_v26  ;;  %v5613_v9 = vld [vmem:[%s8142_s1 + $0x180] ss:$8 sps:$4 sm:$0xff]   ;;  %v665_v15 = vpack.c.bf16 %v534_v8, %v533_v7  ;;  %v661_v16 = vpack.c.bf16 %v564_v11, %v563_v10  ;;  %v501_v18 = vld [vmem:[%s6219_s18 + $0x10] sm:$0xff]  ;;  %v502_v19 = vld [vmem:[%s6219_s18 + $0x18] sm:$0xff]  ;;  %p5893_p11 = scmp.ne.s32.totalorder %s8102_s25, %s5892_s20  ;;  %s5898_s30 = scalar_lea.vmem %s5897_s29, 256 }
  0x30   : > { %1245 = vmatprep.subr.bf16.mxu0 %v5560_v27  ;;  %1437 = vmatpush1.bf16.msra.mxu1 %v5559_v28  ;;  %v598_v14 = vld [vmem:[%s6219_s18 + $0x1b] sm:$0xff]  ;;  %v535_v20 = vld [vmem:[%s6219_s18 + $0x29] sm:$0xff]  ;;  %v536_v21 = vld [vmem:[%s6219_s18 + $0x31] sm:$0xff]  ;;  %v664_v24 = vpack.c.bf16 %v502_v19, %v501_v18  ;;  %p5899_p0 = scmp.lt.s32.totalorder %s8102_s25, %s5897_s29  ;;  %p5900_p1 = scmp.lt.s32.totalorder %s5898_s30, %s5892_s20 }
  0x31   : > { %1438 = vmatprep.subr.bf16.mxu1 %v5563_v29  ;;  %v667_v17 = vpack.c.bf16 %v598_v14, %v597_v13  ;;  %v565_v22 = vld [vmem:[%s6219_s18 + $0x12] sm:$0xff]  ;;  %v566_v23 = vld [vmem:[%s6219_s18 + $0x1a] sm:$0xff]  ;;  %v670_v27 = vpack.c.bf16 %v536_v21, %v535_v20  ;;  %v5625_v54 = vld [vmem:[%s8142_s1 + $0x244] ss:$8 sps:$4 sm:$0xff]   ;;  %p5894_p12 = pnand %p5893_p11, %p6076_p5 }
  0x32   : > { %v599_v25 = vld [vmem:[%s6219_s18 + $0x2b] sm:$0xff]  ;;  %v600_v26 = vld [vmem:[%s6219_s18 + $0x33] sm:$0xff]  ;;  %v666_v28 = vpack.c.bf16 %v566_v23, %v565_v22  ;;  %v605_v8 = vld [vmem:[%s6219_s18 + $0x63] sm:$0xff]  ;;  %p5901_p2 = por %p5900_p1, %p5899_p0 }
  0x33   : > { %1246 = vmatpush1.bf16.msra.mxu0 %v5562_v30  ;;  %v672_v29 = vpack.c.bf16 %v600_v26, %v599_v25  ;;  %v503_v30 = vld [vmem:[%s6219_s18 + $0x28] sm:$0xff]  ;;  %v505_v46 = vld [vmem:[%s6219_s18 + $0x38] sm:$0xff]  ;;  %p5895_p13 = pneg %p5894_p12 }
  0x34   : > { %1247 = vmatprep.subr.bf16.mxu0 %v5566_v31  ;;  %1439 = vmatpush1.bf16.msra.mxu1 %v5565_v32  ;;  %v504_v31 = vld [vmem:[%s6219_s18 + $0x30] sm:$0xff]  ;;  %v537_v32 = vld [vmem:[%s6219_s18 + $0x39] sm:$0xff]  ;;  %v5631_v6 = vld [vmem:[%s8142_s1 + $0x224] ss:$8 sps:$4 sm:$0xff]  }
  0x35   : > { %1440 = vmatprep.subr.bf16.mxu1 %v5569_v33  ;;  %v538_v33 = vld [vmem:[%s6219_s18 + $0x41] sm:$0xff]  ;;  %v5622_v47 = vld [vmem:[%s8142_s1 + $0x254] ss:$8 sps:$4 sm:$0xff]   ;;  %v5620_v51 = vld [vmem:[%s8142_s1 + $0x250] ss:$8 sps:$4 sm:$0xff]   ;;  %p5902_p3 = pnand %p5901_p2, %p5895_p13 }
  0x36   : > { %v539_v49 = vld [vmem:[%s6219_s18 + $0x51] sm:$0xff]  ;;  %v569_v52 = vld [vmem:[%s6219_s18 + $0x3a] sm:$0xff]  ;;  %v573_v18 = vld [vmem:[%s6219_s18 + $0x62] sm:$0xff] }
  0x37   : > { %1248 = vmatpush2.bf16.msra.mxu0 %v5568_v34  ;;  %v5614_v34 = vld [vmem:[%s8142_s1 + $0x270] ss:$8 sps:$4 sm:$0xff]   ;;  %v5634_v14 = vld [vmem:[%s8142_s1 + $0x214] ss:$8 sps:$4 sm:$0xff]   ;;  %v544_v20 = vld [vmem:[%s6219_s18 + $0x81] sm:$0xff] }
  0x38   : > { %1249 = vmatprep.subr.bf16.mxu0 %v5572_v35  ;;  %1441 = vmatpush2.bf16.msra.mxu1 %v5571_v36  ;;  %v567_v35 = vld [vmem:[%s6219_s18 + $0x2a] sm:$0xff]  ;;  %v568_v36 = vld [vmem:[%s6219_s18 + $0x32] sm:$0xff]  ;;  %v572_v5 = vld [vmem:[%s6219_s18 + $0x5a] sm:$0xff] }
  0x39   : > { %1442 = vmatprep.subr.bf16.mxu1 %v5575_v37  ;;  %v5616_v37 = vld [vmem:[%s8142_s1 + $0x274] ss:$8 sps:$4 sm:$0xff]   ;;  %v574_v19 = vld [vmem:[%s6219_s18 + $0x6a] sm:$0xff] }
  0x3a   : > { %v5632_v21 = vld [vmem:[%s8142_s1 + $0x210] ss:$8 sps:$4 sm:$0xff]   ;;  %v5637_v22 = vld [vmem:[%s8142_s1 + $0x204] ss:$8 sps:$4 sm:$0xff]   ;;  %v5635_v26 = vld [vmem:[%s8142_s1 + $0x200] ss:$8 sps:$4 sm:$0xff]  }
  0x3b   : > { %1250 = vmatpush2.bf16.msra.mxu0 %v5574_v38  ;;  %v669_v38 = vpack.c.bf16 %v504_v31, %v503_v30  ;;  %v607_v23 = vld [vmem:[%s6219_s18 + $0x7b] sm:$0xff] }
  0x3c   : > { %1251 = vmatprep.subr.bf16.mxu0 %v5578_v39  ;;  %1443 = vmatpush2.bf16.msra.mxu1 %v5577_v40  ;;  %v601_v39 = vld [vmem:[%s6219_s18 + $0x3b] sm:$0xff]  ;;  %v602_v40 = vld [vmem:[%s6219_s18 + $0x43] sm:$0xff] }
  0x3d   : > { %1444 = vmatprep.subr.bf16.mxu1 %v5581_v41  ;;  %v675_v41 = vpack.c.bf16 %v538_v33, %v537_v32  ;;  %v512_v30 = vld [vmem:[%s6219_s18 + $0x80] sm:$0xff] }
  0x3e   : > { %v575_v32 = vld [vmem:[%s6219_s18 + $0x7a] sm:$0xff]  ;;  %v576_v33 = vld [vmem:[%s6219_s18 + $0x82] sm:$0xff] }
  0x3f   : > { %1252 = vmatpush2.bf16.msra.mxu0 %v5580_v42  ;;  %v5619_v42 = vld [vmem:[%s8142_s1 + $0x264] ss:$8 sps:$4 sm:$0xff]  }
  0x40   : > { %1253 = vmatprep.subr.bf16.mxu0 %v5584_v43  ;;  %1445 = vmatpush2.bf16.msra.mxu1 %v5583_v44  ;;  %v671_v43 = vpack.c.bf16 %v568_v36, %v567_v35  ;;  %v5617_v44 = vld [vmem:[%s8142_s1 + $0x260] ss:$8 sps:$4 sm:$0xff]   ;;  %v546_v35 = vld [vmem:[%s6219_s18 + $0x91] sm:$0xff] }
  0x41   : > { %1446 = vmatprep.subr.bf16.mxu1 %v5587_v45  ;;  %v677_v45 = vpack.c.bf16 %v602_v40, %v601_v39  ;;  %v609_v36 = vld [vmem:[%s6219_s18 + $0x8b] sm:$0xff]  ;;  %v691_v40 = vpack.c.bf16 %v576_v33, %v575_v32  ;;  %v619_v32 = vld [vmem:[%s6219_s18 + $0xf3] sm:$0xff]  ;;  %v620_v33 = vld [vmem:[%s6219_s18 + $0xfb] sm:$0xff] }
  0x43   : > { %1254 = vmatpush2.bf16.msra.mxu0 %v5586_v48  ;;  %v506_v48 = vld [vmem:[%s6219_s18 + $0x40] sm:$0xff] }
  0x44   : > { %1255 = vmatprep.subr.bf16.mxu0 %v5590_v50  ;;  %1447 = vmatpush2.bf16.msra.mxu1 %v5589_v53  ;;  %v540_v50 = vld [vmem:[%s6219_s18 + $0x59] sm:$0xff]  ;;  %v570_v53 = vld [vmem:[%s6219_s18 + $0x42] sm:$0xff] }
  0x45   : > { %1448 = vmatprep.subr.bf16.mxu1 %v5593_v55  ;;  %v674_v55 = vpack.c.bf16 %v506_v48, %v505_v46  ;;  %v547_v46 = vld [vmem:[%s6219_s18 + $0xa1] sm:$0xff] }
  0x46   : > { %v611_v48 = vld [vmem:[%s6219_s18 + $0xa3] sm:$0xff] }
  0x47   : > { %1256 = vmatpush2.bf16.msra.mxu0 %v5592_v56  ;;  %v603_v56 = vld [vmem:[%s6219_s18 + $0x53] sm:$0xff] }
  0x48   : > { %1257 = vmatprep.subr.bf16.mxu0 %v5596_v57  ;;  %1449 = vmatpush2.bf16.msra.mxu1 %v5595_v58  ;;  %v604_v57 = vld [vmem:[%s6219_s18 + $0x5b] sm:$0xff]  ;;  %v680_v58 = vpack.c.bf16 %v540_v50, %v539_v49  ;;  %v612_v49 = vld [vmem:[%s6219_s18 + $0xab] sm:$0xff] }
  0x49   : > { %1450 = vmatprep.subr.bf16.mxu1 %v5599_v59  ;;  %v676_v59 = vpack.c.bf16 %v570_v53, %v569_v52  ;;  %v515_v53 = vld [vmem:[%s6219_s18 + $0xa0] sm:$0xff] }
  0x4b   : > { %1258 = vmatpush2.bf16.msra.mxu0 %v5598_v60  ;;  %v5623_v60 = vld [vmem:[%s8142_s1 + $0x240] ss:$8 sps:$4 sm:$0xff]  }
  0x4c   : > { %1259 = vmatprep.subr.bf16.mxu0 %v5602_v61  ;;  %1451 = vmatpush2.bf16.msra.mxu1 %v5601_v62  ;;  %v682_v61 = vpack.c.bf16 %v604_v57, %v603_v56  ;;  %v5628_v62 = vld [vmem:[%s8142_s1 + $0x234] ss:$8 sps:$4 sm:$0xff]   ;;  %v579_v57 = vld [vmem:[%s6219_s18 + $0xa2] sm:$0xff] }
  0x4d   : > { %1452 = vmatprep.subr.bf16.mxu1 %v5605_v63  ;;  %v507_v63 = vld [vmem:[%s6219_s18 + $0x50] sm:$0xff] }
  0x4e   : > { %v549_v56 = vld [vmem:[%s6219_s18 + $0xb1] sm:$0xff] }
  0x4f   : > { %1260 = vmatpush2.bf16.msra.mxu0 %v5604_v0  ;;  %v508_v0 = vld [vmem:[%s6219_s18 + $0x58] sm:$0xff] }
  0x50   : > { %1261 = vmatprep.subr.bf16.mxu0 %v5608_v1  ;;  %1453 = vmatpush2.bf16.msra.mxu1 %v5607_v2  ;;  %v541_v1 = vld [vmem:[%s6219_s18 + $0x61] sm:$0xff]  ;;  %v542_v2 = vld [vmem:[%s6219_s18 + $0x69] sm:$0xff]  ;;  %v679_v7 = vpack.c.bf16 %v508_v0, %v507_v63 }
  0x51   : > { %1454 = vmatprep.subr.bf16.mxu1 %v5611_v3  ;;  %v5626_v3 = vld [vmem:[%s8142_s1 + $0x230] ss:$8 sps:$4 sm:$0xff]   ;;  %v685_v10 = vpack.c.bf16 %v542_v2, %v541_v1 }
  0x52   : > { %v517_v1 = vld [vmem:[%s6219_s18 + $0xb0] sm:$0xff]  ;;  %v518_v2 = vld [vmem:[%s6219_s18 + $0xb8] sm:$0xff] }
  0x53   : > { %1262 = vmatpush2.bf16.msra.mxu0 %v5610_v4  ;;  %v571_v4 = vld [vmem:[%s6219_s18 + $0x52] sm:$0xff] }
  0x54   : > { %1455 = vmatpush2.bf16.msra.mxu1 %v5613_v9  ;;  %1617 = vmatprep.subr.bf16.mxu0 %v5616_v37  ;;  %v606_v9 = vld [vmem:[%s6219_s18 + $0x6b] sm:$0xff]  ;;  %v681_v11 = vpack.c.bf16 %v572_v5, %v571_v4  ;;  %v610_v37 = vld [vmem:[%s6219_s18 + $0x93] sm:$0xff] }
  0x55   : > { %v687_v13 = vpack.c.bf16 %v606_v9, %v605_v8  ;;  %v551_v4 = vld [vmem:[%s6219_s18 + $0xc9] sm:$0xff]  ;;  %v552_v5 = vld [vmem:[%s6219_s18 + $0xd1] sm:$0xff] }
  0x56   : > { %1264 = vmatmul.mubr.bf16.vlgmr.msra.gmra.mxu0 %v659_v12  ;;  %v5629_v12 = vld [vmem:[%s8142_s1 + $0x220] ss:$8 sps:$4 sm:$0xff]   ;;  %v616_v9 = vld [vmem:[%s6219_s18 + $0xd3] sm:$0xff] }
  0x57   : > { %1273 = vmatprep.mubr.bf16.mxu0 %v665_v15  ;;  %1457 = vmatmul.mubr.bf16.vlgmr.msra.gmra.mxu1 %v661_v16  ;;  %v509_v15 = vld [vmem:[%s6219_s18 + $0x60] sm:$0xff]  ;;  %v510_v16 = vld [vmem:[%s6219_s18 + $0x68] sm:$0xff] }
  0x58   : > { %1466 = vmatprep.mubr.bf16.mxu1 %v667_v17  ;;  %1618 = vmatpush1.bf16.msra.mxu0 %v5614_v34  ;;  %v543_v17 = vld [vmem:[%s6219_s18 + $0x79] sm:$0xff]  ;;  %v684_v25 = vpack.c.bf16 %v510_v16, %v509_v15  ;;  %v545_v34 = vld [vmem:[%s6219_s18 + $0x89] sm:$0xff] }
  0x59   : > { %1619 = vmatprep.subr.bf16.mxu0 %v5619_v42  ;;  %v695_v39 = vpack.c.bf16 %v546_v35, %v545_v34  ;;  %v514_v42 = vld [vmem:[%s6219_s18 + $0x90] sm:$0xff]  ;;  %v553_v16 = vld [vmem:[%s6219_s18 + $0xd9] sm:$0xff] }
  0x5a   : > { %v615_v8 = vld [vmem:[%s6219_s18 + $0xcb] sm:$0xff] }
  0x5b   : > { %v712_v15 = vpack.c.bf16 %v616_v9, %v615_v8  ;;  %v529_v9 = vld [vmem:[%s6219_s18 + $0x128] sm:$0xff] }
  0x5c   : > { %1620 = vmatpush1.bf16.msra.mxu0 %v5617_v44  ;;  %v577_v44 = vld [vmem:[%s6219_s18 + $0x8a] sm:$0xff] }
  0x5d   : > { %1621 = vmatprep.subr.bf16.mxu0 %v5622_v47  ;;  %v548_v47 = vld [vmem:[%s6219_s18 + $0xa9] sm:$0xff] }
  0x5e   : > { %1274 = vmatmul.mubr.bf16.gmra.mxu0 %v664_v24  ;;  %v608_v24 = vld [vmem:[%s6219_s18 + $0x83] sm:$0xff] }
  0x5f   : > { %1283 = vmatprep.mubr.bf16.mxu0 %v670_v27  ;;  %1467 = vmatmul.mubr.bf16.gmra.mxu1 %v666_v28  ;;  %v690_v27 = vpack.c.bf16 %v544_v20, %v543_v17  ;;  %v686_v28 = vpack.c.bf16 %v574_v19, %v573_v18  ;;  %v692_v31 = vpack.c.bf16 %v608_v24, %v607_v23  ;;  %v554_v17 = vld [vmem:[%s6219_s18 + $0xe1] sm:$0xff]  ;;  %v583_v18 = vld [vmem:[%s6219_s18 + $0xca] sm:$0xff]  ;;  %v584_v19 = vld [vmem:[%s6219_s18 + $0xd2] sm:$0xff] }
  0x60   : > { %1476 = vmatprep.mubr.bf16.mxu1 %v672_v29  ;;  %1622 = vmatpush1.bf16.msra.mxu0 %v5620_v51  ;;  %v511_v29 = vld [vmem:[%s6219_s18 + $0x78] sm:$0xff]  ;;  %v700_v51 = vpack.c.bf16 %v548_v47, %v547_v46  ;;  %v715_v23 = vpack.c.bf16 %v554_v17, %v553_v16  ;;  %v711_v24 = vpack.c.bf16 %v584_v19, %v583_v18  ;;  %v627_v16 = vld [vmem:[%s6219_s18 + $0x4] sm:$0xff]  ;;  %v628_v17 = vld [vmem:[%s6219_s18 + $0xc] sm:$0xff]  ;;  %v8164_v18 = vmov 0  }
  0x61   : > { %1623 = vmatprep.subr.bf16.mxu0 %v5625_v54  ;;  %v516_v54 = vld [vmem:[%s6219_s18 + $0xa8] sm:$0xff]  ;;  %v617_v20 = vld [vmem:[%s6219_s18 + $0xdb] sm:$0xff]  ;;  %v663_v19 = vpack.c.bf16 %v628_v17, %v627_v16 }
  0x64   : > { %1624 = vmatpush1.bf16.msra.mxu0 %v5623_v60  ;;  %v613_v60 = vld [vmem:[%s6219_s18 + $0xb3] sm:$0xff] }
  0x65   : > { %1625 = vmatprep.subr.bf16.mxu0 %v5628_v62  ;;  %v699_v62 = vpack.c.bf16 %v516_v54, %v515_v53  ;;  %v560_v53 = vld [vmem:[%s6219_s18 + $0x121] sm:$0xff] }
  0x66   : > { %1284 = vmatmul.mubr.bf16.gmra.mxu0 %v669_v38  ;;  %v689_v38 = vpack.c.bf16 %v512_v30, %v511_v29  ;;  %v556_v29 = vld [vmem:[%s6219_s18 + $0xf9] sm:$0xff]  ;;  %v589_v54 = vld [vmem:[%s6219_s18 + $0x102] sm:$0xff] }
  0x67   : > { %1293 = vmatprep.mubr.bf16.mxu0 %v675_v41  ;;  %1477 = vmatmul.mubr.bf16.gmra.mxu1 %v671_v43  ;;  %v513_v41 = vld [vmem:[%s6219_s18 + $0x88] sm:$0xff]  ;;  %v697_v43 = vpack.c.bf16 %v610_v37, %v609_v36  ;;  %v585_v30 = vld [vmem:[%s6219_s18 + $0xda] sm:$0xff]  ;;  %v523_v37 = vld [vmem:[%s6219_s18 + $0xf0] sm:$0xff] }
  0x68   : > { %1486 = vmatprep.mubr.bf16.mxu1 %v677_v45  ;;  %1626 = vmatpush1.bf16.msra.mxu0 %v5626_v3  ;;  %v578_v45 = vld [vmem:[%s6219_s18 + $0x92] sm:$0xff]  ;;  %v694_v50 = vpack.c.bf16 %v514_v42, %v513_v41  ;;  %v558_v41 = vld [vmem:[%s6219_s18 + $0x109] sm:$0xff] }
  0x69   : > { %1627 = vmatprep.subr.bf16.mxu0 %v5631_v6  ;;  %v696_v52 = vpack.c.bf16 %v578_v45, %v577_v44  ;;  %v581_v6 = vld [vmem:[%s6219_s18 + $0xb2] sm:$0xff]  ;;  %v621_v44 = vld [vmem:[%s6219_s18 + $0x103] sm:$0xff] }
  0x6a   : > { %v587_v42 = vld [vmem:[%s6219_s18 + $0xf2] sm:$0xff] }
  0x6b   : > { %v622_v45 = vld [vmem:[%s6219_s18 + $0x10b] sm:$0xff] }
  0x6c   : > { %1628 = vmatpush1.bf16.msra.mxu0 %v5629_v12 }
  0x6d   : > { %1629 = vmatprep.subr.bf16.mxu0 %v5634_v14  ;;  %v520_v14 = vld [vmem:[%s6219_s18 + $0xd0] sm:$0xff] }
  0x6e   : > { %1294 = vmatmul.mubr.bf16.gmra.mxu0 %v674_v55  ;;  %v702_v55 = vpack.c.bf16 %v612_v49, %v611_v48  ;;  %v525_v49 = vld [vmem:[%s6219_s18 + $0x100] sm:$0xff] }
  0x6f   : > { %1303 = vmatprep.mubr.bf16.mxu0 %v680_v58  ;;  %1487 = vmatmul.mubr.bf16.gmra.mxu1 %v676_v59  ;;  %v580_v58 = vld [vmem:[%s6219_s18 + $0xaa] sm:$0xff]  ;;  %v550_v59 = vld [vmem:[%s6219_s18 + $0xb9] sm:$0xff] }
  0x70   : > { %1496 = vmatprep.mubr.bf16.mxu1 %v682_v61  ;;  %1630 = vmatpush1.bf16.msra.mxu0 %v5632_v21  ;;  %v614_v61 = vld [vmem:[%s6219_s18 + $0xbb] sm:$0xff]  ;;  %v705_v63 = vpack.c.bf16 %v550_v59, %v549_v56  ;;  %v701_v0 = vpack.c.bf16 %v580_v58, %v579_v57  ;;  %v618_v21 = vld [vmem:[%s6219_s18 + $0xe3] sm:$0xff] }
  0x71   : > { %1631 = vmatprep.subr.bf16.mxu0 %v5637_v22  ;;  %v707_v3 = vpack.c.bf16 %v614_v61, %v613_v60  ;;  %v623_v56 = vld [vmem:[%s6219_s18 + $0x11b] sm:$0xff]  ;;  %v624_v57 = vld [vmem:[%s6219_s18 + $0x123] sm:$0xff] }
  0x72   : > { %v527_v61 = vld [vmem:[%s6219_s18 + $0x118] sm:$0xff] }
  0x74   : > { %1632 = vmatpush1.bf16.msra.mxu0 %v5635_v26  ;;  %v522_v26 = vld [vmem:[%s6219_s18 + $0xe0] sm:$0xff] }
  0x76   : > { %1304 = vmatmul.mubr.bf16.gmra.mxu0 %v679_v7  ;;  %v582_v7 = vld [vmem:[%s6219_s18 + $0xba] sm:$0xff] }
  0x77   : > { %1313 = vmatprep.mubr.bf16.mxu0 %v685_v10  ;;  %1497 = vmatmul.mubr.bf16.gmra.mxu1 %v681_v11  ;;  %v704_v10 = vpack.c.bf16 %v518_v2, %v517_v1  ;;  %v710_v11 = vpack.c.bf16 %v552_v5, %v551_v4  ;;  %v706_v12 = vpack.c.bf16 %v582_v7, %v581_v6  ;;  %v562_v1 = vld [vmem:[%s6219_s18 + $0x131] sm:$0xff]  ;;  %v591_v2 = vld [vmem:[%s6219_s18 + $0x11a] sm:$0xff] }
  0x78   : > { %1506 = vmatprep.mubr.bf16.mxu1 %v687_v13  ;;  %v519_v13 = vld [vmem:[%s6219_s18 + $0xc8] sm:$0xff]  ;;  %v626_v5 = vld [vmem:[%s6219_s18 + $0x133] sm:$0xff] }
  0x79   : > { %v709_v22 = vpack.c.bf16 %v520_v14, %v519_v13  ;;  %v625_v4 = vld [vmem:[%s6219_s18 + $0x12b] sm:$0xff] }
  0x7a   : > { %v594_v13 = vld [vmem:[%s6219_s18 + $0x132] sm:$0xff] }
  0x7e   : > { %1314 = vmatmul.mubr.bf16.gmra.mxu0 %v684_v25  ;;  %v521_v25 = vld [vmem:[%s6219_s18 + $0xd8] sm:$0xff] }
  0x7f   : > { %1323 = vmatprep.mubr.bf16.mxu0 %v690_v27  ;;  %1507 = vmatmul.mubr.bf16.gmra.mxu1 %v686_v28  ;;  %v717_v27 = vpack.c.bf16 %v618_v21, %v617_v20  ;;  %v555_v28 = vld [vmem:[%s6219_s18 + $0xf1] sm:$0xff]  ;;  %v714_v34 = vpack.c.bf16 %v522_v26, %v521_v25  ;;  %v630_v21 = vld [vmem:[%s6219_s18 + $0x1c] sm:$0xff] }
  0x80   : > { %1516 = vmatprep.mubr.bf16.mxu1 %v692_v31  ;;  %v586_v31 = vld [vmem:[%s6219_s18 + $0xe2] sm:$0xff]  ;;  %v720_v35 = vpack.c.bf16 %v556_v29, %v555_v28  ;;  %v629_v20 = vld [vmem:[%s6219_s18 + $0x14] sm:$0xff] }
  0x81   : > { %v716_v36 = vpack.c.bf16 %v586_v31, %v585_v30  ;;  %v633_v26 = vld [vmem:[%s6219_s18 + $0x3c] sm:$0xff]  ;;  %v635_v29 = vld [vmem:[%s6219_s18 + $0x54] sm:$0xff] }
  0x82   : > { %v636_v30 = vld [vmem:[%s6219_s18 + $0x5c] sm:$0xff] }
  0x83   : > { %v683_v31 = vpack.c.bf16 %v636_v30, %v635_v29 }
  0x86   : > { %1324 = vmatmul.mubr.bf16.gmra.mxu0 %v689_v38  ;;  %v524_v38 = vld [vmem:[%s6219_s18 + $0xf8] sm:$0xff] }
  0x87   : > { %1333 = vmatprep.mubr.bf16.mxu0 %v695_v39  ;;  %1517 = vmatmul.mubr.bf16.gmra.mxu1 %v691_v40  ;;  %v722_v39 = vpack.c.bf16 %v620_v33, %v619_v32  ;;  %v557_v40 = vld [vmem:[%s6219_s18 + $0x101] sm:$0xff]  ;;  %v719_v46 = vpack.c.bf16 %v524_v38, %v523_v37  ;;  %v638_v33 = vld [vmem:[%s6219_s18 + $0x6c] sm:$0xff] }
  0x88   : > { %1526 = vmatprep.mubr.bf16.mxu1 %v697_v43  ;;  %v588_v43 = vld [vmem:[%s6219_s18 + $0xfa] sm:$0xff]  ;;  %v725_v47 = vpack.c.bf16 %v558_v41, %v557_v40  ;;  %v637_v32 = vld [vmem:[%s6219_s18 + $0x64] sm:$0xff]  ;;  %v641_v38 = vld [vmem:[%s6219_s18 + $0x8c] sm:$0xff]  ;;  %v821_v40 = vlaneseq }
  0x89   : > { %v721_v48 = vpack.c.bf16 %v588_v43, %v587_v42 }
  0x8a   : > { %v6484_v42 = vshrl.u32 %v821_v40, 7 }
  0x8c   : > { %8179 = vst [vmem:[#allocation10_spill] sm:$0xff] %v6484_v42  ;;  %v8163_v43 = vsub.s32 0, %v6484_v42 }
  0x8e   : > { %1334 = vmatmul.mubr.bf16.gmra.mxu0 %v694_v50  ;;  %v526_v50 = vld [vmem:[%s6219_s18 + $0x108] sm:$0xff] }
  0x8f   : > { %1343 = vmatprep.mubr.bf16.mxu0 %v700_v51  ;;  %1527 = vmatmul.mubr.bf16.gmra.mxu1 %v696_v52  ;;  %v727_v51 = vpack.c.bf16 %v622_v45, %v621_v44  ;;  %v559_v52 = vld [vmem:[%s6219_s18 + $0x119] sm:$0xff]  ;;  %v724_v58 = vpack.c.bf16 %v526_v50, %v525_v49  ;;  %v643_v44 = vld [vmem:[%s6219_s18 + $0xa4] sm:$0xff]  ;;  %v644_v45 = vld [vmem:[%s6219_s18 + $0xac] sm:$0xff] }
  0x90   : > { %1536 = vmatprep.mubr.bf16.mxu1 %v702_v55  ;;  %v590_v55 = vld [vmem:[%s6219_s18 + $0x10a] sm:$0xff]  ;;  %v730_v59 = vpack.c.bf16 %v560_v53, %v559_v52  ;;  %v645_v53 = vld [vmem:[%s6219_s18 + $0xb4] sm:$0xff] }
  0x91   : > { %v726_v60 = vpack.c.bf16 %v590_v55, %v589_v54  ;;  %v646_v54 = vld [vmem:[%s6219_s18 + $0xbc] sm:$0xff] }
  0x96   : > { %1344 = vmatmul.mubr.bf16.gmra.mxu0 %v699_v62  ;;  %v528_v62 = vld [vmem:[%s6219_s18 + $0x120] sm:$0xff] }
  0x97   : > { %1353 = vmatprep.mubr.bf16.mxu0 %v705_v63  ;;  %1537 = vmatmul.mubr.bf16.gmra.mxu1 %v701_v0  ;;  %v732_v63 = vpack.c.bf16 %v624_v57, %v623_v56  ;;  %v561_v0 = vld [vmem:[%s6219_s18 + $0x129] sm:$0xff]  ;;  %v729_v6 = vpack.c.bf16 %v528_v62, %v527_v61  ;;  %v708_v61 = vpack.c.bf16 %v646_v54, %v645_v53 }
  0x98   : > { %1546 = vmatprep.mubr.bf16.mxu1 %v707_v3  ;;  %v592_v3 = vld [vmem:[%s6219_s18 + $0x122] sm:$0xff]  ;;  %v735_v7 = vpack.c.bf16 %v562_v1, %v561_v0 }
  0x99   : > { %v731_v8 = vpack.c.bf16 %v592_v3, %v591_v2 }
  0x9e   : > { %1354 = vmatmul.mubr.bf16.gmra.mxu0 %v704_v10  ;;  %v530_v10 = vld [vmem:[%s6219_s18 + $0x130] sm:$0xff] }
  0x9f   : > { %1363 = vmatprep.mubr.bf16.mxu0 %v710_v11  ;;  %1547 = vmatmul.mubr.bf16.gmra.mxu1 %v706_v12  ;;  %v737_v11 = vpack.c.bf16 %v626_v5, %v625_v4  ;;  %v593_v12 = vld [vmem:[%s6219_s18 + $0x12a] sm:$0xff]  ;;  %v734_v14 = vpack.c.bf16 %v530_v10, %v529_v9 }
  0xa0   : > { %1556 = vmatprep.mubr.bf16.mxu1 %v712_v15  ;;  %v736_v15 = vpack.c.bf16 %v594_v13, %v593_v12 }
  0xa6   : > { %1364 = vmatmul.mubr.bf16.gmra.mxu0 %v709_v22  ;;  %v668_v22 = vpack.c.bf16 %v630_v21, %v629_v20 }
  0xa7   : > { %1373 = vmatprep.mubr.bf16.mxu0 %v715_v23  ;;  %1557 = vmatmul.mubr.bf16.gmra.mxu1 %v711_v24  ;;  %v631_v23 = vld [vmem:[%s6219_s18 + $0x2c] sm:$0xff]  ;;  %v632_v24 = vld [vmem:[%s6219_s18 + $0x34] sm:$0xff] }
  0xa8   : > { %1566 = vmatprep.mubr.bf16.mxu1 %v717_v27  ;;  %v673_v25 = vpack.c.bf16 %v632_v24, %v631_v23  ;;  %v634_v27 = vld [vmem:[%s6219_s18 + $0x44] sm:$0xff]  ;;  %v649_v24 = vld [vmem:[%s6219_s18 + $0xdc] sm:$0xff] }
  0xa9   : > { %v678_v28 = vpack.c.bf16 %v634_v27, %v633_v26 }
  0xae   : > { %1374 = vmatmul.mubr.bf16.gmra.mxu0 %v714_v34  ;;  %v688_v34 = vpack.c.bf16 %v638_v33, %v637_v32 }
  0xaf   : > { %1383 = vmatprep.mubr.bf16.mxu0 %v720_v35  ;;  %1567 = vmatmul.mubr.bf16.gmra.mxu1 %v716_v36  ;;  %v639_v35 = vld [vmem:[%s6219_s18 + $0x7c] sm:$0xff]  ;;  %v640_v36 = vld [vmem:[%s6219_s18 + $0x84] sm:$0xff] }
  0xb0   : > { %1576 = vmatprep.mubr.bf16.mxu1 %v722_v39  ;;  %v693_v37 = vpack.c.bf16 %v640_v36, %v639_v35  ;;  %v642_v39 = vld [vmem:[%s6219_s18 + $0x94] sm:$0xff] }
  0xb1   : > { %v698_v41 = vpack.c.bf16 %v642_v39, %v641_v38 }
  0xb6   : > { %1384 = vmatmul.mubr.bf16.gmra.mxu0 %v719_v46  ;;  %v819_v46 = vld [vmem:[%s8143_s2] sm:$0x3] }
  0xb7   : > { %1393 = vmatprep.mubr.bf16.mxu0 %v725_v47  ;;  %1577 = vmatmul.mubr.bf16.gmra.mxu1 %v721_v48  ;;  %v8162_v47 = vsub.s32 1, %v6484_v42  ;;  %v703_v48 = vpack.c.bf16 %v644_v45, %v643_v44  ;;  %v6496_v49 = vrot.slane %v819_v46, %v8163_v43  ;;  %v652_v44 = vld [vmem:[%s6219_s18 + $0xfc] sm:$0xff] }
  0xb8   : > { %1586 = vmatprep.mubr.bf16.mxu1 %v727_v51 }
  0xb9   : > { %8180 = vst [vmem:[#allocation11_spill] sm:$0xff] %v6496_v49  ;;  %v6500_v50 = vrot.slane %v819_v46, %v8162_v47 }
  0xbe   : > { %1394 = vmatmul.mubr.bf16.gmra.mxu0 %v724_v58 }
  0xbf   : > { %1403 = vmatprep.mubr.bf16.mxu0 %v730_v59  ;;  %1587 = vmatmul.mubr.bf16.gmra.mxu1 %v726_v60 }
  0xc0   : > { %1596 = vmatprep.mubr.bf16.mxu1 %v732_v63 }
  0xc6   : > { %1404 = vmatmul.mubr.bf16.gmra.mxu0 %v729_v6  ;;  %v647_v6 = vld [vmem:[%s6219_s18 + $0xcc] sm:$0xff] }
  0xc7   : > { %1413 = vmatprep.mubr.bf16.mxu0 %v735_v7  ;;  %1597 = vmatmul.mubr.bf16.gmra.mxu1 %v731_v8  ;;  %v648_v7 = vld [vmem:[%s6219_s18 + $0xd4] sm:$0xff] }
  0xc8   : > { %1606 = vmatprep.mubr.bf16.mxu1 %v737_v11 }
  0xce   : > { %1414 = vmatmul.mubr.bf16.gmra.mxu0 %v734_v14  ;;  %v713_v14 = vpack.c.bf16 %v648_v7, %v647_v6 }
  0xcf   : > { %1649 = vmatprep.mubr.bf16.mxu0 %v8164_v18  ;;  %1607 = vmatmul.mubr.bf16.gmra.mxu1 %v736_v15 }
  0xd6   : > { %1650 = vmatmul.mubr.bf16.vlgmr.msra.gmra.mxu0 %v663_v19 }
  0xd7   : > { %1659 = vmatprep.mubr.bf16.mxu0 %v8164_v18 }
  0xde   : > { %1660 = vmatmul.mubr.bf16.gmra.mxu0 %v668_v22 }
  0xdf   : > { %1669 = vmatprep.mubr.bf16.mxu0 %v8164_v18 }
  0xe6   : > { %1670 = vmatmul.mubr.bf16.gmra.mxu0 %v673_v25  ;;  %v650_v25 = vld [vmem:[%s6219_s18 + $0xe4] sm:$0xff] }
  0xe7   : > { %1679 = vmatprep.mubr.bf16.mxu0 %v8164_v18  ;;  %v718_v32 = vpack.c.bf16 %v650_v25, %v649_v24 }
  0xee   : > { %1680 = vmatmul.mubr.bf16.gmra.mxu0 %v678_v28 }
  0xef   : > { %1689 = vmatprep.mubr.bf16.mxu0 %v8164_v18 }
  0xf6   : > { %1690 = vmatmul.mubr.bf16.gmra.mxu0 %v683_v31 }
  0xf7   : > { %1699 = vmatprep.mubr.bf16.mxu0 %v8164_v18 }
  0xfe   : > { %1700 = vmatmul.mubr.bf16.gmra.mxu0 %v688_v34 }
  0xff   : > { %1709 = vmatprep.mubr.bf16.mxu0 %v8164_v18 }
 0x106   : > { %1710 = vmatmul.mubr.bf16.gmra.mxu0 %v693_v37 }
 0x107   : > { %1719 = vmatprep.mubr.bf16.mxu0 %v8164_v18 }
 0x10e   : > { %1720 = vmatmul.mubr.bf16.gmra.mxu0 %v698_v41  ;;  %v651_v41 = vld [vmem:[%s6219_s18 + $0xf4] sm:$0xff] }
 0x10f   : > { %1729 = vmatprep.mubr.bf16.mxu0 %v8164_v18  ;;  %v723_v54 = vpack.c.bf16 %v652_v44, %v651_v41 }
 0x116   : > { %v1265_v51 = vpop.f32.mrf.mxu0  ;;  %1730 = vmatmul.mubr.bf16.gmra.mxu0 %v703_v48 }
 0x117   : > { %v1266_v52 = vadd.f32 %v1265_v51, %v6496_v49  ;;  %1739 = vmatprep.mubr.bf16.mxu0 %v8164_v18  ;;  %v1458_v56 = vpop.f32.mrf.mxu1 }
 0x118   : > { %v1267_v55 = vpop.f32.mrf.mxu0 }
 0x119   : > { %v1268_v57 = vadd.f32 %v1267_v55, %v6500_v50  ;;  %v6507_v58 = vadd.f32 %v1458_v56, %v1266_v52  ;;  %v1460_v60 = vpop.f32.mrf.mxu1 }
 0x11a   : > { %v1269_v59 = vpop.f32.mrf.mxu0 }
 0x11b   : > { %v1270_v62 = vadd.f32 %v1269_v59, %v6496_v49  ;;  %v6510_v63 = vadd.f32 %v1460_v60, %v1268_v57  ;;  %v1462_v1 = vpop.f32.mrf.mxu1 }
 0x11c   : > { %v6512_v0 = vpop.f32.mrf.mxu0 }
 0x11d   : > { %v6514_v2 = vadd.f32 %v1462_v1, %v1270_v62  ;;  %v6516_v4 = vpop.f32.mrf.mxu1 }
 0x11e   : > { %v1275_v3 = vpop.f32.mrf.mxu0  ;;  %1740 = vmatmul.mubr.bf16.gmra.mxu0 %v708_v61 }
 0x11f   : > { %v1276_v5 = vadd.f32 %v1275_v3, %v6496_v49  ;;  %1749 = vmatprep.mubr.bf16.mxu0 %v8164_v18  ;;  %v1468_v9 = vpop.f32.mrf.mxu1  ;;  %v653_v3 = vld [vmem:[%s6219_s18 + $0x104] sm:$0xff] }
 0x120   : > { %v1277_v8 = vpop.f32.mrf.mxu0 }
 0x121   : > { %v1278_v10 = vadd.f32 %v1277_v8, %v6500_v50  ;;  %v6523_v11 = vadd.f32 %v1468_v9, %v1276_v5  ;;  %v1470_v13 = vpop.f32.mrf.mxu1  ;;  %v654_v5 = vld [vmem:[%s6219_s18 + $0x10c] sm:$0xff] }
 0x122   : > { %v1279_v12 = vpop.f32.mrf.mxu0 }
 0x123   : > { %v1280_v15 = vadd.f32 %v1279_v12, %v6496_v49  ;;  %v6526_v16 = vadd.f32 %v1470_v13, %v1278_v10  ;;  %v1472_v19 = vpop.f32.mrf.mxu1  ;;  %v728_v13 = vpack.c.bf16 %v654_v5, %v653_v3 }
 0x124   : > { %v6528_v17 = vpop.f32.mrf.mxu0 }
 0x125   : > { %v6530_v20 = vadd.f32 %v1472_v19, %v1280_v15  ;;  %v6532_v22 = vpop.f32.mrf.mxu1 }
 0x126   : > { %v1285_v21 = vpop.f32.mrf.mxu0  ;;  %1750 = vmatmul.mubr.bf16.gmra.mxu0 %v713_v14 }
 0x127   : > { %v1286_v23 = vadd.f32 %v1285_v21, %v6496_v49  ;;  %1759 = vmatprep.mubr.bf16.mxu0 %v8164_v18  ;;  %v1478_v27 = vpop.f32.mrf.mxu1 }
 0x128   : > { %v1287_v26 = vpop.f32.mrf.mxu0 }
 0x129   : > { %v1288_v28 = vadd.f32 %v1287_v26, %v6500_v50  ;;  %v6539_v29 = vadd.f32 %v1478_v27, %v1286_v23  ;;  %v1480_v31 = vpop.f32.mrf.mxu1  ;;  %v655_v27 = vld [vmem:[%s6219_s18 + $0x11c] sm:$0xff] }
 0x12a   : > { %v1289_v30 = vpop.f32.mrf.mxu0 }
 0x12b   : > { %v1290_v33 = vadd.f32 %v1289_v30, %v6496_v49  ;;  %v6542_v34 = vadd.f32 %v1480_v31, %v1288_v28  ;;  %v1482_v36 = vpop.f32.mrf.mxu1  ;;  %v656_v28 = vld [vmem:[%s6219_s18 + $0x124] sm:$0xff] }
 0x12c   : > { %v6544_v35 = vpop.f32.mrf.mxu0 }
 0x12d   : > { %v6546_v37 = vadd.f32 %v1482_v36, %v1290_v33  ;;  %v6548_v39 = vpop.f32.mrf.mxu1 }
 0x12e   : > { %v1295_v38 = vpop.f32.mrf.mxu0  ;;  %1760 = vmatmul.mubr.bf16.gmra.mxu0 %v718_v32 }
 0x12f   : > { %v1296_v40 = vadd.f32 %v1295_v38, %v6496_v49  ;;  %1769 = vmatprep.mubr.bf16.mxu0 %v8164_v18  ;;  %v1488_v46 = vpop.f32.mrf.mxu1 }
 0x130   : > { %v1297_v45 = vpop.f32.mrf.mxu0 }
 0x131   : > { %v1298_v48 = vadd.f32 %v1297_v45, %v6500_v50  ;;  %v6555_v51 = vadd.f32 %v1488_v46, %v1296_v40  ;;  %v1490_v53 = vpop.f32.mrf.mxu1  ;;  %v733_v40 = vpack.c.bf16 %v656_v28, %v655_v27 }
 0x132   : > { %v1299_v52 = vpop.f32.mrf.mxu0 }
 0x133   : > { %v1300_v55 = vadd.f32 %v1299_v52, %v6496_v49  ;;  %v6558_v56 = vadd.f32 %v1490_v53, %v1298_v48  ;;  %v1492_v59 = vpop.f32.mrf.mxu1 }
 0x134   : > { %v6560_v57 = vpop.f32.mrf.mxu0 }
 0x135   : > { %v6562_v60 = vadd.f32 %v1492_v59, %v1300_v55  ;;  %v6564_v62 = vpop.f32.mrf.mxu1  ;;  %v657_v55 = vld [vmem:[%s6219_s18 + $0x12c] sm:$0xff]  ;;  %v658_v59 = vld [vmem:[%s6219_s18 + $0x134] sm:$0xff]  ;;  %s4598_s18 = scalar_lea.sflag [#allocation3], %s488_s16 }
 0x136   : > { %v1305_v61 = vpop.f32.mrf.mxu0  ;;  %1770 = vmatmul.mubr.bf16.gmra.mxu0 %v723_v54 }
 0x137   : > { %v1306_v1 = vadd.f32 %v1305_v61, %v6496_v49  ;;  %1779 = vmatprep.mubr.bf16.mxu0 %v8164_v18  ;;  %v1498_v7 = vpop.f32.mrf.mxu1 }
 0x138   : > { %v1307_v6 = vpop.f32.mrf.mxu0 }
 0x139   : > { %v1308_v8 = vadd.f32 %v1307_v6, %v6500_v50  ;;  %v6571_v9 = vadd.f32 %v1498_v7, %v1306_v1  ;;  %v1500_v12 = vpop.f32.mrf.mxu1 }
 0x13a   : > { %v1309_v10 = vpop.f32.mrf.mxu0 }
 0x13b   : > { %v1310_v14 = vadd.f32 %v1309_v10, %v6496_v49  ;;  %v6574_v15 = vadd.f32 %v1500_v12, %v1308_v8  ;;  %v1502_v21 = vpop.f32.mrf.mxu1  ;;  %v738_v8 = vpack.c.bf16 %v658_v59, %v657_v55 }
 0x13c   : > { %v6576_v19 = vpop.f32.mrf.mxu0 }
 0x13d   : > { %v6578_v23 = vadd.f32 %v1502_v21, %v1310_v14  ;;  %v6580_v25 = vpop.f32.mrf.mxu1 }
 0x13e   : > { %v1315_v24 = vpop.f32.mrf.mxu0  ;;  %1780 = vmatmul.mubr.bf16.gmra.mxu0 %v728_v13 }
 0x13f   : > { %v1316_v26 = vadd.f32 %v1315_v24, %v6496_v49  ;;  %1789 = vmatprep.mubr.bf16.mxu0 %v8164_v18  ;;  %v1508_v31 = vpop.f32.mrf.mxu1 }
 0x140   : > { %v1317_v30 = vpop.f32.mrf.mxu0 }
 0x141   : > { %v1318_v32 = vadd.f32 %v1317_v30, %v6500_v50  ;;  %v6587_v33 = vadd.f32 %v1508_v31, %v1316_v26  ;;  %v1510_v38 = vpop.f32.mrf.mxu1 }
 0x142   : > { %v1319_v36 = vpop.f32.mrf.mxu0 }
 0x143   : > { %v1320_v41 = vadd.f32 %v1319_v36, %v6496_v49  ;;  %v6590_v44 = vadd.f32 %v1510_v38, %v1318_v32  ;;  %v1512_v46 = vpop.f32.mrf.mxu1 }
 0x144   : > { %v6592_v45 = vpop.f32.mrf.mxu0 }
 0x145   : > { %v6594_v48 = vadd.f32 %v1512_v46, %v1320_v41  ;;  %v6596_v53 = vpop.f32.mrf.mxu1 }
 0x146   : > { %v1325_v52 = vpop.f32.mrf.mxu0  ;;  %1790 = vmatmul.mubr.bf16.gmra.mxu0 %v733_v40 }
 0x147   : > { %v1326_v54 = vadd.f32 %v1325_v52, %v6496_v49  ;;  %1799 = vmatprep.mubr.bf16.mxu0 %v8164_v18  ;;  %v1518_v1 = vpop.f32.mrf.mxu1 }
 0x148   : > { %v1327_v61 = vpop.f32.mrf.mxu0 }
 0x149   : > { %v1328_v3 = vadd.f32 %v1327_v61, %v6500_v50  ;;  %v6603_v5 = vadd.f32 %v1518_v1, %v1326_v54  ;;  %v1520_v7 = vpop.f32.mrf.mxu1 }
 0x14a   : > { %v1329_v6 = vpop.f32.mrf.mxu0 }
 0x14b   : > { %v1330_v10 = vadd.f32 %v1329_v6, %v6496_v49  ;;  %v6606_v12 = vadd.f32 %v1520_v7, %v1328_v3  ;;  %v1522_v14 = vpop.f32.mrf.mxu1 }
 0x14c   : > { %v6608_v13 = vpop.f32.mrf.mxu0 }
 0x14d   : > { %v6610_v21 = vadd.f32 %v1522_v14, %v1330_v10  ;;  %v6612_v26 = vpop.f32.mrf.mxu1 }
 0x14e   : > { %v1335_v24 = vpop.f32.mrf.mxu0  ;;  %1800 = vmatmul.mubr.bf16.gmra.mxu0 %v738_v8 }
 0x14f   : > { %v1336_v27 = vadd.f32 %v1335_v24, %v6496_v49  ;;  %v1528_v30 = vpop.f32.mrf.mxu1 }
 0x150   : > { %v1337_v28 = vpop.f32.mrf.mxu0 }
 0x151   : > { %v1338_v31 = vadd.f32 %v1337_v28, %v6500_v50  ;;  %v6616_v32 = vadd.f32 %v1528_v30, %v1336_v27  ;;  %v1530_v38 = vpop.f32.mrf.mxu1 }
 0x152   : > { %v1339_v36 = vpop.f32.mrf.mxu0 }
 0x153   : > { %v1340_v40 = vadd.f32 %v1339_v36, %v6496_v49  ;;  %v6619_v41 = vadd.f32 %v1530_v38, %v1338_v31  ;;  %v1532_v52 = vpop.f32.mrf.mxu1 }
 0x154   : > { %v6621_v46 = vpop.f32.mrf.mxu0 }
 0x155   : > { %v6623_v54 = vadd.f32 %v1532_v52, %v1340_v40  ;;  %v6625_v59 = vpop.f32.mrf.mxu1 }
 0x156   : > { %v1345_v55 = vpop.f32.mrf.mxu0 }
 0x157   : > { %v1346_v61 = vadd.f32 %v1345_v55, %v6496_v49  ;;  %v1538_v3 = vpop.f32.mrf.mxu1 }
 0x158   : > { %v1347_v1 = vpop.f32.mrf.mxu0 }
 0x159   : > { %v1348_v6 = vadd.f32 %v1347_v1, %v6500_v50  ;;  %v6629_v7 = vadd.f32 %v1538_v3, %v1346_v61  ;;  %v1540_v10 = vpop.f32.mrf.mxu1 }
 0x15a   : > { %v1349_v8 = vpop.f32.mrf.mxu0 }
 0x15b   : > { %v1350_v14 = vadd.f32 %v1349_v8, %v6496_v49  ;;  %v6632_v24 = vadd.f32 %v1540_v10, %v1348_v6  ;;  %v1542_v28 = vpop.f32.mrf.mxu1 }
 0x15c   : > { %v6634_v27 = vpop.f32.mrf.mxu0 }
 0x15d   : > { %v6636_v30 = vadd.f32 %v1542_v28, %v1350_v14  ;;  %v6638_v36 = vpop.f32.mrf.mxu1 }
 0x15e   : > { %v1355_v31 = vpop.f32.mrf.mxu0 }
 0x15f   : > { %v1356_v38 = vadd.f32 %v1355_v31, %v6496_v49  ;;  %v1548_v52 = vpop.f32.mrf.mxu1 }
 0x160   : > { %v1357_v40 = vpop.f32.mrf.mxu0 }
 0x161   : > { %v1358_v55 = vadd.f32 %v1357_v40, %v6500_v50  ;;  %v6642_v61 = vadd.f32 %v1548_v52, %v1356_v38  ;;  %v1550_v3 = vpop.f32.mrf.mxu1 }
 0x162   : > { %v1359_v1 = vpop.f32.mrf.mxu0 }
 0x163   : > { %v1360_v6 = vadd.f32 %v1359_v1, %v6496_v49  ;;  %v6645_v8 = vadd.f32 %v1550_v3, %v1358_v55  ;;  %v1552_v14 = vpop.f32.mrf.mxu1 }
 0x164   : > { %v6647_v10 = vpop.f32.mrf.mxu0 }
 0x165   : > { %8181 = vst [vmem:[#allocation12_spill] sm:$0xff] %v6645_v8  ;;  %v6649_v28 = vadd.f32 %v1552_v14, %v1360_v6  ;;  %v6651_v43 = vpop.f32.mrf.mxu1 }
 0x166   : > { %v1365_v47 = vpop.f32.mrf.mxu0  ;;  %8183 = vst [vmem:[#allocation14_spill] sm:$0xff] %v6651_v43 }
 0x167   : > { %8182 = vst [vmem:[#allocation13_spill] sm:$0xff] %v6649_v28  ;;  %v1366_v31 = vadd.f32 %v1365_v47, %v6496_v49  ;;  %v1558_v38 = vpop.f32.mrf.mxu1 }
 0x168   : > { %v6654_v18 = vpop.f32.mrf.mxu0 }
 0x169   : > { %8184 = vst [vmem:[#allocation15_spill] sm:$0xff] %v6654_v18  ;;  %v6656_v40 = vadd.f32 %v1558_v38, %v1366_v31 }
 0x16a   : > { %v6658_v52 = vpop.f32.mrf.mxu0 }
 0x16b   : > { %8185 = vst [vmem:[#allocation16_spill] sm:$0xff] %v6656_v40  ;;  %8186 = vst [vmem:[#allocation17_spill] sm:$0xff] %v6658_v52 }
 0x16c   : > { %v6660_v1 = vpop.f32.mrf.mxu0 }
 0x16d   : > { %8187 = vst [vmem:[#allocation18_spill] sm:$0xff] %v6660_v1 }
 0x16e   : > { %v6662_v55 = vpop.f32.mrf.mxu0 }
 0x16f   : > { %8188 = vst [vmem:[#allocation19_spill] sm:$0xff] %v6662_v55 }
 0x170   : > { %v6664_v3 = vpop.f32.mrf.mxu0 }
 0x171   : > { %8189 = vst [vmem:[#allocation20_spill] sm:$0xff] %v6664_v3 }
 0x172   : > { %v6666_v6 = vpop.f32.mrf.mxu0 }
 0x173   : > { %8190 = vst [vmem:[#allocation21_spill] sm:$0xff] %v6666_v6 }
 0x174   : > { %v6668_v14 = vpop.f32.mrf.mxu0 }
 0x175   : > { %8191 = vst [vmem:[#allocation22_spill] sm:$0xff] %v6668_v14 }
 0x176   : > { %v6670_v42 = vpop.f32.mrf.mxu0 }
 0x177   : > { %8192 = vst [vmem:[#allocation23_spill] sm:$0xff] %v6670_v42 }
 0x178   : > { %v6672_v47 = vpop.f32.mrf.mxu0 }
 0x179   : > { %8193 = vst [vmem:[#allocation24_spill] sm:$0xff] %v6672_v47 }
 0x17a   : > { %v6674_v49 = vpop.f32.mrf.mxu0 }
 0x17b   : > { %8194 = vst [vmem:[#allocation25_spill] sm:$0xff] %v6674_v49 }
 0x17c   : > { %v6676_v31 = vpop.f32.mrf.mxu0 }
 0x17d   : > { %8195 = vst [vmem:[#allocation26_spill] sm:$0xff] %v6676_v31 }
 0x17e   : > { %v6678_v38 = vpop.f32.mrf.mxu0 }
 0x17f   : > { %8196 = vst [vmem:[#allocation27_spill] sm:$0xff] %v6678_v38 }
 0x180   : > { %v6680_v40 = vpop.f32.mrf.mxu0 }
 0x181   : > { %8197 = vst [vmem:[#allocation28_spill] sm:$0xff] %v6680_v40 }
 0x182   : > { %v6682_v1 = vpop.f32.mrf.mxu0 }
 0x183   : > { %8198 = vst [vmem:[#allocation29_spill] sm:$0xff] %v6682_v1 }
 0x184   : > { %v6684_v55 = vpop.f32.mrf.mxu0 }
 0x185   : > { %8199 = vst [vmem:[#allocation30_spill] sm:$0xff] %v6684_v55  ;;  %v1272_v55 = vadd.f32 %v6512_v0, %v6500_v50 }
 0x186   : > { %v6686_v3 = vpop.f32.mrf.mxu0 }
 0x187   : > { %8200 = vst [vmem:[#allocation31_spill] sm:$0xff] %v6686_v3 }
 0x188   : > { %v6688_v6 = vpop.f32.mrf.mxu0 }
 0x189   : > { %8201 = vst [vmem:[#allocation32_spill] sm:$0xff] %v6688_v6 }
 0x18a   : > { %v6690_v14 = vpop.f32.mrf.mxu0 }
 0x18b   : > { %8202 = vst [vmem:[#allocation33_spill] sm:$0xff] %v6690_v14 }
 0x18c   : > { %v6692_v42 = vpop.f32.mrf.mxu0 }
 0x18d   : > { %8203 = vst [vmem:[#allocation34_spill] sm:$0xff] %v6692_v42  ;;  %v1465_v42 = vadd.f32 %v6516_v4, %v1272_v55 }
 0x18e   : > { %v6694_v47 = vpop.f32.mrf.mxu0 }
 0x18f   : > { %8204 = vst [vmem:[#allocation35_spill] sm:$0xff] %v6694_v47 }
 0x190   : > { %v6696_v49 = vpop.f32.mrf.mxu0 }
 0x191   : > { %8205 = vst [vmem:[#allocation36_spill] sm:$0xff] %v6696_v49 }
 0x192   : > { %v6698_v31 = vpop.f32.mrf.mxu0 }
 0x193   : > { %8206 = vst [vmem:[#allocation37_spill] sm:$0xff] %v6698_v31 }
 0x194   : > { %v6700_v38 = vpop.f32.mrf.mxu0 }
 0x195   : > { %8207 = vst [vmem:[#allocation38_spill] sm:$0xff] %v6700_v38  ;;  %v1282_v38 = vadd.f32 %v6528_v17, %v6500_v50 }
 0x196   : > { %v1651_v40 = vpop.f32.mrf.mxu0 }
 0x197   : > { %v1652_v3 = vadd.f32 %v1651_v40, %v6507_v58  ;;  %v1475_v4 = vadd.f32 %v6532_v22, %v1282_v38 }
 0x198   : > { %v1653_v1 = vpop.f32.mrf.mxu0 }
 0x199   : > { %v1654_v6 = vadd.f32 %v1653_v1, %v6510_v63  ;;  %v1810_v52 = vmax.f32 %v1652_v3, 0.0 }
 0x19a   : > { %v1655_v14 = vpop.f32.mrf.mxu0 }
 0x19b   : > { %v1811_v47 = vmax.f32 %v1654_v6, 0.0  ;;  %v1656_v49 = vadd.f32 %v1655_v14, %v6514_v2 }
 0x19c   : > { %v1657_v28 = vpop.f32.mrf.mxu0 }
 0x19d   : > { %v1874_v31 = vmax.f32 %v1810_v52, %v1811_v47  ;;  %v1658_v18 = vadd.f32 %v1657_v28, %v1465_v42  ;;  %v1812_v0 = vmax.f32 %v1656_v49, 0.0 }
 0x19e   : > { %v1661_v43 = vpop.f32.mrf.mxu0 }
 0x19f   : > { %v1813_v8 = vmax.f32 %v1658_v18, 0.0  ;;  %v1662_v58 = vadd.f32 %v1661_v43, %v6523_v11  ;;  %v1292_v18 = vadd.f32 %v6544_v35, %v6500_v50 }
 0x1a0   : > { %v1663_v40 = vpop.f32.mrf.mxu0 }
 0x1a1   : > { %v1875_v63 = vmax.f32 %v1812_v0, %v1813_v8  ;;  %v1664_v1 = vadd.f32 %v1663_v40, %v6526_v16  ;;  %v1814_v2 = vmax.f32 %v1662_v58, 0.0  ;;  %v1485_v47 = vadd.f32 %v6548_v39, %v1292_v18 }
 0x1a2   : > { %v1665_v55 = vpop.f32.mrf.mxu0 }
 0x1a3   : > { %v6713_v3 = vpack.c.bf16 %v1875_v63, %v1874_v31  ;;  %v1815_v52 = vmax.f32 %v1664_v1, 0.0  ;;  %v1666_v42 = vadd.f32 %v1665_v55, %v6530_v20  ;;  %v1302_v1 = vadd.f32 %v6560_v57, %v6500_v50 }
 0x1a4   : > { %v1667_v28 = vpop.f32.mrf.mxu0 }
 0x1a5   : > { %v1876_v17 = vmax.f32 %v1814_v2, %v1815_v52  ;;  %v1668_v6 = vadd.f32 %v1667_v28, %v1475_v4  ;;  %v1816_v49 = vmax.f32 %v1666_v42, 0.0  ;;  %v1495_v42 = vadd.f32 %v6564_v62, %v1302_v1 }
 0x1a6   : > { %v1671_v43 = vpop.f32.mrf.mxu0 }
 0x1a7   : > { %v1817_v11 = vmax.f32 %v1668_v6, 0.0  ;;  %v1672_v16 = vadd.f32 %v1671_v43, %v6539_v29 }
 0x1a8   : > { %v1673_v8 = vpop.f32.mrf.mxu0 }
 0x1a9   : > { %v1877_v22 = vmax.f32 %v1816_v49, %v1817_v11  ;;  %v1674_v14 = vadd.f32 %v1673_v8, %v6542_v34  ;;  %v1818_v20 = vmax.f32 %v1672_v16, 0.0  ;;  %v1312_v11 = vadd.f32 %v6576_v19, %v6500_v50  ;;  %v6734_v16 = vpop.f32.mrf.mxu1 }
 0x1aa   : > { %v1675_v31 = vpop.f32.mrf.mxu0 }
 0x1ab   : > { %v6721_v38 = vpack.c.bf16 %v1877_v22, %v1876_v17  ;;  %v1819_v0 = vmax.f32 %v1674_v14, 0.0  ;;  %v1676_v58 = vadd.f32 %v1675_v31, %v6546_v37  ;;  %v1505_v31 = vadd.f32 %v6580_v25, %v1312_v11 }
 0x1ac   : > { %v1677_v40 = vpop.f32.mrf.mxu0 }
 0x1ad   : > { %v1878_v35 = vmax.f32 %v1818_v20, %v1819_v0  ;;  %v1678_v63 = vadd.f32 %v1677_v40, %v1485_v47  ;;  %v1820_v4 = vmax.f32 %v1676_v58, 0.0  ;;  %v5640_v20 = vld [vmem:[%s8144_s3 + $0x4] ss:$8 sps:$4 sm:$0xff]   ;;  %v6742_v0 = vpop.f32.mrf.mxu1 }
 0x1ae   : > { %v1681_v29 = vpop.f32.mrf.mxu0  ;;  %2098 = vmatprep.mubr.bf16.mxu1 %v5640_v20 }
 0x1af   : > { %v1821_v55 = vmax.f32 %v1678_v63, 0.0  ;;  %v1682_v34 = vadd.f32 %v1681_v29, %v6555_v51  ;;  %v6749_v29 = vpop.f32.mrf.mxu1 }
 0x1b0   : > { %v1683_v2 = vpop.f32.mrf.mxu0 }
 0x1b1   : > { %v1879_v39 = vmax.f32 %v1820_v4, %v1821_v55  ;;  %v1684_v52 = vadd.f32 %v1683_v2, %v6558_v56  ;;  %v1822_v37 = vmax.f32 %v1682_v34, 0.0 }
 0x1b2   : > { %v1685_v28 = vpop.f32.mrf.mxu0 }
 0x1b3   : > { %v6729_v17 = vpack.c.bf16 %v1879_v39, %v1878_v35  ;;  %v1823_v6 = vmax.f32 %v1684_v52, 0.0  ;;  %v1686_v18 = vadd.f32 %v1685_v28, %v6562_v60  ;;  %v6754_v28 = vpop.f32.mrf.mxu1 }
 0x1b4   : > { %v1687_v43 = vpop.f32.mrf.mxu0 }
 0x1b5   : > { %v1880_v57 = vmax.f32 %v1822_v37, %v1823_v6  ;;  %v1688_v49 = vadd.f32 %v1687_v43, %v1495_v42  ;;  %v1824_v8 = vmax.f32 %v1686_v18, 0.0 }
 0x1b6   : > { %v1691_v51 = vpop.f32.mrf.mxu0 }
 0x1b7   : > { %v1825_v56 = vmax.f32 %v1688_v49, 0.0  ;;  %v1692_v62 = vadd.f32 %v1691_v51, %v6571_v9  ;;  %v6761_v51 = vpop.f32.mrf.mxu1 }
 0x1b8   : > { %v1693_v22 = vpop.f32.mrf.mxu0 }
 0x1b9   : > { %v1881_v14 = vmax.f32 %v1824_v8, %v1825_v56  ;;  %v1694_v47 = vadd.f32 %v1693_v22, %v6574_v15  ;;  %v1826_v58 = vmax.f32 %v1692_v62, 0.0  ;;  %v1322_v15 = vadd.f32 %v6592_v45, %v6500_v50 }
 0x1ba   : > { %v1695_v60 = vpop.f32.mrf.mxu0 }
 0x1bb   : > { %v6744_v19 = vpack.c.bf16 %v1881_v14, %v1880_v57  ;;  %v1827_v40 = vmax.f32 %v1694_v47, 0.0  ;;  %v1696_v35 = vadd.f32 %v1695_v60, %v6578_v23  ;;  %v1515_v23 = vadd.f32 %v6596_v53, %v1322_v15  ;;  %v6766_v47 = vpop.f32.mrf.mxu1 }
 0x1bc   : > { %v1697_v9 = vpop.f32.mrf.mxu0 }
 0x1bd   : > { %v1882_v63 = vmax.f32 %v1826_v58, %v1827_v40  ;;  %v1698_v1 = vadd.f32 %v1697_v9, %v1505_v31  ;;  %v1828_v4 = vmax.f32 %v1696_v35, 0.0 }
 0x1be   : > { %v1701_v25 = vpop.f32.mrf.mxu0 }
 0x1bf   : > { %v1829_v55 = vmax.f32 %v1698_v1, 0.0  ;;  %v1702_v34 = vadd.f32 %v1701_v25, %v6587_v33  ;;  %v1332_v33 = vadd.f32 %v6608_v13, %v6500_v50 }
 0x1c0   : > { %v1703_v2 = vpop.f32.mrf.mxu0 }
 0x1c1   : > { %v1883_v39 = vmax.f32 %v1828_v4, %v1829_v55  ;;  %v1704_v52 = vadd.f32 %v1703_v2, %v6590_v44  ;;  %v1830_v6 = vmax.f32 %v1702_v34, 0.0  ;;  %v1525_v14 = vadd.f32 %v6612_v26, %v1332_v33 }
 0x1c2   : > { %v1705_v42 = vpop.f32.mrf.mxu0 }
 0x1c3   : > { %v6756_v37 = vpack.c.bf16 %v1883_v39, %v1882_v63  ;;  %v1831_v45 = vmax.f32 %v1704_v52, 0.0  ;;  %v1706_v18 = vadd.f32 %v1705_v42, %v6594_v48  ;;  %v6773_v63 = vpop.f32.mrf.mxu1 }
 0x1c4   : > { %v1707_v43 = vpop.f32.mrf.mxu0 }
 0x1c5   : > { %v1884_v57 = vmax.f32 %v1830_v6, %v1831_v45  ;;  %v1708_v49 = vadd.f32 %v1707_v43, %v1515_v23  ;;  %v1832_v44 = vmax.f32 %v1706_v18, 0.0  ;;  %v6778_v34 = vpop.f32.mrf.mxu1 }
 0x1c6   : > { %v1711_v11 = vpop.f32.mrf.mxu0 }
 0x1c7   : > { %v1833_v53 = vmax.f32 %v1708_v49, 0.0  ;;  %v1712_v8 = vadd.f32 %v1711_v11, %v6603_v5  ;;  %v1342_v5 = vadd.f32 %v6621_v46, %v6500_v50  ;;  %v6785_v18 = vpop.f32.mrf.mxu1 }
 0x1c8   : > { %v1713_v56 = vpop.f32.mrf.mxu0 }
 0x1c9   : > { %v1885_v62 = vmax.f32 %v1832_v44, %v1833_v53  ;;  %v1714_v22 = vadd.f32 %v1713_v56, %v6606_v12  ;;  %v1834_v60 = vmax.f32 %v1712_v8, 0.0  ;;  %v1535_v55 = vadd.f32 %v6625_v59, %v1342_v5  ;;  %v6790_v44 = vpop.f32.mrf.mxu1  ;;  %v8209_v5 = vld [vmem:[#allocation14_spill] sm:$0xff] }
 0x1ca   : > { %v1715_v48 = vpop.f32.mrf.mxu0 }
 0x1cb   : > { %v6768_v31 = vpack.c.bf16 %v1885_v62, %v1884_v57  ;;  %v1835_v13 = vmax.f32 %v1714_v22, 0.0  ;;  %v1716_v20 = vadd.f32 %v1715_v48, %v6610_v21 }
 0x1cc   : > { %v1717_v58 = vpop.f32.mrf.mxu0 }
 0x1cd   : > { %v1886_v40 = vmax.f32 %v1834_v60, %v1835_v13  ;;  %v1718_v35 = vadd.f32 %v1717_v58, %v1525_v14  ;;  %v1836_v12 = vmax.f32 %v1716_v20, 0.0  ;;  %v6797_v60 = vpop.f32.mrf.mxu1 }
 0x1ce   : > { %v1721_v9 = vpop.f32.mrf.mxu0 }
 0x1cf   : > { %v1837_v26 = vmax.f32 %v1718_v35, 0.0  ;;  %v1722_v1 = vadd.f32 %v1721_v9, %v6616_v32  ;;  %v1352_v32 = vadd.f32 %v6634_v27, %v6500_v50 }
 0x1d0   : > { %v1723_v15 = vpop.f32.mrf.mxu0 }
 0x1d1   : > { %v1887_v25 = vmax.f32 %v1836_v12, %v1837_v26  ;;  %v1724_v4 = vadd.f32 %v1723_v15, %v6619_v41  ;;  %v1838_v39 = vmax.f32 %v1722_v1, 0.0  ;;  %v1545_v11 = vadd.f32 %v6638_v36, %v1352_v32  ;;  %v6804_v1 = vpop.f32.mrf.mxu1 }
 0x1d2   : > { %v1725_v21 = vpop.f32.mrf.mxu0 }
 0x1d3   : > { %v6780_v2 = vpack.c.bf16 %v1887_v25, %v1886_v40  ;;  %v1839_v46 = vmax.f32 %v1724_v4, 0.0  ;;  %v1726_v52 = vadd.f32 %v1725_v21, %v6623_v54  ;;  %v8208_v40 = vld [vmem:[#allocation12_spill] sm:$0xff]  ;;  %v8211_v25 = vld [vmem:[#allocation13_spill] sm:$0xff] }
 0x1d4   : > { %v1727_v23 = vpop.f32.mrf.mxu0 }
 0x1d5   : > { %v1888_v42 = vmax.f32 %v1838_v39, %v1839_v46  ;;  %v1728_v6 = vadd.f32 %v1727_v23, %v1535_v55  ;;  %v1840_v41 = vmax.f32 %v1726_v52, 0.0  ;;  %v8213_v39 = vld [vmem:[#allocation17_spill] sm:$0xff] }
 0x1d6   : > { %v1731_v45 = vpop.f32.mrf.mxu0 }
 0x1d7   : > { %v1841_v59 = vmax.f32 %v1728_v6, 0.0  ;;  %v1732_v43 = vadd.f32 %v1731_v45, %v6629_v7  ;;  %v1362_v7 = vadd.f32 %v6647_v10, %v6500_v50 }
 0x1d8   : > { %v1733_v57 = vpop.f32.mrf.mxu0 }
 0x1d9   : > { %v1889_v49 = vmax.f32 %v1840_v41, %v1841_v59  ;;  %v1734_v33 = vadd.f32 %v1733_v57, %v6632_v24  ;;  %v1842_v8 = vmax.f32 %v1732_v43, 0.0  ;;  %v1555_v9 = vadd.f32 %v8209_v5, %v1362_v7  ;;  %v6814_v41 = vpop.f32.mrf.mxu1  ;;  %v8215_v57 = vld [vmem:[#allocation16_spill] sm:$0xff] }
 0x1da   : > { %v1735_v54 = vpop.f32.mrf.mxu0 }
 0x1db   : > { %v6792_v53 = vpack.c.bf16 %v1889_v49, %v1888_v42  ;;  %v1843_v27 = vmax.f32 %v1734_v33, 0.0  ;;  %v1736_v56 = vadd.f32 %v1735_v54, %v6636_v30  ;;  %v8210_v30 = vld [vmem:[#allocation15_spill] sm:$0xff]  ;;  %v8214_v42 = vld [vmem:[#allocation18_spill] sm:$0xff]  ;;  %v6823_v7 = vpop.f32.mrf.mxu1 }
 0x1dc   : > { %v1737_v62 = vpop.f32.mrf.mxu0  ;;  %v1368_v12 = vadd.f32 %v8210_v30, %v6500_v50  ;;  %v1372_v6 = vadd.f32 %v8214_v42, %v6500_v50  ;;  %v8216_v54 = vld [vmem:[#allocation19_spill] sm:$0xff]  ;;  %v8221_v42 = vld [vmem:[#allocation24_spill] sm:$0xff] }
 0x1dd   : > { %v1890_v22 = vmax.f32 %v1842_v8, %v1843_v27  ;;  %v1738_v14 = vadd.f32 %v1737_v62, %v1545_v11  ;;  %v1844_v24 = vmax.f32 %v1736_v56, 0.0 }
 0x1de   : > { %v1741_v48 = vpop.f32.mrf.mxu0  ;;  %v1561_v45 = vadd.f32 %v6734_v16, %v1368_v12  ;;  %v1565_v62 = vadd.f32 %v6749_v29, %v1372_v6  ;;  %v8219_v29 = vld [vmem:[#allocation22_spill] sm:$0xff]  ;;  %v1388_v6 = vadd.f32 %v8221_v42, %v6500_v50 }
 0x1df   : > { %v1845_v36 = vmax.f32 %v1738_v14, 0.0  ;;  %v1742_v13 = vadd.f32 %v1741_v48, %v6642_v61  ;;  %v8212_v61 = vld [vmem:[#allocation11_spill] sm:$0xff] }
 0x1e0   : > { %v1743_v20 = vpop.f32.mrf.mxu0  ;;  %v1370_v46 = vadd.f32 %v8213_v39, %v8212_v61  ;;  %v1376_v8 = vadd.f32 %v8216_v54, %v8212_v61 }
 0x1e1   : > { %v1891_v58 = vmax.f32 %v1844_v24, %v1845_v36  ;;  %v1744_v35 = vadd.f32 %v1743_v20, %v8208_v40  ;;  %v1846_v10 = vmax.f32 %v1742_v13, 0.0 }
 0x1e2   : > { %v1745_v26 = vpop.f32.mrf.mxu0  ;;  %v1563_v11 = vadd.f32 %v6742_v0, %v1370_v46  ;;  %v1569_v0 = vadd.f32 %v6754_v28, %v1376_v8  ;;  %v8220_v28 = vld [vmem:[#allocation23_spill] sm:$0xff] }
 0x1e3   : > { %v1847_v15 = vmax.f32 %v1744_v35, 0.0  ;;  %v1746_v4 = vadd.f32 %v1745_v26, %v8211_v25  ;;  %v6807_v55 = vpack.c.bf16 %v1891_v58, %v1890_v22  ;;  %v8217_v22 = vld [vmem:[#allocation20_spill] sm:$0xff]  ;;  %v8218_v58 = vld [vmem:[#allocation21_spill] sm:$0xff]  ;;  %v1594_v26 = vpop.f32.mrf.mxu1  ;;  %v1386_v39 = vadd.f32 %v8220_v28, %v8212_v61 }
 0x1e4   : > { %v1747_v21 = vpop.f32.mrf.mxu0  ;;  %v1378_v14 = vadd.f32 %v8217_v22, %v6500_v50  ;;  %v1380_v40 = vadd.f32 %v8218_v58, %v8212_v61 }
 0x1e5   : > { %v1892_v52 = vmax.f32 %v1846_v10, %v1847_v15  ;;  %v1748_v23 = vadd.f32 %v1747_v21, %v1555_v9  ;;  %v1848_v59 = vmax.f32 %v1746_v4, 0.0  ;;  %v1382_v9 = vadd.f32 %v8219_v29, %v6500_v50 }
 0x1e6   : > { %v1751_v32 = vpop.f32.mrf.mxu0  ;;  %v1571_v12 = vadd.f32 %v6761_v51, %v1378_v14  ;;  %v1573_v21 = vadd.f32 %v6766_v47, %v1380_v40  ;;  %v1579_v47 = vadd.f32 %v6778_v34, %v1386_v39  ;;  %v8224_v34 = vld [vmem:[#allocation27_spill] sm:$0xff] }
 0x1e7   : > { %v1849_v43 = vmax.f32 %v1748_v23, 0.0  ;;  %v1752_v49 = vadd.f32 %v1751_v32, %v8215_v57  ;;  %v1575_v23 = vadd.f32 %v6773_v63, %v1382_v9  ;;  %v8223_v63 = vld [vmem:[#allocation26_spill] sm:$0xff] }
 0x1e8   : > { %v1753_v33 = vpop.f32.mrf.mxu0 }
 0x1e9   : > { %v1893_v27 = vmax.f32 %v1848_v59, %v1849_v43  ;;  %v1754_v56 = vadd.f32 %v1753_v33, %v1561_v45  ;;  %v1850_v48 = vmax.f32 %v1752_v49, 0.0  ;;  %v1598_v45 = vpop.f32.mrf.mxu1  ;;  %v8222_v33 = vld [vmem:[#allocation25_spill] sm:$0xff] }
 0x1ea   : > { %v1755_v16 = vpop.f32.mrf.mxu0 }
 0x1eb   : > { %v1851_v24 = vmax.f32 %v1754_v56, 0.0  ;;  %v1756_v36 = vadd.f32 %v1755_v16, %v1563_v11  ;;  %v6825_v13 = vpack.c.bf16 %v1893_v27, %v1892_v52  ;;  %v1390_v11 = vadd.f32 %v8222_v33, %v8212_v61  ;;  %v1600_v22 = vpop.f32.mrf.mxu1 }
 0x1ec   : > { %v1757_v20 = vpop.f32.mrf.mxu0  ;;  %v1392_v27 = vadd.f32 %v8223_v63, %v6500_v50 }
 0x1ed   : > { %v1894_v35 = vmax.f32 %v1850_v48, %v1851_v24  ;;  %v1758_v5 = vadd.f32 %v1757_v20, %v1565_v62  ;;  %v1852_v10 = vmax.f32 %v1756_v36, 0.0  ;;  %v1581_v62 = vadd.f32 %v6785_v18, %v1388_v6  ;;  %v1602_v9 = vpop.f32.mrf.mxu1 }
 0x1ee   : > { %v1761_v30 = vpop.f32.mrf.mxu0  ;;  %v1583_v36 = vadd.f32 %v6790_v44, %v1390_v11  ;;  %v1396_v20 = vadd.f32 %v8224_v34, %v8212_v61  ;;  %v1585_v40 = vadd.f32 %v6797_v60, %v1392_v27  ;;  %v8227_v60 = vld [vmem:[#allocation30_spill] sm:$0xff]  ;;  %v8229_v11 = vld [vmem:[#allocation32_spill] sm:$0xff] }
 0x1ef   : > { %v1853_v15 = vmax.f32 %v1758_v5, 0.0  ;;  %v1762_v25 = vadd.f32 %v1761_v30, %v1569_v0  ;;  %v1402_v39 = vadd.f32 %v8227_v60, %v6500_v50  ;;  %v8231_v34 = vld [vmem:[#allocation34_spill] sm:$0xff] }
 0x1f0   : > { %v1763_v4 = vpop.f32.mrf.mxu0  ;;  %v1589_v44 = vadd.f32 %v6804_v1, %v1396_v20  ;;  %v8228_v1 = vld [vmem:[#allocation31_spill] sm:$0xff] }
 0x1f1   : > { %v1895_v46 = vmax.f32 %v1852_v10, %v1853_v15  ;;  %v1764_v52 = vadd.f32 %v1763_v4, %v1571_v12  ;;  %v1854_v51 = vmax.f32 %v1762_v25, 0.0  ;;  %v8226_v25 = vld [vmem:[#allocation29_spill] sm:$0xff]  ;;  %v1595_v33 = vadd.f32 %v1594_v26, %v1402_v39 }
 0x1f2   : > { %v1765_v32 = vpop.f32.mrf.mxu0  ;;  %v1400_v4 = vadd.f32 %v8226_v25, %v8212_v61  ;;  %v1412_v26 = vadd.f32 %v8231_v34, %v6500_v50  ;;  %v8233_v25 = vld [vmem:[#allocation36_spill] sm:$0xff] }
 0x1f3   : > { %v1855_v59 = vmax.f32 %v1764_v52, 0.0  ;;  %v1766_v43 = vadd.f32 %v1765_v32, %v1573_v21  ;;  %v6839_v57 = vpack.c.bf16 %v1895_v46, %v1894_v35  ;;  %v8225_v35 = vld [vmem:[#allocation28_spill] sm:$0xff] }
 0x1f4   : > { %v1767_v49 = vpop.f32.mrf.mxu0  ;;  %v1398_v5 = vadd.f32 %v8225_v35, %v6500_v50 }
 0x1f5   : > { %v1896_v54 = vmax.f32 %v1854_v51, %v1855_v59  ;;  %v1768_v8 = vadd.f32 %v1767_v49, %v1575_v23  ;;  %v1856_v14 = vmax.f32 %v1766_v43, 0.0  ;;  %v1604_v23 = vpop.f32.mrf.mxu1  ;;  %v1593_v59 = vadd.f32 %v6823_v7, %v1400_v4  ;;  %v8230_v7 = vld [vmem:[#allocation33_spill] sm:$0xff] }
 0x1f6   : > { %v1771_v56 = vpop.f32.mrf.mxu0  ;;  %v1591_v52 = vadd.f32 %v6814_v41, %v1398_v5  ;;  %v1406_v43 = vadd.f32 %v8228_v1, %v8212_v61  ;;  %v1418_v4 = vadd.f32 %v8233_v25, %v6500_v50  ;;  %v5679_v25 = vld [vmem:[%s8145_s4 + $0x14] ss:$8 sps:$4 sm:$0xff]  }
 0x1f7   : > { %v1857_v16 = vmax.f32 %v1768_v8, 0.0  ;;  %v1772_v48 = vadd.f32 %v1771_v56, %v1579_v47  ;;  %v1608_v63 = vpop.f32.mrf.mxu1 }
 0x1f8   : > { %v1773_v24 = vpop.f32.mrf.mxu0 }
 0x1f9   : > { %v1897_v0 = vmax.f32 %v1856_v14, %v1857_v16  ;;  %v1774_v58 = vadd.f32 %v1773_v24, %v1581_v62  ;;  %v1858_v18 = vmax.f32 %v1772_v48, 0.0  ;;  %v1599_v16 = vadd.f32 %v1598_v45, %v1406_v43 }
 0x1fa   : > { %v1775_v29 = vpop.f32.mrf.mxu0  ;;  %v1410_v48 = vadd.f32 %v8230_v7, %v8212_v61 }
 0x1fb   : > { %v1859_v30 = vmax.f32 %v1774_v58, 0.0  ;;  %v1776_v12 = vadd.f32 %v1775_v29, %v1583_v36  ;;  %v6853_v10 = vpack.c.bf16 %v1897_v0, %v1896_v54  ;;  %v1408_v54 = vadd.f32 %v8229_v11, %v6500_v50  ;;  %v1610_v58 = vpop.f32.mrf.mxu1 }
 0x1fc   : > { %v1777_v15 = vpop.f32.mrf.mxu0  ;;  %v1611_v43 = vadd.f32 %v1610_v58, %v1418_v4  ;;  %v5641_v58 = vld [vmem:[%s8144_s3 + $0x14] ss:$8 sps:$4 sm:$0xff]   ;;  %v5677_v4 = vld [vmem:[%s8145_s4 + $0x10] ss:$8 sps:$4 sm:$0xff]  }
 0x1fd   : > { %v1898_v21 = vmax.f32 %v1858_v18, %v1859_v30  ;;  %v1778_v28 = vadd.f32 %v1777_v15, %v1585_v40  ;;  %v1860_v42 = vmax.f32 %v1776_v12, 0.0  ;;  %v1601_v0 = vadd.f32 %v1600_v22, %v1408_v54  ;;  %v8232_v30 = vld [vmem:[#allocation35_spill] sm:$0xff] }
 0x1fe   : > { %v1781_v46 = vpop.f32.mrf.mxu0  ;;  %v1603_v18 = vadd.f32 %v1602_v9, %v1410_v48  ;;  %v1416_v12 = vadd.f32 %v8232_v30, %v8212_v61  ;;  %v5670_v30 = vld [vmem:[%s8144_s3 + $0xa0] ss:$8 sps:$4 sm:$0xff]  }
 0x1ff   : > { %v1861_v6 = vmax.f32 %v1778_v28, 0.0  ;;  %v1782_v32 = vadd.f32 %v1781_v46, %v1589_v44  ;;  %v1605_v44 = vadd.f32 %v1604_v23, %v1412_v26  ;;  %v1612_v28 = vpop.f32.mrf.mxu1 }
 0x200   : > { %v1783_v51 = vpop.f32.mrf.mxu0 }
 0x201   : > { %v1899_v49 = vmax.f32 %v1860_v42, %v1861_v6  ;;  %v1784_v47 = vadd.f32 %v1783_v51, %v1591_v52  ;;  %v1862_v27 = vmax.f32 %v1782_v32, 0.0  ;;  %v1609_v42 = vadd.f32 %v1608_v63, %v1416_v12  ;;  %v8234_v6 = vld [vmem:[#allocation37_spill] sm:$0xff]  ;;  %v5671_v12 = vld [vmem:[%s8144_s3 + $0xb4] ss:$8 sps:$4 sm:$0xff]  }
 0x202   : > { %v1785_v8 = vpop.f32.mrf.mxu0  ;;  %v1420_v9 = vadd.f32 %v8234_v6, %v8212_v61  ;;  %v5713_v6 = vld [vmem:[%s8146_s5 + $0x60] ss:$8 sps:$4 sm:$0xff]  }
 0x203   : > { %v1863_v41 = vmax.f32 %v1784_v47, 0.0  ;;  %v1786_v56 = vadd.f32 %v1785_v8, %v1593_v59  ;;  %v6866_v62 = vpack.c.bf16 %v1899_v49, %v1898_v21  ;;  %v8235_v59 = vld [vmem:[#allocation38_spill] sm:$0xff]  ;;  %v1614_v49 = vpop.f32.mrf.mxu1 }
 0x204   : > { %v1787_v14 = vpop.f32.mrf.mxu0  ;;  %v1422_v1 = vadd.f32 %v8235_v59, %v6500_v50  ;;  %v1613_v8 = vadd.f32 %v1612_v28, %v1420_v9  ;;  %v5680_v28 = vld [vmem:[%s8145_s4 + $0x20] ss:$8 sps:$4 sm:$0xff]   ;;  %v5718_v9 = vld [vmem:[%s8146_s5 + $0x54] ss:$8 sps:$4 sm:$0xff]  }
 0x205   : > { %v1900_v24 = vmax.f32 %v1862_v27, %v1863_v41  ;;  %v1788_v36 = vadd.f32 %v1787_v14, %v1595_v33  ;;  %v1864_v40 = vmax.f32 %v1786_v56, 0.0  ;;  %v5691_v59 = vld [vmem:[%s8145_s4 + $0x54] ss:$8 sps:$4 sm:$0xff]  }
 0x206   : > { %v1791_v20 = vpop.f32.mrf.mxu0  ;;  %v1615_v56 = vadd.f32 %v1614_v49, %v1422_v1  ;;  %v5721_v1 = vld [vmem:[%s8146_s5 + $0x44] ss:$8 sps:$4 sm:$0xff]   ;;  %v5689_v49 = vld [vmem:[%s8145_s4 + $0x50] ss:$8 sps:$4 sm:$0xff]  }
 0x207   : > { %v1865_v35 = vmax.f32 %v1788_v36, 0.0  ;;  %v1792_v5 = vadd.f32 %v1791_v20, %v1599_v16 }
 0x208   : > { %v1793_v29 = vpop.f32.mrf.mxu0 }
 0x209   : > { %v1901_v45 = vmax.f32 %v1864_v40, %v1865_v35  ;;  %v1794_v15 = vadd.f32 %v1793_v29, %v1601_v0  ;;  %v1866_v60 = vmax.f32 %v1792_v5, 0.0  ;;  %v5638_v0 = vld [vmem:[%s8144_s3] ss:$8 sps:$4 sm:$0xff]   ;;  %v5643_v40 = vld [vmem:[%s8144_s3 + $0x10] ss:$8 sps:$4 sm:$0xff]  }
 0x20a   : > { %v1795_v21 = vpop.f32.mrf.mxu0  ;;  %v5644_v35 = vld [vmem:[%s8144_s3 + $0x24] ss:$8 sps:$4 sm:$0xff]   ;;  %v5665_v5 = vld [vmem:[%s8144_s3 + $0x94] ss:$8 sps:$4 sm:$0xff]   ;;  %v5667_v29 = vld [vmem:[%s8144_s3 + $0x90] ss:$8 sps:$4 sm:$0xff]  }
 0x20b   : > { %v1867_v39 = vmax.f32 %v1794_v15, 0.0  ;;  %v1796_v22 = vadd.f32 %v1795_v21, %v1603_v18  ;;  %v1919_v46 = vpack.c.bf16 %v1901_v45, %v1900_v24  ;;  %v5668_v18 = vld [vmem:[%s8144_s3 + $0xa4] ss:$8 sps:$4 sm:$0xff]   ;;  %v5673_v45 = vld [vmem:[%s8144_s3 + $0xb0] ss:$8 sps:$4 sm:$0xff]  }
 0x20c   : > { %v1797_v52 = vpop.f32.mrf.mxu0  ;;  %v5676_v15 = vld [vmem:[%s8145_s4 + $0x4] ss:$8 sps:$4 sm:$0xff]  }
 0x20d   : > { %v1902_v32 = vmax.f32 %v1866_v60, %v1867_v39  ;;  %v1798_v51 = vadd.f32 %v1797_v52, %v1605_v44  ;;  %v1868_v47 = vmax.f32 %v1796_v22, 0.0  ;;  %v5674_v44 = vld [vmem:[%s8145_s4] ss:$8 sps:$4 sm:$0xff]   ;;  %v5682_v21 = vld [vmem:[%s8145_s4 + $0x24] ss:$8 sps:$4 sm:$0xff]  }
 0x20e   : > { %v1801_v23 = vpop.f32.mrf.mxu0  ;;  %v5685_v60 = vld [vmem:[%s8145_s4 + $0x34] ss:$8 sps:$4 sm:$0xff]   ;;  %v5683_v22 = vld [vmem:[%s8145_s4 + $0x30] ss:$8 sps:$4 sm:$0xff]   ;;  %v5688_v52 = vld [vmem:[%s8145_s4 + $0x44] ss:$8 sps:$4 sm:$0xff]  }
 0x20f   : > { %v1869_v33 = vmax.f32 %v1798_v51, 0.0  ;;  %v1802_v11 = vadd.f32 %v1801_v23, %v1609_v42  ;;  %v5712_v39 = vld [vmem:[%s8146_s5 + $0x74] ss:$8 sps:$4 sm:$0xff]   ;;  %v5715_v42 = vld [vmem:[%s8146_s5 + $0x64] ss:$8 sps:$4 sm:$0xff]  }
 0x210   : > { %v1803_v54 = vpop.f32.mrf.mxu0  ;;  %3276 = vmatprep.subr.bf16.mxu0 %v5712_v39  ;;  %v5716_v51 = vld [vmem:[%s8146_s5 + $0x50] ss:$8 sps:$4 sm:$0xff]   ;;  %v5719_v23 = vld [vmem:[%s8146_s5 + $0x40] ss:$8 sps:$4 sm:$0xff]  }
 0x211   : > { %v1903_v27 = vmax.f32 %v1868_v47, %v1869_v33  ;;  %v1804_v41 = vadd.f32 %v1803_v54, %v1611_v43  ;;  %v1870_v14 = vmax.f32 %v1802_v11, 0.0  ;;  %v5724_v43 = vld [vmem:[%s8146_s5 + $0x34] ss:$8 sps:$4 sm:$0xff]   ;;  %v5722_v47 = vld [vmem:[%s8146_s5 + $0x30] ss:$8 sps:$4 sm:$0xff]  }
 0x212   : > { %v1805_v63 = vpop.f32.mrf.mxu0  ;;  %v5694_v33 = vld [vmem:[%s8145_s4 + $0x64] ss:$8 sps:$4 sm:$0xff]   ;;  %v5725_v54 = vld [vmem:[%s8146_s5 + $0x20] ss:$8 sps:$4 sm:$0xff]   ;;  %v5707_v39 = vld [vmem:[%s8145_s4 + $0xb0] ss:$8 sps:$4 sm:$0xff]  }
 0x213   : > { %v1871_v16 = vmax.f32 %v1804_v41, 0.0  ;;  %v1806_v61 = vadd.f32 %v1805_v63, %v1613_v8  ;;  %v1920_v7 = vpack.c.bf16 %v1903_v27, %v1902_v32  ;;  %v5686_v32 = vld [vmem:[%s8145_s4 + $0x40] ss:$8 sps:$4 sm:$0xff]   ;;  %v5727_v11 = vld [vmem:[%s8146_s5 + $0x24] ss:$8 sps:$4 sm:$0xff]  }
 0x214   : > { %v1807_v48 = vpop.f32.mrf.mxu0  ;;  %v5730_v8 = vld [vmem:[%s8146_s5 + $0x14] ss:$8 sps:$4 sm:$0xff]   ;;  %v5692_v27 = vld [vmem:[%s8145_s4 + $0x60] ss:$8 sps:$4 sm:$0xff]   ;;  %v5728_v41 = vld [vmem:[%s8146_s5 + $0x10] ss:$8 sps:$4 sm:$0xff]  }
 0x215   : > { %v1904_v24 = vmax.f32 %v1870_v14, %v1871_v16  ;;  %v1808_v36 = vadd.f32 %v1807_v48, %v1615_v56  ;;  %v1872_v50 = vmax.f32 %v1806_v61, 0.0  ;;  %v5697_v56 = vld [vmem:[%s8145_s4 + $0x74] ss:$8 sps:$4 sm:$0xff]   ;;  %v5733_v63 = vld [vmem:[%s8146_s5 + $0x4] ss:$8 sps:$4 sm:$0xff]  }
 0x216   : > { %v5731_v14 = vld [vmem:[%s8146_s5] ss:$8 sps:$4 sm:$0xff]   ;;  %v5736_v16 = vld [vmem:[%s8146_s5 + $0x274] ss:$8 sps:$4 sm:$0xff]   ;;  %v5734_v61 = vld [vmem:[%s8146_s5 + $0x270] ss:$8 sps:$4 sm:$0xff]  }
 0x217   : > { %v1873_v34 = vmax.f32 %v1808_v36, 0.0  ;;  %v5695_v48 = vld [vmem:[%s8145_s4 + $0x70] ss:$8 sps:$4 sm:$0xff]   ;;  %v5700_v36 = vld [vmem:[%s8145_s4 + $0x84] ss:$8 sps:$4 sm:$0xff]  }
 0x219   : > { %v1905_v26 = vmax.f32 %v1872_v50, %v1873_v34  ;;  %v5742_v50 = vld [vmem:[%s8146_s5 + $0x264] ss:$8 sps:$4 sm:$0xff]   ;;  %v5740_v34 = vld [vmem:[%s8146_s5 + $0x260] ss:$8 sps:$4 sm:$0xff]  }
 0x21b   : > { %v1921_v20 = vpack.c.bf16 %v1905_v26, %v1904_v24  ;;  %v5737_v24 = vld [vmem:[%s8146_s5 + $0xf0] ss:$8 sps:$4 sm:$0xff]   ;;  %v5745_v26 = vld [vmem:[%s8146_s5 + $0xe4] ss:$8 sps:$4 sm:$0xff]  }
 0x21d   : > { %5018 = vmatprep.subr.bf16.mxu1 %v1921_v20 }
 0x21e   : > { %5019 = vmatpush3.bf16.msra.mxu1 %v6792_v53 }
 0x21f   : > { %5020 = vmatprep.subr.bf16.mxu1 %v1920_v7 }
 0x222   : > { %5021 = vmatpush3.bf16.msra.mxu1 %v6780_v2 }
 0x223   : > { %5022 = vmatprep.subr.bf16.mxu1 %v1919_v46 }
 0x226   : > { %5023 = vmatpush3.bf16.msra.mxu1 %v6768_v31 }
 0x227   : > { %5024 = vmatprep.subr.bf16.mxu1 %v6866_v62 }
 0x22a   : > { %5025 = vmatpush3.bf16.msra.mxu1 %v6756_v37 }
 0x22b   : > { %5026 = vmatprep.subr.bf16.mxu1 %v6853_v10 }
 0x22e   : > { %5027 = vmatpush3.bf16.msra.mxu1 %v6744_v19 }
 0x22f   : > { %5028 = vmatprep.subr.bf16.mxu1 %v6839_v57 }
 0x232   : > { %5029 = vmatpush3.bf16.msra.mxu1 %v6729_v17 }
 0x233   : > { %5030 = vmatprep.subr.bf16.mxu1 %v6825_v13 }
 0x236   : > { %5031 = vmatpush3.bf16.msra.mxu1 %v6721_v38 }
 0x237   : > { %5032 = vmatprep.subr.bf16.mxu1 %v6807_v55 }
 0x23a   : > { %5033 = vmatpush3.bf16.msra.mxu1 %v6713_v3 }
 0x23b   : > { %5106 = vmatprep.subr.bf16.mxu1 %v1921_v20  ;;  %v5743_v20 = vld [vmem:[%s8146_s5 + $0xe0] ss:$8 sps:$4 sm:$0xff]  }
 0x23d   : > { %2099 = vmatmul.mubr.bf16.vlgmr.msra.gmra.mxu1 %v5638_v0  ;;  %v5748_v0 = vld [vmem:[%s8146_s5 + $0x254] ss:$8 sps:$4 sm:$0xff]  }
 0x23e   : > { %5107 = vmatpush3.bf16.msra.mxu1 %v6792_v53  ;;  %2106 = vmatprep.mubr.bf16.mxu1 %v5641_v58  ;;  %v5646_v53 = vld [vmem:[%s8144_s3 + $0x20] ss:$8 sps:$4 sm:$0xff]   ;;  %v5746_v58 = vld [vmem:[%s8146_s5 + $0x250] ss:$8 sps:$4 sm:$0xff]  }
 0x23f   : > { %5108 = vmatprep.subr.bf16.mxu1 %v1920_v7  ;;  %v5739_v7 = vld [vmem:[%s8146_s5 + $0xf4] ss:$8 sps:$4 sm:$0xff]  }
 0x242   : > { %5109 = vmatpush3.bf16.msra.mxu1 %v6780_v2  ;;  %v5647_v2 = vld [vmem:[%s8144_s3 + $0x34] ss:$8 sps:$4 sm:$0xff]  }
 0x243   : > { %5110 = vmatprep.subr.bf16.mxu1 %v1919_v46  ;;  %v5710_v46 = vld [vmem:[%s8146_s5 + $0x70] ss:$8 sps:$4 sm:$0xff]  }
 0x244   : > { %3277 = vmatpush1.bf16.msra.mxu0 %v5710_v46 }
 0x245   : > { %2107 = vmatmul.mubr.bf16.gmra.mxu1 %v5643_v40  ;;  %3278 = vmatprep.subr.bf16.mxu0 %v5715_v42  ;;  %v5751_v40 = vld [vmem:[%s8146_s5 + $0xd4] ss:$8 sps:$4 sm:$0xff]  }
 0x246   : > { %5111 = vmatpush3.bf16.msra.mxu1 %v6768_v31  ;;  %2114 = vmatprep.mubr.bf16.mxu1 %v5644_v35  ;;  %v5649_v31 = vld [vmem:[%s8144_s3 + $0x30] ss:$8 sps:$4 sm:$0xff]   ;;  %v5698_v35 = vld [vmem:[%s8145_s4 + $0x80] ss:$8 sps:$4 sm:$0xff]  }
 0x247   : > { %5112 = vmatprep.subr.bf16.mxu1 %v6866_v62  ;;  %v5664_v62 = vld [vmem:[%s8144_s3 + $0x80] ss:$8 sps:$4 sm:$0xff]  }
 0x248   : > { %3279 = vmatpush1.bf16.msra.mxu0 %v5713_v6 }
 0x249   : > { %3280 = vmatprep.subr.bf16.mxu0 %v5718_v9 }
 0x24a   : > { %5113 = vmatpush3.bf16.msra.mxu1 %v6756_v37  ;;  %v5650_v37 = vld [vmem:[%s8144_s3 + $0x44] ss:$8 sps:$4 sm:$0xff]  }
 0x24b   : > { %5114 = vmatprep.subr.bf16.mxu1 %v6853_v10  ;;  %v5662_v10 = vld [vmem:[%s8144_s3 + $0x84] ss:$8 sps:$4 sm:$0xff]  }
 0x24c   : > { %3281 = vmatpush1.bf16.msra.mxu0 %v5716_v51 }
 0x24d   : > { %2115 = vmatmul.mubr.bf16.gmra.mxu1 %v5646_v53  ;;  %3282 = vmatprep.subr.bf16.mxu0 %v5721_v1  ;;  %v5749_v53 = vld [vmem:[%s8146_s5 + $0xd0] ss:$8 sps:$4 sm:$0xff]  }
 0x24e   : > { %5115 = vmatpush3.bf16.msra.mxu1 %v6744_v19  ;;  %2122 = vmatprep.mubr.bf16.mxu1 %v5647_v2  ;;  %v5652_v19 = vld [vmem:[%s8144_s3 + $0x40] ss:$8 sps:$4 sm:$0xff]   ;;  %v5703_v2 = vld [vmem:[%s8145_s4 + $0x94] ss:$8 sps:$4 sm:$0xff]  }
 0x24f   : > { %5116 = vmatprep.subr.bf16.mxu1 %v6839_v57  ;;  %v5661_v57 = vld [vmem:[%s8144_s3 + $0x70] ss:$8 sps:$4 sm:$0xff]  }
 0x250   : > { %3283 = vmatpush1.bf16.msra.mxu0 %v5719_v23 }
 0x251   : > { %3284 = vmatprep.subr.bf16.mxu0 %v5724_v43 }
 0x252   : > { %5117 = vmatpush3.bf16.msra.mxu1 %v6729_v17  ;;  %v5653_v17 = vld [vmem:[%s8144_s3 + $0x54] ss:$8 sps:$4 sm:$0xff]  }
 0x253   : > { %5118 = vmatprep.subr.bf16.mxu1 %v6825_v13  ;;  %v5655_v13 = vld [vmem:[%s8144_s3 + $0x50] ss:$8 sps:$4 sm:$0xff]  }
 0x254   : > { %3285 = vmatpush1.bf16.msra.mxu0 %v5722_v47 }
 0x255   : > { %2123 = vmatmul.mubr.bf16.gmra.mxu1 %v5649_v31  ;;  %3286 = vmatprep.subr.bf16.mxu0 %v5727_v11  ;;  %v5754_v31 = vld [vmem:[%s8146_s5 + $0x244] ss:$8 sps:$4 sm:$0xff]  }
 0x256   : > { %5119 = vmatpush3.bf16.msra.mxu1 %v6721_v38  ;;  %2130 = vmatprep.mubr.bf16.mxu1 %v5650_v37  ;;  %v5656_v38 = vld [vmem:[%s8144_s3 + $0x64] ss:$8 sps:$4 sm:$0xff]   ;;  %v5752_v37 = vld [vmem:[%s8146_s5 + $0x240] ss:$8 sps:$4 sm:$0xff]  }
 0x257   : > { %5120 = vmatprep.subr.bf16.mxu1 %v6807_v55  ;;  %v5659_v55 = vld [vmem:[%s8144_s3 + $0x74] ss:$8 sps:$4 sm:$0xff]  }
 0x258   : > { %3287 = vmatpush1.bf16.msra.mxu0 %v5725_v54 }
 0x259   : > { %3288 = vmatprep.subr.bf16.mxu0 %v5730_v8 }
 0x25a   : > { %5121 = vmatpush3.bf16.msra.mxu1 %v6713_v3  ;;  %v5658_v3 = vld [vmem:[%s8144_s3 + $0x60] ss:$8 sps:$4 sm:$0xff]  }
 0x25b   : > { %3502 = vmatprep.subr.bf16.mxu1 %v5736_v16 }
 0x25c   : > { %3289 = vmatpush1.bf16.msra.mxu0 %v5728_v41 }
 0x25d   : > { %2131 = vmatmul.mubr.bf16.gmra.mxu1 %v5652_v19  ;;  %3290 = vmatprep.subr.bf16.mxu0 %v5733_v63  ;;  %v5757_v19 = vld [vmem:[%s8146_s5 + $0xc4] ss:$8 sps:$4 sm:$0xff]  }
 0x25e   : > { %2138 = vmatprep.mubr.bf16.mxu1 %v5653_v17  ;;  %v5755_v17 = vld [vmem:[%s8146_s5 + $0xc0] ss:$8 sps:$4 sm:$0xff]  }
 0x260   : > { %3291 = vmatpush1.bf16.msra.mxu0 %v5731_v14 }
 0x261   : > { %3292 = vmatprep.subr.bf16.mxu0 %v5739_v7 }
 0x264   : > { %3293 = vmatpush2.bf16.msra.mxu0 %v5737_v24 }
 0x265   : > { %2139 = vmatmul.mubr.bf16.gmra.mxu1 %v5655_v13  ;;  %3294 = vmatprep.subr.bf16.mxu0 %v5745_v26  ;;  %v5760_v13 = vld [vmem:[%s8146_s5 + $0x234] ss:$8 sps:$4 sm:$0xff]  }
 0x266   : > { %2146 = vmatprep.mubr.bf16.mxu1 %v5656_v38  ;;  %v5758_v38 = vld [vmem:[%s8146_s5 + $0x230] ss:$8 sps:$4 sm:$0xff]  }
 0x268   : > { %3295 = vmatpush2.bf16.msra.mxu0 %v5743_v20 }
 0x269   : > { %3296 = vmatprep.subr.bf16.mxu0 %v5751_v40 }
 0x26c   : > { %3297 = vmatpush2.bf16.msra.mxu0 %v5749_v53 }
 0x26d   : > { %2147 = vmatmul.mubr.bf16.gmra.mxu1 %v5658_v3  ;;  %3298 = vmatprep.subr.bf16.mxu0 %v5757_v19  ;;  %v5763_v3 = vld [vmem:[%s8146_s5 + $0xb4] ss:$8 sps:$4 sm:$0xff]  }
 0x26e   : > { %2154 = vmatprep.mubr.bf16.mxu1 %v5659_v55  ;;  %v5701_v55 = vld [vmem:[%s8145_s4 + $0x90] ss:$8 sps:$4 sm:$0xff]  }
 0x270   : > { %3299 = vmatpush2.bf16.msra.mxu0 %v5755_v17 }
 0x271   : > { %3300 = vmatprep.subr.bf16.mxu0 %v5763_v3 }
 0x275   : > { %2155 = vmatmul.mubr.bf16.gmra.mxu1 %v5661_v57  ;;  %v5761_v57 = vld [vmem:[%s8146_s5 + $0xb0] ss:$8 sps:$4 sm:$0xff]  }
 0x276   : > { %2162 = vmatprep.mubr.bf16.mxu1 %v5662_v10  ;;  %v5706_v10 = vld [vmem:[%s8145_s4 + $0xa4] ss:$8 sps:$4 sm:$0xff]   ;;  %3301 = vmatpush2.bf16.msra.mxu0 %v5761_v57 }
 0x27d   : > { %2163 = vmatmul.mubr.bf16.gmra.mxu1 %v5664_v62  ;;  %v5766_v62 = vld [vmem:[%s8146_s5 + $0x224] ss:$8 sps:$4 sm:$0xff]  }
 0x27e   : > { %2170 = vmatprep.mubr.bf16.mxu1 %v5665_v5  ;;  %v5764_v5 = vld [vmem:[%s8146_s5 + $0x220] ss:$8 sps:$4 sm:$0xff]  }
 0x285   : > { %2171 = vmatmul.mubr.bf16.gmra.mxu1 %v5667_v29  ;;  %v5769_v29 = vld [vmem:[%s8146_s5 + $0xa4] ss:$8 sps:$4 sm:$0xff]  }
 0x286   : > { %2178 = vmatprep.mubr.bf16.mxu1 %v5668_v18  ;;  %v5767_v18 = vld [vmem:[%s8146_s5 + $0xa0] ss:$8 sps:$4 sm:$0xff]   ;;  %3302 = vmatprep.subr.bf16.mxu0 %v5769_v29 }
 0x287   : > { %3303 = vmatpush2.bf16.msra.mxu0 %v5767_v18 }
 0x28d   : > { %2179 = vmatmul.mubr.bf16.gmra.mxu1 %v5670_v30  ;;  %v5772_v30 = vld [vmem:[%s8146_s5 + $0x214] ss:$8 sps:$4 sm:$0xff]  }
 0x28e   : > { %2186 = vmatprep.mubr.bf16.mxu1 %v5671_v12  ;;  %v5770_v12 = vld [vmem:[%s8146_s5 + $0x210] ss:$8 sps:$4 sm:$0xff]  }
 0x295   : > { %2187 = vmatmul.mubr.bf16.gmra.mxu1 %v5673_v45  ;;  %v5775_v45 = vld [vmem:[%s8146_s5 + $0x94] ss:$8 sps:$4 sm:$0xff]  }
 0x296   : > { %2371 = vmatprep.mubr.bf16.mxu1 %v5676_v15  ;;  %v5704_v15 = vld [vmem:[%s8145_s4 + $0xa0] ss:$8 sps:$4 sm:$0xff]   ;;  %3304 = vmatprep.subr.bf16.mxu0 %v5775_v45 }
 0x29d   : > { %2372 = vmatmul.mubr.bf16.vlgmr.msra.gmra.mxu1 %v5674_v44  ;;  %v5773_v44 = vld [vmem:[%s8146_s5 + $0x90] ss:$8 sps:$4 sm:$0xff]  }
 0x29e   : > { %2379 = vmatprep.mubr.bf16.mxu1 %v5679_v25  ;;  %3503 = vmatpush1.bf16.msra.mxu1 %v5734_v61  ;;  %v5709_v25 = vld [vmem:[%s8145_s4 + $0xb4] ss:$8 sps:$4 sm:$0xff]  }
 0x29f   : > { %3504 = vmatprep.subr.bf16.mxu1 %v5742_v50  ;;  %3305 = vmatpush2.bf16.msra.mxu0 %v5773_v44 }
 0x2a2   : > { %3505 = vmatpush1.bf16.msra.mxu1 %v5740_v34 }
 0x2a3   : > { %3506 = vmatprep.subr.bf16.mxu1 %v5748_v0 }
 0x2a5   : > { %2380 = vmatmul.mubr.bf16.gmra.mxu1 %v5677_v4  ;;  %v5778_v4 = vld [vmem:[%s8146_s5 + $0x204] ss:$8 sps:$4 sm:$0xff]  }
 0x2a6   : > { %2387 = vmatprep.mubr.bf16.mxu1 %v5682_v21  ;;  %3507 = vmatpush1.bf16.msra.mxu1 %v5746_v58  ;;  %v5776_v21 = vld [vmem:[%s8146_s5 + $0x200] ss:$8 sps:$4 sm:$0xff]  }
 0x2a7   : > { %3508 = vmatprep.subr.bf16.mxu1 %v5754_v31 }
 0x2aa   : > { %3509 = vmatpush1.bf16.msra.mxu1 %v5752_v37 }
 0x2ab   : > { %3510 = vmatprep.subr.bf16.mxu1 %v5760_v13 }
 0x2ad   : > { %2388 = vmatmul.mubr.bf16.gmra.mxu1 %v5680_v28  ;;  %v5781_v28 = vld [vmem:[%s8146_s5 + $0x84] ss:$8 sps:$4 sm:$0xff]  }
 0x2ae   : > { %2395 = vmatprep.mubr.bf16.mxu1 %v5685_v60  ;;  %3511 = vmatpush1.bf16.msra.mxu1 %v5758_v38  ;;  %v5779_v60 = vld [vmem:[%s8146_s5 + $0x80] ss:$8 sps:$4 sm:$0xff]  }
 0x2af   : > { %3512 = vmatprep.subr.bf16.mxu1 %v5766_v62  ;;  %3306 = vmatprep.subr.bf16.mxu0 %v5781_v28 }
 0x2b0   : > { %3307 = vmatpush2.bf16.msra.mxu0 %v5779_v60 }
 0x2b2   : > { %3513 = vmatpush1.bf16.msra.mxu1 %v5764_v5 }
 0x2b3   : > { %3514 = vmatprep.subr.bf16.mxu1 %v5772_v30 }
 0x2b5   : > { %2396 = vmatmul.mubr.bf16.gmra.mxu1 %v5683_v22  ;;  %v8236_v22 = vmov 0  }
 0x2b6   : > { %2403 = vmatprep.mubr.bf16.mxu1 %v5688_v52  ;;  %3515 = vmatpush1.bf16.msra.mxu1 %v5770_v12 }
 0x2b7   : > { %3516 = vmatprep.subr.bf16.mxu1 %v5778_v4 }
 0x2ba   : > { %3517 = vmatpush1.bf16.msra.mxu1 %v5776_v21 }
 0x2bd   : > { %2404 = vmatmul.mubr.bf16.gmra.mxu1 %v5686_v32 }
 0x2be   : > { %2411 = vmatprep.mubr.bf16.mxu1 %v5691_v59 }
 0x2c5   : > { %2412 = vmatmul.mubr.bf16.gmra.mxu1 %v5689_v49  ;;  %v5784_v49 = vld [vmem:[%s8146_s5 + $0x174] ss:$8 sps:$4 sm:$0xff]  }
 0x2c6   : > { %2419 = vmatprep.mubr.bf16.mxu1 %v5694_v33  ;;  %3389 = vmatprep.subr.bf16.mxu0 %v5784_v49 }
 0x2cd   : > { %2420 = vmatmul.mubr.bf16.gmra.mxu1 %v5692_v27 }
 0x2ce   : > { %2427 = vmatprep.mubr.bf16.mxu1 %v5697_v56 }
 0x2d5   : > { %2428 = vmatmul.mubr.bf16.gmra.mxu1 %v5695_v48 }
 0x2d6   : > { %2435 = vmatprep.mubr.bf16.mxu1 %v5700_v36 }
 0x2dd   : > { %2436 = vmatmul.mubr.bf16.gmra.mxu1 %v5698_v35 }
 0x2de   : > { %2443 = vmatprep.mubr.bf16.mxu1 %v5703_v2 }
 0x2e5   : > { %2444 = vmatmul.mubr.bf16.gmra.mxu1 %v5701_v55 }
 0x2e6   : > { %2451 = vmatprep.mubr.bf16.mxu1 %v5706_v10 }
 0x2ed   : > { %2452 = vmatmul.mubr.bf16.gmra.mxu1 %v5704_v15 }
 0x2ee   : > { %2459 = vmatprep.mubr.bf16.mxu1 %v5709_v25 }
 0x2f5   : > { %2460 = vmatmul.mubr.bf16.gmra.mxu1 %v5707_v39 }
 0x2f6   : > { %3534 = vmatprep.mubr.bf16.mxu1 %v8236_v22 }
 0x2fd   : > { %v5034_v46 = vpop.f32.mrf.mxu1 }
 0x2ff   : > { %v5035_v52 = vpop.f32.mrf.mxu1 }
 0x300   : > { %v7192_v42 = vadd.f32 %v5035_v52, %v5034_v46 }
 0x301   : > { %v7194_v6 = vpop.f32.mrf.mxu1 }
 0x303   : > { %v7196_v9 = vpop.f32.mrf.mxu1 }
 0x305   : > { %v5040_v32 = vpop.f32.mrf.mxu1 }
 0x307   : > { %v5041_v51 = vpop.f32.mrf.mxu1 }
 0x308   : > { %v7198_v59 = vadd.f32 %v5041_v51, %v5040_v32 }
 0x309   : > { %v7200_v1 = vpop.f32.mrf.mxu1 }
 0x30b   : > { %v7202_v23 = vpop.f32.mrf.mxu1 }
 0x30d   : > { %v5046_v43 = vpop.f32.mrf.mxu1 }
 0x30f   : > { %v5047_v47 = vpop.f32.mrf.mxu1 }
 0x310   : > { %v7207_v33 = vadd.f32 %v5047_v47, %v5046_v43  ;;  %v5039_v47 = vadd.f32 %v7196_v9, %v7194_v6 }
 0x311   : > { %v7209_v11 = vpop.f32.mrf.mxu1 }
 0x313   : > { %v7211_v54 = vpop.f32.mrf.mxu1 }
 0x315   : > { %v5052_v8 = vpop.f32.mrf.mxu1 }
 0x317   : > { %v5053_v27 = vpop.f32.mrf.mxu1 }
 0x318   : > { %v7213_v41 = vadd.f32 %v5053_v27, %v5052_v8 }
 0x319   : > { %v7215_v56 = vpop.f32.mrf.mxu1 }
 0x31b   : > { %v7217_v63 = vpop.f32.mrf.mxu1 }
 0x31d   : > { %v5058_v14 = vpop.f32.mrf.mxu1 }
 0x31f   : > { %v5059_v16 = vpop.f32.mrf.mxu1 }
 0x320   : > { %v7219_v61 = vadd.f32 %v5059_v16, %v5058_v14 }
 0x321   : > { %v7221_v7 = vpop.f32.mrf.mxu1 }
 0x323   : > { %v7223_v48 = vpop.f32.mrf.mxu1 }
 0x325   : > { %v5064_v24 = vpop.f32.mrf.mxu1 }
 0x327   : > { %v5065_v36 = vpop.f32.mrf.mxu1 }
 0x328   : > { %v7225_v50 = vadd.f32 %v5065_v36, %v5064_v24 }
 0x329   : > { %v7227_v34 = vpop.f32.mrf.mxu1 }
 0x32b   : > { %v7229_v26 = vpop.f32.mrf.mxu1 }
 0x32d   : > { %v5070_v20 = vpop.f32.mrf.mxu1 }
 0x32f   : > { %v5071_v0 = vpop.f32.mrf.mxu1 }
 0x330   : > { %v7231_v58 = vadd.f32 %v5071_v0, %v5070_v20 }
 0x331   : > { %v7233_v40 = vpop.f32.mrf.mxu1 }
 0x333   : > { %v7235_v35 = vpop.f32.mrf.mxu1 }
 0x335   : > { %v5076_v53 = vpop.f32.mrf.mxu1 }
 0x337   : > { %v5077_v2 = vpop.f32.mrf.mxu1 }
 0x338   : > { %v7237_v31 = vadd.f32 %v5077_v2, %v5076_v53 }
 0x339   : > { %v7239_v37 = vpop.f32.mrf.mxu1 }
 0x33b   : > { %v7241_v19 = vpop.f32.mrf.mxu1 }
 0x33d   : > { %v5082_v17 = vpop.f32.mrf.mxu1 }
 0x33f   : > { %v5083_v13 = vpop.f32.mrf.mxu1 }
 0x340   : > { %v7243_v38 = vadd.f32 %v5083_v13, %v5082_v17 }
 0x341   : > { %v7245_v3 = vpop.f32.mrf.mxu1 }
 0x343   : > { %v7247_v55 = vpop.f32.mrf.mxu1 }
 0x345   : > { %v5088_v57 = vpop.f32.mrf.mxu1 }
 0x347   : > { %v5089_v10 = vpop.f32.mrf.mxu1 }
 0x348   : > { %v7249_v62 = vadd.f32 %v5089_v10, %v5088_v57 }
 0x349   : > { %v7251_v5 = vpop.f32.mrf.mxu1 }
 0x34b   : > { %v7253_v29 = vpop.f32.mrf.mxu1 }
 0x34d   : > { %v5094_v18 = vpop.f32.mrf.mxu1 }
 0x34f   : > { %v5095_v30 = vpop.f32.mrf.mxu1 }
 0x350   : > { %v7255_v12 = vadd.f32 %v5095_v30, %v5094_v18  ;;  %v5045_v30 = vadd.f32 %v7202_v23, %v7200_v1 }
 0x351   : > { %v5097_v45 = vpop.f32.mrf.mxu1 }
 0x353   : > { %v5098_v15 = vpop.f32.mrf.mxu1 }
 0x354   : > { %v7257_v44 = vadd.f32 %v5098_v15, %v5097_v45 }
 0x355   : > { %v5100_v25 = vpop.f32.mrf.mxu1 }
 0x357   : > { %v5101_v4 = vpop.f32.mrf.mxu1 }
 0x358   : > { %v7259_v21 = vadd.f32 %v5101_v4, %v5100_v25 }
 0x359   : > { %v5103_v28 = vpop.f32.mrf.mxu1 }
 0x35b   : > { %v5104_v60 = vpop.f32.mrf.mxu1 }
 0x35c   : > { %v7261_v39 = vadd.f32 %v5104_v60, %v5103_v28 }
 0x35d   : > { %v5122_v46 = vpop.f32.mrf.mxu1 }
 0x35f   : > { %v5123_v52 = vpop.f32.mrf.mxu1 }
 0x360   : > { %v5124_v32 = vadd.f32 %v5123_v52, %v5122_v46 }
 0x361   : > { %v5125_v51 = vpop.f32.mrf.mxu1 }
 0x362   : > { %v2468_v43 = vmax.f32 %v7192_v42, %v5124_v32 }
 0x363   : > { %v5126_v49 = vpop.f32.mrf.mxu1 }
 0x364   : > { %v5127_v8 = vadd.f32 %v5126_v49, %v5125_v51  ;;  %v2574_v16 = vrot.slane %v2468_v43, 2  ;;  %v2688_v24 = vrot.slane %v2468_v43, 4  ;;  %v2517_v42 = vrot.slane %v2468_v43, 1 }
 0x365   : > { %v5128_v27 = vpop.f32.mrf.mxu1  ;;  %v2631_v57 = vrot.slane %v2468_v43, 3 }
 0x366   : > { %v2469_v14 = vmax.f32 %v5039_v47, %v5127_v8 }
 0x367   : > { %v5129_v36 = vpop.f32.mrf.mxu1 }
 0x368   : > { %v2575_v20 = vrot.slane %v2469_v14, 2  ;;  %v2689_v0 = vrot.slane %v2469_v14, 4  ;;  %v2744_v53 = vpack.c.bf16 %v2469_v14, %v2468_v43  ;;  %v5130_v2 = vadd.f32 %v5129_v36, %v5128_v27  ;;  %v5782_v27 = vld [vmem:[%s8146_s5 + $0x170] ss:$8 sps:$4 sm:$0xff]  }
 0x369   : > { %v5131_v17 = vpop.f32.mrf.mxu1  ;;  %v2518_v13 = vrot.slane %v2469_v14, 1  ;;  %v2632_v10 = vrot.slane %v2469_v14, 3 }
 0x36a   : > { %v2470_v6 = vmax.f32 %v7198_v59, %v5130_v2  ;;  %v7268_v9 = vsel %vm2573_vm0, %v2574_v16, %v2575_v20  ;;  %v2690_v18 = vsel %vm2687_vm1, %v2688_v24, %v2689_v0  ;;  %v5787_v24 = vld [vmem:[%s8146_s5 + $0x164] ss:$8 sps:$4 sm:$0xff]   ;;  %v5051_v2 = vadd.f32 %v7211_v54, %v7209_v11  ;;  %v5790_v11 = vld [vmem:[%s8146_s5 + $0x154] ss:$8 sps:$4 sm:$0xff]  }
 0x36b   : > { %v5132_v45 = vpop.f32.mrf.mxu1  ;;  %v2519_v15 = vsel %vm2516_vm2, %v2517_v42, %v2518_v13  ;;  %v7275_v25 = vsel %vm2630_vm3, %v2631_v57, %v2632_v10  ;;  %v5785_v57 = vld [vmem:[%s8146_s5 + $0x160] ss:$8 sps:$4 sm:$0xff]  }
 0x36c   : > { %v2577_v4 = vrot.slane %v2470_v6, 2  ;;  %v2691_v28 = vrot.slane %v2470_v6, 4  ;;  %v5133_v60 = vadd.f32 %v5132_v45, %v5131_v17  ;;  %v2520_v46 = vrot.slane %v2470_v6, 1 }
 0x36d   : > { %v5134_v52 = vpop.f32.mrf.mxu1  ;;  %v2634_v59 = vrot.slane %v2470_v6, 3 }
 0x36e   : > { %v7278_v32 = vsel %vm2573_vm0, %v2575_v20, %v2577_v4  ;;  %v2692_v51 = vsel %vm2687_vm1, %v2689_v0, %v2691_v28  ;;  %v7281_v43 = vmax.f32 %v5045_v30, %v5133_v60  ;;  %v2521_v1 = vsel %vm2516_vm2, %v2518_v13, %v2520_v46 }
 0x36f   : > { %v2746_v23 = vpack.c.bf16 %v7278_v32, %v7268_v9  ;;  %v2748_v49 = vpack.c.bf16 %v2692_v51, %v2690_v18  ;;  %v5135_v47 = vpop.f32.mrf.mxu1  ;;  %v2745_v8 = vpack.c.bf16 %v2521_v1, %v2519_v15  ;;  %v7290_v14 = vsel %vm2630_vm3, %v2632_v10, %v2634_v59 }
 0x370   : > { %v5136_v16 = vadd.f32 %v5135_v47, %v5134_v52  ;;  %v2747_v36 = vpack.c.bf16 %v7290_v14, %v7275_v25  ;;  %v2522_v42 = vrot.slane %v7281_v43, 1  ;;  %v2693_v13 = vrot.slane %v7281_v43, 4  ;;  %v5788_v52 = vld [vmem:[%s8146_s5 + $0x150] ss:$8 sps:$4 sm:$0xff]  }
 0x371   : > { %v5137_v20 = vpop.f32.mrf.mxu1  ;;  %3308 = vmatprep.mubr.bf16.mxu0 %v2745_v8  ;;  %3535 = vmatmul.mubr.bf16.vlgmr.msra.gmra.mxu1 %v2748_v49  ;;  %v2579_v45 = vrot.slane %v7281_v43, 2  ;;  %v5793_v8 = vld [vmem:[%s8146_s5 + $0x144] ss:$8 sps:$4 sm:$0xff]  }
 0x372   : > { %v2472_v0 = vmax.f32 %v7207_v33, %v5136_v16  ;;  %3309 = vmatmul.mubr.bf16.vlgmr.msra.gmra.mxu0 %v2744_v53  ;;  %3544 = vmatprep.mubr.bf16.mxu1 %v8236_v22  ;;  %v2636_v53 = vrot.slane %v7281_v43, 3 }
 0x373   : > { %v5138_v17 = vpop.f32.mrf.mxu1  ;;  %3390 = vmatpush1.bf16.msra.mxu0 %v5782_v27 }
 0x374   : > { %v5139_v10 = vadd.f32 %v5138_v17, %v5137_v20  ;;  %v2523_v6 = vrot.slane %v2472_v0, 1  ;;  %v2694_v18 = vrot.slane %v2472_v0, 4  ;;  %v2749_v33 = vpack.c.bf16 %v2472_v0, %v7281_v43  ;;  %3391 = vmatprep.subr.bf16.mxu0 %v5787_v24 }
 0x375   : > { %v5140_v54 = vpop.f32.mrf.mxu1  ;;  %v2637_v30 = vrot.slane %v2472_v0, 3  ;;  %v2580_v15 = vrot.slane %v2472_v0, 2 }
 0x376   : > { %v2473_v4 = vmax.f32 %v5051_v2, %v5139_v10  ;;  %v2524_v28 = vsel %vm2516_vm2, %v2522_v42, %v2523_v6  ;;  %v2695_v60 = vsel %vm2687_vm1, %v2693_v13, %v2694_v18 }
 0x377   : > { %v5141_v46 = vpop.f32.mrf.mxu1  ;;  %3392 = vmatpush1.bf16.msra.mxu0 %v5785_v57  ;;  %v7318_v59 = vsel %vm2630_vm3, %v2636_v53, %v2637_v30  ;;  %v7321_v51 = vsel %vm2573_vm0, %v2579_v45, %v2580_v15  ;;  %v5791_v57 = vld [vmem:[%s8146_s5 + $0x140] ss:$8 sps:$4 sm:$0xff]  }
 0x378   : > { %v2582_v1 = vrot.slane %v2473_v4, 2  ;;  %v2696_v43 = vrot.slane %v2473_v4, 4  ;;  %v5142_v49 = vadd.f32 %v5141_v46, %v5140_v54  ;;  %v2525_v47 = vrot.slane %v2473_v4, 1  ;;  %3393 = vmatprep.subr.bf16.mxu0 %v5790_v11  ;;  %v5796_v11 = vld [vmem:[%s8146_s5 + $0x134] ss:$8 sps:$4 sm:$0xff]  }
 0x379   : > { %v5143_v27 = vpop.f32.mrf.mxu1  ;;  %v2639_v16 = vrot.slane %v2473_v4, 3 }
 0x37a   : > { %v7327_v24 = vmax.f32 %v7213_v41, %v5142_v49  ;;  %v2526_v20 = vsel %vm2516_vm2, %v2523_v6, %v2525_v47  ;;  %v2697_v0 = vsel %vm2687_vm1, %v2694_v18, %v2696_v43  ;;  %v7332_v2 = vsel %vm2573_vm0, %v2580_v15, %v2582_v1 }
 0x37b   : > { %v5144_v17 = vpop.f32.mrf.mxu1  ;;  %v2750_v42 = vpack.c.bf16 %v2526_v20, %v2524_v28  ;;  %v2753_v13 = vpack.c.bf16 %v2697_v0, %v2695_v60  ;;  %3394 = vmatpush1.bf16.msra.mxu0 %v5788_v52  ;;  %v7338_v10 = vsel %vm2630_vm3, %v2637_v30, %v2639_v16  ;;  %v2751_v41 = vpack.c.bf16 %v7332_v2, %v7321_v51 }
 0x37c   : > { %v5057_v6 = vadd.f32 %v7217_v63, %v7215_v56  ;;  %v5145_v18 = vadd.f32 %v5144_v17, %v5143_v27  ;;  %3395 = vmatprep.subr.bf16.mxu0 %v5793_v8  ;;  %v2752_v54 = vpack.c.bf16 %v7338_v10, %v7318_v59  ;;  %v2527_v15 = vrot.slane %v7327_v24, 1  ;;  %v5794_v63 = vld [vmem:[%s8146_s5 + $0x130] ss:$8 sps:$4 sm:$0xff]   ;;  %v5797_v17 = vld [vmem:[%s8146_s5 + $0x120] ss:$8 sps:$4 sm:$0xff]  }
 0x37d   : > { %v5146_v53 = vpop.f32.mrf.mxu1  ;;  %3318 = vmatprep.mubr.bf16.mxu0 %v2750_v42  ;;  %3545 = vmatmul.mubr.bf16.gmra.mxu1 %v2753_v13  ;;  %v2698_v56 = vrot.slane %v7327_v24, 4  ;;  %v2641_v1 = vrot.slane %v7327_v24, 3  ;;  %v2584_v49 = vrot.slane %v7327_v24, 2  ;;  %v5063_v20 = vadd.f32 %v7223_v48, %v7221_v7  ;;  %v5802_v7 = vld [vmem:[%s8146_s5 + $0x114] ss:$8 sps:$4 sm:$0xff]  }
 0x37e   : > { %v2475_v30 = vmax.f32 %v5057_v6, %v5145_v18  ;;  %3319 = vmatmul.mubr.bf16.gmra.mxu0 %v2749_v33  ;;  %3554 = vmatprep.mubr.bf16.mxu1 %v8236_v22  ;;  %v5799_v33 = vld [vmem:[%s8146_s5 + $0x124] ss:$8 sps:$4 sm:$0xff]  }
 0x37f   : > { %v5147_v45 = vpop.f32.mrf.mxu1  ;;  %3396 = vmatpush1.bf16.msra.mxu0 %v5791_v57 }
 0x380   : > { %v5148_v4 = vadd.f32 %v5147_v45, %v5146_v53  ;;  %v2528_v28 = vrot.slane %v2475_v30, 1  ;;  %v2699_v60 = vrot.slane %v2475_v30, 4  ;;  %v2754_v46 = vpack.c.bf16 %v2475_v30, %v7327_v24  ;;  %3397 = vmatprep.subr.bf16.mxu0 %v5796_v11 }
 0x381   : > { %v5149_v52 = vpop.f32.mrf.mxu1  ;;  %v2642_v43 = vrot.slane %v2475_v30, 3  ;;  %v2585_v47 = vrot.slane %v2475_v30, 2 }
 0x382   : > { %v2476_v8 = vmax.f32 %v7219_v61, %v5148_v4  ;;  %v2529_v27 = vsel %vm2516_vm2, %v2527_v15, %v2528_v28  ;;  %v2700_v16 = vsel %vm2687_vm1, %v2698_v56, %v2699_v60  ;;  %v5800_v4 = vld [vmem:[%s8146_s5 + $0x110] ss:$8 sps:$4 sm:$0xff]  }
 0x383   : > { %v5150_v0 = vpop.f32.mrf.mxu1  ;;  %3398 = vmatpush1.bf16.msra.mxu0 %v5794_v63  ;;  %v7370_v42 = vsel %vm2630_vm3, %v2641_v1, %v2642_v43  ;;  %v7373_v24 = vsel %vm2573_vm0, %v2584_v49, %v2585_v47 }
 0x384   : > { %v2587_v61 = vrot.slane %v2476_v8, 2  ;;  %v2701_v13 = vrot.slane %v2476_v8, 4  ;;  %v5151_v57 = vadd.f32 %v5150_v0, %v5149_v52  ;;  %v2530_v6 = vrot.slane %v2476_v8, 1  ;;  %3399 = vmatprep.subr.bf16.mxu0 %v5799_v33 }
 0x385   : > { %v5152_v48 = vpop.f32.mrf.mxu1  ;;  %v2644_v18 = vrot.slane %v2476_v8, 3 }
 0x386   : > { %v7378_v11 = vmax.f32 %v5063_v20, %v5151_v57  ;;  %v2531_v53 = vsel %vm2516_vm2, %v2528_v28, %v2530_v6  ;;  %v2702_v30 = vsel %vm2687_vm1, %v2699_v60, %v2701_v13  ;;  %v7383_v45 = vsel %vm2573_vm0, %v2585_v47, %v2587_v61  ;;  %v5805_v60 = vld [vmem:[%s8146_s5 + $0x104] ss:$8 sps:$4 sm:$0xff]   ;;  %v5803_v20 = vld [vmem:[%s8146_s5 + $0x100] ss:$8 sps:$4 sm:$0xff]  }
 0x387   : > { %v5153_v15 = vpop.f32.mrf.mxu1  ;;  %v2755_v56 = vpack.c.bf16 %v2531_v53, %v2529_v27  ;;  %v2758_v63 = vpack.c.bf16 %v2702_v30, %v2700_v16  ;;  %3400 = vmatpush1.bf16.msra.mxu0 %v5797_v17  ;;  %v7389_v33 = vsel %vm2630_vm3, %v2642_v43, %v2644_v18  ;;  %v2756_v52 = vpack.c.bf16 %v7383_v45, %v7373_v24  ;;  %v5806_v30 = vld [vmem:[%s8146_s5 + $0x1f0] ss:$8 sps:$4 sm:$0xff]  }
 0x388   : > { %v5154_v28 = vadd.f32 %v5153_v15, %v5152_v48  ;;  %3401 = vmatprep.subr.bf16.mxu0 %v5802_v7  ;;  %v2757_v1 = vpack.c.bf16 %v7389_v33, %v7370_v42  ;;  %v5069_v43 = vadd.f32 %v7229_v26, %v7227_v34  ;;  %v2532_v27 = vrot.slane %v7378_v11, 1  ;;  %v5808_v34 = vld [vmem:[%s8146_s5 + $0x1f4] ss:$8 sps:$4 sm:$0xff]  }
 0x389   : > { %v5155_v49 = vpop.f32.mrf.mxu1  ;;  %3328 = vmatprep.mubr.bf16.mxu0 %v2755_v56  ;;  %3555 = vmatmul.mubr.bf16.gmra.mxu1 %v2758_v63  ;;  %v2703_v16 = vrot.slane %v7378_v11, 4  ;;  %v2589_v57 = vrot.slane %v7378_v11, 2 }
 0x38a   : > { %v2478_v47 = vmax.f32 %v7225_v50, %v5154_v28  ;;  %3329 = vmatmul.mubr.bf16.gmra.mxu0 %v2754_v46  ;;  %3564 = vmatprep.mubr.bf16.mxu1 %v8236_v22  ;;  %v2646_v46 = vrot.slane %v7378_v11, 3 }
 0x38b   : > { %v5156_v8 = vpop.f32.mrf.mxu1  ;;  %3402 = vmatpush1.bf16.msra.mxu0 %v5800_v4 }
 0x38c   : > { %v5157_v0 = vadd.f32 %v5156_v8, %v5155_v49  ;;  %v2533_v17 = vrot.slane %v2478_v47, 1  ;;  %v2704_v61 = vrot.slane %v2478_v47, 4  ;;  %v2759_v50 = vpack.c.bf16 %v2478_v47, %v7378_v11  ;;  %3403 = vmatprep.subr.bf16.mxu0 %v5805_v60  ;;  %v5811_v60 = vld [vmem:[%s8146_s5 + $0x1e4] ss:$8 sps:$4 sm:$0xff]  }
 0x38d   : > { %v5158_v26 = vpop.f32.mrf.mxu1  ;;  %v2647_v13 = vrot.slane %v2478_v47, 3  ;;  %v2590_v6 = vrot.slane %v2478_v47, 2 }
 0x38e   : > { %v2479_v7 = vmax.f32 %v5069_v43, %v5157_v0  ;;  %v2534_v48 = vsel %vm2516_vm2, %v2532_v27, %v2533_v17  ;;  %v2705_v18 = vsel %vm2687_vm1, %v2703_v16, %v2704_v61 }
 0x38f   : > { %v5159_v53 = vpop.f32.mrf.mxu1  ;;  %3404 = vmatpush1.bf16.msra.mxu0 %v5803_v20  ;;  %v7419_v15 = vsel %vm2630_vm3, %v2646_v46, %v2647_v13  ;;  %v7422_v56 = vsel %vm2573_vm0, %v2589_v57, %v2590_v6  ;;  %v5814_v57 = vld [vmem:[%s8146_s5 + $0x1d4] ss:$8 sps:$4 sm:$0xff]  }
 0x390   : > { %v2592_v63 = vrot.slane %v2479_v7, 2  ;;  %v2706_v11 = vrot.slane %v2479_v7, 4  ;;  %v5160_v4 = vadd.f32 %v5159_v53, %v5158_v26  ;;  %v2535_v28 = vrot.slane %v2479_v7, 1  ;;  %3405 = vmatprep.subr.bf16.mxu0 %v5808_v34  ;;  %v5809_v34 = vld [vmem:[%s8146_s5 + $0x1e0] ss:$8 sps:$4 sm:$0xff]  }
 0x391   : > { %v5161_v49 = vpop.f32.mrf.mxu1  ;;  %v2649_v47 = vrot.slane %v2479_v7, 3 }
 0x392   : > { %v7428_v43 = vmax.f32 %v7231_v58, %v5160_v4  ;;  %v2536_v8 = vsel %vm2516_vm2, %v2533_v17, %v2535_v28  ;;  %v2707_v27 = vsel %vm2687_vm1, %v2704_v61, %v2706_v11  ;;  %v7433_v16 = vsel %vm2573_vm0, %v2590_v6, %v2592_v63 }
 0x393   : > { %v5162_v20 = vpop.f32.mrf.mxu1  ;;  %v2760_v0 = vpack.c.bf16 %v2536_v8, %v2534_v48  ;;  %v2763_v26 = vpack.c.bf16 %v2707_v27, %v2705_v18  ;;  %3406 = vmatpush2.bf16.msra.mxu0 %v5806_v30  ;;  %v7439_v46 = vsel %vm2630_vm3, %v2647_v13, %v2649_v47  ;;  %v2761_v58 = vpack.c.bf16 %v7433_v16, %v7422_v56 }
 0x394   : > { %v5075_v17 = vadd.f32 %v7235_v35, %v7233_v40  ;;  %v5163_v61 = vadd.f32 %v5162_v20, %v5161_v49  ;;  %3407 = vmatprep.subr.bf16.mxu0 %v5811_v60  ;;  %v2762_v6 = vpack.c.bf16 %v7439_v46, %v7419_v15  ;;  %v2537_v18 = vrot.slane %v7428_v43, 1  ;;  %v5812_v35 = vld [vmem:[%s8146_s5 + $0x1d0] ss:$8 sps:$4 sm:$0xff]  }
 0x395   : > { %v5164_v7 = vpop.f32.mrf.mxu1  ;;  %3338 = vmatprep.mubr.bf16.mxu0 %v2760_v0  ;;  %3565 = vmatmul.mubr.bf16.gmra.mxu1 %v2763_v26  ;;  %v2708_v40 = vrot.slane %v7428_v43, 4  ;;  %v2651_v28 = vrot.slane %v7428_v43, 3  ;;  %v2594_v49 = vrot.slane %v7428_v43, 2  ;;  %v5081_v0 = vadd.f32 %v7241_v19, %v7239_v37  ;;  %v5820_v37 = vld [vmem:[%s8146_s5 + $0x1b4] ss:$8 sps:$4 sm:$0xff]  }
 0x396   : > { %v2481_v13 = vmax.f32 %v5075_v17, %v5163_v61  ;;  %3339 = vmatmul.mubr.bf16.gmra.mxu0 %v2759_v50  ;;  %3574 = vmatprep.mubr.bf16.mxu1 %v8236_v22  ;;  %v5817_v50 = vld [vmem:[%s8146_s5 + $0x1c4] ss:$8 sps:$4 sm:$0xff]  }
 0x397   : > { %v5165_v48 = vpop.f32.mrf.mxu1  ;;  %3408 = vmatpush2.bf16.msra.mxu0 %v5809_v34  ;;  %v5815_v34 = vld [vmem:[%s8146_s5 + $0x1c0] ss:$8 sps:$4 sm:$0xff]  }
 0x398   : > { %v5166_v53 = vadd.f32 %v5165_v48, %v5164_v7  ;;  %v2538_v30 = vrot.slane %v2481_v13, 1  ;;  %v2709_v63 = vrot.slane %v2481_v13, 4  ;;  %v2764_v11 = vpack.c.bf16 %v2481_v13, %v7428_v43  ;;  %3409 = vmatprep.subr.bf16.mxu0 %v5814_v57 }
 0x399   : > { %v5167_v4 = vpop.f32.mrf.mxu1  ;;  %v2652_v60 = vrot.slane %v2481_v13, 3  ;;  %v2595_v47 = vrot.slane %v2481_v13, 2 }
 0x39a   : > { %v2482_v8 = vmax.f32 %v7237_v31, %v5166_v53  ;;  %v2539_v27 = vsel %vm2516_vm2, %v2537_v18, %v2538_v30  ;;  %v2710_v20 = vsel %vm2687_vm1, %v2708_v40, %v2709_v63 }
 0x39b   : > { %v5168_v26 = vpop.f32.mrf.mxu1  ;;  %3410 = vmatpush2.bf16.msra.mxu0 %v5812_v35  ;;  %v7471_v17 = vsel %vm2630_vm3, %v2651_v28, %v2652_v60  ;;  %v7474_v43 = vsel %vm2573_vm0, %v2594_v49, %v2595_v47 }
 0x39c   : > { %v2597_v31 = vrot.slane %v2482_v8, 2  ;;  %v2711_v61 = vrot.slane %v2482_v8, 4  ;;  %v5169_v57 = vadd.f32 %v5168_v26, %v5167_v4  ;;  %v2540_v7 = vrot.slane %v2482_v8, 1  ;;  %3411 = vmatprep.subr.bf16.mxu0 %v5817_v50  ;;  %v5818_v50 = vld [vmem:[%s8146_s5 + $0x1b0] ss:$8 sps:$4 sm:$0xff]  }
 0x39d   : > { %v5170_v19 = vpop.f32.mrf.mxu1  ;;  %v2654_v13 = vrot.slane %v2482_v8, 3 }
 0x39e   : > { %v7479_v48 = vmax.f32 %v5081_v0, %v5169_v57  ;;  %v2541_v18 = vsel %vm2516_vm2, %v2538_v30, %v2540_v7  ;;  %v2712_v40 = vsel %vm2687_vm1, %v2709_v63, %v2711_v61  ;;  %v7484_v35 = vsel %vm2573_vm0, %v2595_v47, %v2597_v31  ;;  %v5823_v63 = vld [vmem:[%s8146_s5 + $0x1a4] ss:$8 sps:$4 sm:$0xff]   ;;  %v5821_v31 = vld [vmem:[%s8146_s5 + $0x1a0] ss:$8 sps:$4 sm:$0xff]  }
 0x39f   : > { %v5171_v53 = vpop.f32.mrf.mxu1  ;;  %v2765_v28 = vpack.c.bf16 %v2541_v18, %v2539_v27  ;;  %v2768_v4 = vpack.c.bf16 %v2712_v40, %v2710_v20  ;;  %3412 = vmatpush2.bf16.msra.mxu0 %v5815_v34  ;;  %v7490_v49 = vsel %vm2630_vm3, %v2652_v60, %v2654_v13  ;;  %v5087_v60 = vadd.f32 %v7247_v55, %v7245_v3  ;;  %v5826_v3 = vld [vmem:[%s8146_s5 + $0x194] ss:$8 sps:$4 sm:$0xff]  }
 0x3a0   : > { %v5172_v30 = vadd.f32 %v5171_v53, %v5170_v19  ;;  %3413 = vmatprep.subr.bf16.mxu0 %v5820_v37  ;;  %v2542_v26 = vrot.slane %v7479_v48, 1  ;;  %v2713_v34 = vrot.slane %v7479_v48, 4  ;;  %v2599_v19 = vrot.slane %v7479_v48, 2 }
 0x3a1   : > { %v5173_v27 = vpop.f32.mrf.mxu1  ;;  %3348 = vmatprep.mubr.bf16.mxu0 %v2765_v28  ;;  %3575 = vmatmul.mubr.bf16.gmra.mxu1 %v2768_v4  ;;  %v5824_v4 = vld [vmem:[%s8146_s5 + $0x190] ss:$8 sps:$4 sm:$0xff]   ;;  %v8237_v9 = vpack.c.bf16 %v7490_v49, %v7471_v17  ;;  %v8238_v25 = vpack.c.bf16 %v7484_v35, %v7474_v43 }
 0x3a2   : > { %v2484_v20 = vmax.f32 %v7243_v38, %v5172_v30  ;;  %3349 = vmatmul.mubr.bf16.gmra.mxu0 %v2764_v11  ;;  %3584 = vmatprep.mubr.bf16.mxu1 %v8236_v22  ;;  %v2656_v11 = vrot.slane %v7479_v48, 3 }
 0x3a3   : > { %v5174_v0 = vpop.f32.mrf.mxu1  ;;  %3414 = vmatpush2.bf16.msra.mxu0 %v5818_v50 }
 0x3a4   : > { %v5175_v61 = vadd.f32 %v5174_v0, %v5173_v27  ;;  %v2543_v57 = vrot.slane %v2484_v20, 1  ;;  %v2714_v7 = vrot.slane %v2484_v20, 4  ;;  %v2769_v38 = vpack.c.bf16 %v2484_v20, %v7479_v48  ;;  %3415 = vmatprep.subr.bf16.mxu0 %v5823_v63 }
 0x3a5   : > { %v5176_v55 = vpop.f32.mrf.mxu1  ;;  %v2657_v37 = vrot.slane %v2484_v20, 3  ;;  %v2600_v13 = vrot.slane %v2484_v20, 2 }
 0x3a6   : > { %v2485_v18 = vmax.f32 %v5087_v60, %v5175_v61  ;;  %v2544_v40 = vsel %vm2516_vm2, %v2542_v26, %v2543_v57  ;;  %v2715_v53 = vsel %vm2687_vm1, %v2713_v34, %v2714_v7  ;;  %v5829_v60 = vld [vmem:[%s8146_s5 + $0x184] ss:$8 sps:$4 sm:$0xff]  }
 0x3a7   : > { %v5177_v28 = vpop.f32.mrf.mxu1  ;;  %3416 = vmatpush2.bf16.msra.mxu0 %v5821_v31  ;;  %v7520_v50 = vsel %vm2630_vm3, %v2656_v11, %v2657_v37  ;;  %v7523_v30 = vsel %vm2573_vm0, %v2599_v19, %v2600_v13 }
 0x3a8   : > { %v2602_v63 = vrot.slane %v2485_v18, 2  ;;  %v2716_v48 = vrot.slane %v2485_v18, 4  ;;  %v5178_v27 = vadd.f32 %v5177_v28, %v5176_v55  ;;  %v2545_v20 = vrot.slane %v2485_v18, 1  ;;  %3417 = vmatprep.subr.bf16.mxu0 %v5826_v3  ;;  %v5827_v3 = vld [vmem:[%s8146_s5 + $0x180] ss:$8 sps:$4 sm:$0xff]  }
 0x3a9   : > { %v5179_v0 = vpop.f32.mrf.mxu1  ;;  %v2659_v26 = vrot.slane %v2485_v18, 3 }
 0x3aa   : > { %v2486_v34 = vmax.f32 %v7249_v62, %v5178_v27  ;;  %v2546_v31 = vsel %vm2516_vm2, %v2543_v57, %v2545_v20  ;;  %v2717_v61 = vsel %vm2687_vm1, %v2714_v7, %v2716_v48  ;;  %v7532_v11 = vsel %vm2573_vm0, %v2600_v13, %v2602_v63 }
 0x3ab   : > { %v5180_v19 = vpop.f32.mrf.mxu1  ;;  %v2770_v8 = vpack.c.bf16 %v2546_v31, %v2544_v40  ;;  %v2773_v55 = vpack.c.bf16 %v2717_v61, %v2715_v53  ;;  %3418 = vmatpush2.bf16.msra.mxu0 %v5824_v4  ;;  %v7538_v28 = vsel %vm2630_vm3, %v2657_v37, %v2659_v26  ;;  %v5093_v57 = vadd.f32 %v7253_v29, %v7251_v5 }
 0x3ac   : > { %v5181_v7 = vadd.f32 %v5180_v19, %v5179_v0  ;;  %3419 = vmatprep.subr.bf16.mxu0 %v5829_v60  ;;  %v2547_v53 = vrot.slane %v2486_v34, 1  ;;  %v2718_v4 = vrot.slane %v2486_v34, 4  ;;  %v2661_v20 = vrot.slane %v2486_v34, 3 }
 0x3ad   : > { %v5182_v18 = vpop.f32.mrf.mxu1  ;;  %3358 = vmatprep.mubr.bf16.mxu0 %v2770_v8  ;;  %3585 = vmatmul.mubr.bf16.gmra.mxu1 %v2773_v55  ;;  %v2604_v0 = vrot.slane %v2486_v34, 2  ;;  %v8239_v32 = vpack.c.bf16 %v7538_v28, %v7520_v50 }
 0x3ae   : > { %v2487_v40 = vmax.f32 %v5093_v57, %v5181_v7  ;;  %3359 = vmatmul.mubr.bf16.gmra.mxu0 %v2769_v38  ;;  %3594 = vmatprep.mubr.bf16.mxu1 %v8236_v22 }
 0x3af   : > { %v5183_v37 = vpop.f32.mrf.mxu1  ;;  %3420 = vmatpush2.bf16.msra.mxu0 %v5827_v3 }
 0x3b0   : > { %v5184_v63 = vadd.f32 %v5183_v37, %v5182_v18  ;;  %v2548_v48 = vrot.slane %v2487_v40, 1  ;;  %v2719_v27 = vrot.slane %v2487_v40, 4  ;;  %v2774_v5 = vpack.c.bf16 %v2487_v40, %v2486_v34 }
 0x3b1   : > { %v5185_v29 = vpop.f32.mrf.mxu1  ;;  %v2662_v60 = vrot.slane %v2487_v40, 3  ;;  %v2605_v26 = vrot.slane %v2487_v40, 2 }
 0x3b2   : > { %v2488_v8 = vmax.f32 %v7255_v12, %v5184_v63  ;;  %v2549_v31 = vsel %vm2516_vm2, %v2547_v53, %v2548_v48  ;;  %v2720_v38 = vsel %vm2687_vm1, %v2718_v4, %v2719_v27 }
 0x3b3   : > { %v5186_v61 = vpop.f32.mrf.mxu1  ;;  %v7551_v19 = vsel %vm2630_vm3, %v2661_v20, %v2662_v60  ;;  %v7554_v55 = vsel %vm2573_vm0, %v2604_v0, %v2605_v26 }
 0x3b4   : > { %v2607_v3 = vrot.slane %v2488_v8, 2  ;;  %v2721_v57 = vrot.slane %v2488_v8, 4  ;;  %v5187_v7 = vadd.f32 %v5186_v61, %v5185_v29  ;;  %v2550_v18 = vrot.slane %v2488_v8, 1 }
 0x3b5   : > { %v5188_v37 = vpop.f32.mrf.mxu1  ;;  %v2664_v34 = vrot.slane %v2488_v8, 3 }
 0x3b6   : > { %v2489_v40 = vmax.f32 %v7257_v44, %v5187_v7  ;;  %v2551_v12 = vsel %vm2516_vm2, %v2548_v48, %v2550_v18  ;;  %v2722_v53 = vsel %vm2687_vm1, %v2719_v27, %v2721_v57  ;;  %v2608_v4 = vsel %vm2573_vm0, %v2605_v26, %v2607_v3 }
 0x3b7   : > { %v5189_v63 = vpop.f32.mrf.mxu1  ;;  %v2775_v20 = vpack.c.bf16 %v2551_v12, %v2549_v31  ;;  %v2778_v62 = vpack.c.bf16 %v2722_v53, %v2720_v38  ;;  %v2665_v0 = vsel %vm2630_vm3, %v2662_v60, %v2664_v34  ;;  %v2776_v13 = vpack.c.bf16 %v2608_v4, %v7554_v55 }
 0x3b8   : > { %v5190_v47 = vadd.f32 %v5189_v63, %v5188_v37  ;;  %v2777_v29 = vpack.c.bf16 %v2665_v0, %v7551_v19  ;;  %v2552_v27 = vrot.slane %v2489_v40, 1  ;;  %v2723_v26 = vrot.slane %v2489_v40, 4 }
 0x3b9   : > { %v5191_v61 = vpop.f32.mrf.mxu1  ;;  %3368 = vmatprep.mubr.bf16.mxu0 %v2775_v20  ;;  %3595 = vmatmul.mubr.bf16.gmra.mxu1 %v2778_v62  ;;  %v2666_v3 = vrot.slane %v2489_v40, 3  ;;  %v2609_v57 = vrot.slane %v2489_v40, 2 }
 0x3ba   : > { %v2490_v44 = vmax.f32 %v7259_v21, %v5190_v47  ;;  %3369 = vmatmul.mubr.bf16.gmra.mxu0 %v2774_v5  ;;  %3604 = vmatprep.mubr.bf16.mxu1 %v8236_v22 }
 0x3bb   : > { %v5192_v48 = vpop.f32.mrf.mxu1 }
 0x3bc   : > { %v5193_v8 = vadd.f32 %v5192_v48, %v5191_v61  ;;  %v2553_v31 = vrot.slane %v2490_v44, 1  ;;  %v2724_v38 = vrot.slane %v2490_v44, 4  ;;  %v2779_v60 = vpack.c.bf16 %v2490_v44, %v2489_v40 }
 0x3bd   : > { %v2667_v55 = vrot.slane %v2490_v44, 3  ;;  %v2610_v7 = vrot.slane %v2490_v44, 2 }
 0x3be   : > { %v2491_v19 = vmax.f32 %v7261_v39, %v5193_v8  ;;  %v2554_v62 = vsel %vm2516_vm2, %v2552_v27, %v2553_v31  ;;  %v2725_v21 = vsel %vm2687_vm1, %v2723_v26, %v2724_v38 }
 0x3bf   : > { %v2668_v47 = vsel %vm2630_vm3, %v2666_v3, %v2667_v55  ;;  %v2611_v22 = vsel %vm2573_vm0, %v2609_v57, %v2610_v7 }
 0x3c0   : > { %v2612_v5 = vrot.slane %v2491_v19, 2  ;;  %v2726_v18 = vrot.slane %v2491_v19, 4  ;;  %v2555_v37 = vrot.slane %v2491_v19, 1  ;;  %v2669_v34 = vrot.slane %v2491_v19, 3 }
 0x3c2   : > { %v2556_v12 = vsel %vm2516_vm2, %v2553_v31, %v2555_v37  ;;  %v2727_v53 = vsel %vm2687_vm1, %v2724_v38, %v2726_v18  ;;  %v2670_v40 = vsel %vm2630_vm3, %v2667_v55, %v2669_v34  ;;  %v2613_v39 = vsel %vm2573_vm0, %v2610_v7, %v2612_v5  ;;  %v2864_v55 = vld [vmem:[%s8147_s6] sm:$0x3] }
 0x3c3   : > { %v2780_v4 = vpack.c.bf16 %v2556_v12, %v2554_v62  ;;  %v2783_v63 = vpack.c.bf16 %v2727_v53, %v2725_v21  ;;  %v2782_v20 = vpack.c.bf16 %v2670_v40, %v2668_v47  ;;  %v2781_v0 = vpack.c.bf16 %v2613_v39, %v2611_v22  ;;  %v8241_v62 = vld [vmem:[#allocation10_spill] sm:$0xff] }
 0x3c4   : > { %v8242_v21 = vsub.s32 0, %v8241_v62  ;;  %v8243_v18 = vsub.s32 1, %v8241_v62 }
 0x3c5   : > { %3378 = vmatprep.mubr.bf16.mxu0 %v2780_v4  ;;  %3605 = vmatmul.mubr.bf16.gmra.mxu1 %v2783_v63 }
 0x3c6   : > { %3379 = vmatmul.mubr.bf16.gmra.mxu0 %v2779_v60  ;;  %v7685_v47 = vrot.slane %v2864_v55, %v8242_v21  ;;  %v7693_v37 = vrot.slane %v2864_v55, %v8243_v18 }
 0x3c7   : > { %3421 = vmatprep.mubr.bf16.mxu0 %v2747_v36 }
 0x3ce   : > { %3422 = vmatmul.mubr.bf16.vlgmr.msra.gmra.mxu0 %v2746_v23  ;;  %v8240_v23 = vpack.c.bf16 %v7532_v11, %v7523_v30 }
 0x3cf   : > { %3431 = vmatprep.mubr.bf16.mxu0 %v2752_v54 }
 0x3d6   : > { %3432 = vmatmul.mubr.bf16.gmra.mxu0 %v2751_v41 }
 0x3d7   : > { %3441 = vmatprep.mubr.bf16.mxu0 %v2757_v1  ;;  %v8170_v1 = vmov 0.0  }
 0x3d8   : > { %5279 = vmatprep.subr.bf16.mxu0 %v8170_v1  ;;  %5307 = vmatprep.subr.bf16.mxu1 %v8170_v1 }
 0x3d9   : > { %5323 = vmatprep.mubr.msk.bf16.mxu1 %vm5956_vm4, %v8170_v1 }
 0x3de   : > { %3442 = vmatmul.mubr.bf16.gmra.mxu0 %v2756_v52 }
 0x3df   : > { %3451 = vmatprep.mubr.bf16.mxu0 %v2762_v6 }
 0x3e6   : > { %3452 = vmatmul.mubr.bf16.gmra.mxu0 %v2761_v58 }
 0x3e7   : > { %3461 = vmatprep.mubr.bf16.mxu0 %v8237_v9 }
 0x3ee   : > { %3462 = vmatmul.mubr.bf16.gmra.mxu0 %v8238_v25 }
 0x3ef   : > { %3471 = vmatprep.mubr.bf16.mxu0 %v8239_v32 }
 0x3f6   : > { %3472 = vmatmul.mubr.bf16.gmra.mxu0 %v8240_v23 }
 0x3f7   : > { %3481 = vmatprep.mubr.bf16.mxu0 %v2777_v29 }
 0x3fe   : > { %3482 = vmatmul.mubr.bf16.gmra.mxu0 %v2776_v13 }
 0x3ff   : > { %3491 = vmatprep.mubr.bf16.mxu0 %v2782_v20 }
 0x406   : > { %3492 = vmatmul.mubr.bf16.gmra.mxu0 %v2781_v0 }
 0x407   : > { %5295 = vmatprep.mubr.msk.bf16.mxu0 %vm5956_vm4, %v8170_v1 }
 0x431   : > { %v3536_v16 = vpop.f32.mrf.mxu1 }
 0x432   : > { %v3310_v14 = vpop.f32.mrf.mxu0 }
 0x433   : > { %v3538_v6 = vpop.f32.mrf.mxu1  ;;  %v3311_v12 = vadd.f32 %v3310_v14, %v7685_v47 }
 0x434   : > { %v3312_v36 = vpop.f32.mrf.mxu0 }
 0x435   : > { %v3540_v43 = vpop.f32.mrf.mxu1  ;;  %v3313_v39 = vadd.f32 %v3312_v36, %v7693_v37 }
 0x436   : > { %v3314_v59 = vpop.f32.mrf.mxu0 }
 0x437   : > { %v3542_v49 = vpop.f32.mrf.mxu1  ;;  %v3315_v20 = vadd.f32 %v3314_v59, %v7685_v47 }
 0x438   : > { %v3316_v51 = vpop.f32.mrf.mxu0 }
 0x439   : > { %v3317_v23 = vadd.f32 %v3316_v51, %v7693_v37 }
 0x43d   : > { %v3546_v30 = vpop.f32.mrf.mxu1 }
 0x43e   : > { %v7610_v2 = vpop.f32.mrf.mxu0 }
 0x43f   : > { %v3548_v13 = vpop.f32.mrf.mxu1  ;;  %v3321_v14 = vadd.f32 %v7610_v2, %v7685_v47 }
 0x440   : > { %v7612_v10 = vpop.f32.mrf.mxu0 }
 0x441   : > { %v7654_v61 = vpop.f32.mrf.mxu1 }
 0x442   : > { %v7614_v41 = vpop.f32.mrf.mxu0 }
 0x443   : > { %v7658_v48 = vpop.f32.mrf.mxu1  ;;  %v3325_v51 = vadd.f32 %v7614_v41, %v7685_v47 }
 0x444   : > { %v7616_v54 = vpop.f32.mrf.mxu0 }
 0x449   : > { %v7662_v26 = vpop.f32.mrf.mxu1 }
 0x44a   : > { %v7618_v42 = vpop.f32.mrf.mxu0 }
 0x44b   : > { %v7666_v31 = vpop.f32.mrf.mxu1 }
 0x44c   : > { %v7620_v24 = vpop.f32.mrf.mxu0 }
 0x44d   : > { %v7670_v60 = vpop.f32.mrf.mxu1 }
 0x44e   : > { %v7622_v45 = vpop.f32.mrf.mxu0 }
 0x44f   : > { %v7679_v7 = vpop.f32.mrf.mxu1 }
 0x450   : > { %v7624_v33 = vpop.f32.mrf.mxu0 }
 0x455   : > { %v7687_v22 = vpop.f32.mrf.mxu1 }
 0x456   : > { %v7626_v52 = vpop.f32.mrf.mxu0 }
 0x457   : > { %v7698_v53 = vpop.f32.mrf.mxu1 }
 0x458   : > { %v7630_v15 = vpop.f32.mrf.mxu0 }
 0x459   : > { %v7702_v25 = vpop.f32.mrf.mxu1 }
 0x45a   : > { %v7632_v56 = vpop.f32.mrf.mxu0 }
 0x45c   : > { %v7634_v46 = vpop.f32.mrf.mxu0 }
 0x462   : > { %v7636_v58 = vpop.f32.mrf.mxu0 }
 0x464   : > { %v7638_v17 = vpop.f32.mrf.mxu0 }
 0x466   : > { %v7640_v35 = vpop.f32.mrf.mxu0 }
 0x468   : > { %v7642_v50 = vpop.f32.mrf.mxu0 }
 0x46e   : > { %v7644_v11 = vpop.f32.mrf.mxu0 }
 0x470   : > { %v7646_v28 = vpop.f32.mrf.mxu0 }
 0x472   : > { %v7648_v29 = vpop.f32.mrf.mxu0 }
 0x474   : > { %v7656_v44 = vpop.f32.mrf.mxu0 }
 0x47a   : > { %v7660_v27 = vpop.f32.mrf.mxu0 }
 0x47c   : > { %v7664_v8 = vpop.f32.mrf.mxu0 }
 0x47e   : > { %v7668_v38 = vpop.f32.mrf.mxu0 }
 0x480   : > { %v7672_v3 = vpop.f32.mrf.mxu0 }
 0x486   : > { %v7677_v57 = vpop.f32.mrf.mxu0 }
 0x488   : > { %v7681_v19 = vpop.f32.mrf.mxu0 }
 0x48a   : > { %v7689_v5 = vpop.f32.mrf.mxu0 }
 0x48c   : > { %v7695_v34 = vpop.f32.mrf.mxu0 }
 0x48e   : > { %v3423_v40 = vpop.f32.mrf.mxu0 }
 0x48f   : > { %v3424_v4 = vadd.f32 %v3423_v40, %v3311_v12  ;;  %v7707_v40 = vpop.f32.mrf.mxu1 }
 0x490   : > { %v3425_v63 = vpop.f32.mrf.mxu0 }
 0x491   : > { %v3537_v0 = vadd.f32 %v3536_v16, %v3424_v4  ;;  %v3426_v9 = vadd.f32 %v3425_v63, %v3313_v39  ;;  %v3323_v16 = vadd.f32 %v7612_v10, %v7693_v37 }
 0x492   : > { %v3427_v32 = vpop.f32.mrf.mxu0 }
 0x493   : > { %v3539_v55 = vadd.f32 %v3538_v6, %v3426_v9  ;;  %v3428_v62 = vadd.f32 %v3427_v32, %v3315_v20  ;;  %v3615_v18 = vmax.f32 %v3537_v0, 0.0  ;;  %v7713_v6 = vpop.f32.mrf.mxu1 }
 0x494   : > { %v3429_v21 = vpop.f32.mrf.mxu0 }
 0x495   : > { %v3616_v1 = vmax.f32 %v3539_v55, 0.0  ;;  %v3541_v36 = vadd.f32 %v3540_v43, %v3428_v62  ;;  %v3430_v12 = vadd.f32 %v3429_v21, %v3317_v23  ;;  %v3327_v23 = vadd.f32 %v7616_v54, %v7693_v37 }
 0x496   : > { %v3433_v59 = vpop.f32.mrf.mxu0  ;;  %v3333_v54 = vadd.f32 %v7620_v24, %v7693_v37 }
 0x497   : > { %v3647_v39 = vmax.f32 %v3615_v18, %v3616_v1  ;;  %v3543_v4 = vadd.f32 %v3542_v49, %v3430_v12  ;;  %v3434_v63 = vadd.f32 %v3433_v59, %v3321_v14  ;;  %v3617_v20 = vmax.f32 %v3541_v36, 0.0  ;;  %v7719_v49 = vpop.f32.mrf.mxu1 }
 0x498   : > { %v3435_v2 = vpop.f32.mrf.mxu0  ;;  %v3331_v1 = vadd.f32 %v7618_v42, %v7685_v47  ;;  %v3335_v42 = vadd.f32 %v7622_v45, %v7685_v47 }
 0x499   : > { %v3618_v0 = vmax.f32 %v3543_v4, 0.0  ;;  %v3547_v9 = vadd.f32 %v3546_v30, %v3434_v63  ;;  %v3436_v43 = vadd.f32 %v3435_v2, %v3323_v16  ;;  %v7729_v4 = vpop.f32.mrf.mxu1 }
 0x49a   : > { %v3437_v32 = vpop.f32.mrf.mxu0 }
 0x49b   : > { %v3648_v55 = vmax.f32 %v3617_v20, %v3618_v0  ;;  %v3549_v62 = vadd.f32 %v3548_v13, %v3436_v43  ;;  %v3438_v10 = vadd.f32 %v3437_v32, %v3325_v51  ;;  %v3619_v41 = vmax.f32 %v3547_v9, 0.0  ;;  %v3582_v45 = vpop.f32.mrf.mxu1 }
 0x49c   : > { %v3439_v14 = vpop.f32.mrf.mxu0  ;;  %v3337_v0 = vadd.f32 %v7624_v33, %v7693_v37  ;;  %v3341_v43 = vadd.f32 %v7626_v52, %v7685_v47  ;;  %v3343_v33 = vadd.f32 %v7630_v15, %v7693_v37  ;;  %v3345_v52 = vadd.f32 %v7632_v56, %v7685_v47 }
 0x49d   : > { %v7721_v21 = vpack.c.bf16 %v3648_v55, %v3647_v39  ;;  %v3620_v18 = vmax.f32 %v3549_v62, 0.0  ;;  %v3551_v30 = vadd.f32 %v7654_v61, %v3438_v10  ;;  %v3440_v36 = vadd.f32 %v3439_v14, %v3327_v23 }
 0x49e   : > { %v3443_v12 = vpop.f32.mrf.mxu0 }
 0x49f   : > { %v3649_v59 = vmax.f32 %v3619_v41, %v3620_v18  ;;  %v3553_v13 = vadd.f32 %v7658_v48, %v3440_v36  ;;  %v3444_v16 = vadd.f32 %v3443_v12, %v3331_v1  ;;  %v3621_v39 = vmax.f32 %v3551_v30, 0.0  ;;  %v3586_v1 = vpop.f32.mrf.mxu1 }
 0x4a0   : > { %v3445_v63 = vpop.f32.mrf.mxu0 }
 0x4a1   : > { %v3622_v51 = vmax.f32 %v3553_v13, 0.0  ;;  %v3557_v2 = vadd.f32 %v7662_v26, %v3444_v16  ;;  %v3446_v61 = vadd.f32 %v3445_v63, %v3333_v54  ;;  %v3347_v16 = vadd.f32 %v7634_v46, %v7693_v37 }
 0x4a2   : > { %v3447_v20 = vpop.f32.mrf.mxu0  ;;  %v3353_v46 = vadd.f32 %v7638_v17, %v7693_v37 }
 0x4a3   : > { %v3650_v24 = vmax.f32 %v3621_v39, %v3622_v51  ;;  %v3559_v9 = vadd.f32 %v7666_v31, %v3446_v61  ;;  %v3448_v48 = vadd.f32 %v3447_v20, %v3335_v42  ;;  %v3623_v32 = vmax.f32 %v3557_v2, 0.0 }
 0x4a4   : > { %v3449_v23 = vpop.f32.mrf.mxu0 }
 0x4a5   : > { %v7737_v55 = vpack.c.bf16 %v3650_v24, %v3649_v59  ;;  %v3624_v62 = vmax.f32 %v3559_v9, 0.0  ;;  %v3561_v26 = vadd.f32 %v7670_v60, %v3448_v48  ;;  %v3450_v10 = vadd.f32 %v3449_v23, %v3337_v0  ;;  %v3588_v60 = vpop.f32.mrf.mxu1 }
 0x4a6   : > { %v3453_v41 = vpop.f32.mrf.mxu0 }
 0x4a7   : > { %v3651_v14 = vmax.f32 %v3623_v32, %v3624_v62  ;;  %v3563_v31 = vadd.f32 %v7679_v7, %v3450_v10  ;;  %v3454_v18 = vadd.f32 %v3453_v41, %v3341_v43  ;;  %v3625_v36 = vmax.f32 %v3561_v26, 0.0  ;;  %v3590_v20 = vpop.f32.mrf.mxu1 }
 0x4a8   : > { %v3455_v30 = vpop.f32.mrf.mxu0  ;;  %v3351_v7 = vadd.f32 %v7636_v58, %v7685_v47  ;;  %v3355_v58 = vadd.f32 %v7640_v35, %v7685_v47  ;;  %v3357_v10 = vadd.f32 %v7642_v50, %v7693_v37  ;;  %v3363_v50 = vadd.f32 %v7646_v28, %v7693_v37 }
 0x4a9   : > { %v3626_v12 = vmax.f32 %v3563_v31, 0.0  ;;  %v3567_v54 = vadd.f32 %v7687_v22, %v3454_v18  ;;  %v3456_v59 = vadd.f32 %v3455_v30, %v3343_v33  ;;  %v3371_v28 = vadd.f32 %v7660_v27, %v7685_v47 }
 0x4aa   : > { %v3457_v13 = vpop.f32.mrf.mxu0 }
 0x4ab   : > { %v3652_v42 = vmax.f32 %v3625_v36, %v3626_v12  ;;  %v3569_v15 = vadd.f32 %v7698_v53, %v3456_v59  ;;  %v3458_v63 = vadd.f32 %v3457_v13, %v3345_v52  ;;  %v3627_v39 = vmax.f32 %v3567_v54, 0.0 }
 0x4ac   : > { %v3459_v56 = vpop.f32.mrf.mxu0  ;;  %v3365_v59 = vadd.f32 %v7648_v29, %v7685_v47 }
 0x4ad   : > { %v7751_v51 = vpack.c.bf16 %v3652_v42, %v3651_v14  ;;  %v3628_v2 = vmax.f32 %v3569_v15, 0.0  ;;  %v3571_v22 = vadd.f32 %v7702_v25, %v3458_v63  ;;  %v3460_v61 = vadd.f32 %v3459_v56, %v3347_v16  ;;  %v3592_v25 = vpop.f32.mrf.mxu1 }
 0x4ae   : > { %v3463_v0 = vpop.f32.mrf.mxu0 }
 0x4af   : > { %v3653_v24 = vmax.f32 %v3627_v39, %v3628_v2  ;;  %v3573_v53 = vadd.f32 %v7707_v40, %v3460_v61  ;;  %v3464_v9 = vadd.f32 %v3463_v0, %v3351_v7  ;;  %v3629_v43 = vmax.f32 %v3571_v22, 0.0  ;;  %v3596_v14 = vpop.f32.mrf.mxu1 }
 0x4b0   : > { %v3465_v48 = vpop.f32.mrf.mxu0  ;;  %v3361_v40 = vadd.f32 %v7644_v11, %v7685_v47 }
 0x4b1   : > { %v3630_v32 = vmax.f32 %v3573_v53, 0.0  ;;  %v3577_v23 = vadd.f32 %v7713_v6, %v3464_v9  ;;  %v3466_v62 = vadd.f32 %v3465_v48, %v3353_v46  ;;  %v3598_v11 = vpop.f32.mrf.mxu1  ;;  %v3373_v53 = vadd.f32 %v7664_v8, %v7693_v37 }
 0x4b2   : > { %v3467_v26 = vpop.f32.mrf.mxu0 }
 0x4b3   : > { %v3654_v41 = vmax.f32 %v3629_v43, %v3630_v32  ;;  %v3579_v17 = vadd.f32 %v7719_v49, %v3466_v62  ;;  %v3468_v33 = vadd.f32 %v3467_v26, %v3355_v58  ;;  %v3631_v35 = vmax.f32 %v3577_v23, 0.0 }
 0x4b4   : > { %v3469_v31 = vpop.f32.mrf.mxu0 }
 0x4b5   : > { %v7765_v18 = vpack.c.bf16 %v3654_v41, %v3653_v24  ;;  %v3632_v52 = vmax.f32 %v3579_v17, 0.0  ;;  %v3581_v6 = vadd.f32 %v7729_v4, %v3468_v33  ;;  %v3470_v30 = vadd.f32 %v3469_v31, %v3357_v10 }
 0x4b6   : > { %v3473_v36 = vpop.f32.mrf.mxu0  ;;  %v3367_v4 = vadd.f32 %v7656_v44, %v7693_v37 }
 0x4b7   : > { %v3655_v12 = vmax.f32 %v3631_v35, %v3632_v52  ;;  %v3583_v54 = vadd.f32 %v3582_v45, %v3470_v30  ;;  %v3474_v49 = vadd.f32 %v3473_v36, %v3361_v40  ;;  %v3633_v16 = vmax.f32 %v3581_v6, 0.0  ;;  %v3600_v45 = vpop.f32.mrf.mxu1 }
 0x4b8   : > { %v3475_v13 = vpop.f32.mrf.mxu0  ;;  %v3383_v30 = vadd.f32 %v7681_v19, %v7693_v37 }
 0x4b9   : > { %v3634_v42 = vmax.f32 %v3583_v54, 0.0  ;;  %v3587_v15 = vadd.f32 %v3586_v1, %v3474_v49  ;;  %v3476_v63 = vadd.f32 %v3475_v13, %v3363_v50  ;;  %v3602_v48 = vpop.f32.mrf.mxu1 }
 0x4ba   : > { %v3477_v7 = vpop.f32.mrf.mxu0 }
 0x4bb   : > { %v3656_v39 = vmax.f32 %v3633_v16, %v3634_v42  ;;  %v3589_v56 = vadd.f32 %v3588_v60, %v3476_v63  ;;  %v3478_v2 = vadd.f32 %v3477_v7, %v3365_v59  ;;  %v3635_v22 = vmax.f32 %v3587_v15, 0.0  ;;  %v3606_v26 = vpop.f32.mrf.mxu1 }
 0x4bc   : > { %v3479_v61 = vpop.f32.mrf.mxu0  ;;  %v3375_v60 = vadd.f32 %v7668_v38, %v7685_v47  ;;  %v3387_v42 = vadd.f32 %v7695_v34, %v7693_v37  ;;  %v5831_v34 = vld [vmem:[%s8149_s8] sm:$0xff]  }
 0x4bd   : > { %v7776_v29 = vpack.c.bf16 %v3656_v39, %v3655_v12  ;;  %v3636_v0 = vmax.f32 %v3589_v56, 0.0  ;;  %v3591_v46 = vadd.f32 %v3590_v20, %v3478_v2  ;;  %v3480_v24 = vadd.f32 %v3479_v61, %v3367_v4  ;;  %v3608_v6 = vpop.f32.mrf.mxu1 }
 0x4be   : > { %v3483_v1 = vpop.f32.mrf.mxu0  ;;  %v3377_v20 = vadd.f32 %v7672_v3, %v7693_v37  ;;  %v3385_v12 = vadd.f32 %v7689_v5, %v7685_v47  ;;  %v5830_v37 = vld [vmem:[%s8148_s7] sm:$0xff]  }
 0x4bf   : > { %v3657_v9 = vmax.f32 %v3635_v22, %v3636_v0  ;;  %v3593_v44 = vadd.f32 %v3592_v25, %v3480_v24  ;;  %v3484_v58 = vadd.f32 %v3483_v1, %v3371_v28  ;;  %v3637_v43 = vmax.f32 %v3591_v46, 0.0  ;;  %v3610_v13 = vpop.f32.mrf.mxu1  ;;  %v5839_v1 = vld [vmem:[%s8150_s9 + $0x60] sm:$0xff]  }
 0x4c0   : > { %v3485_v27 = vpop.f32.mrf.mxu0  ;;  %v3381_v25 = vadd.f32 %v7677_v57, %v7685_v47  ;;  %v8244_v24 = vmov 0.0  }
 0x4c1   : > { %v3638_v32 = vmax.f32 %v3593_v44, 0.0  ;;  %v3597_v23 = vadd.f32 %v3596_v14, %v3484_v58  ;;  %v3486_v62 = vadd.f32 %v3485_v27, %v3373_v53  ;;  %v3612_v47 = vpop.f32.mrf.mxu1  ;;  %v5834_v53 = vld [vmem:[%s8148_s7 + $0x10] ss:$0 sps:$4 sm:$0xff]   ;;  %v5840_v44 = vld [vmem:[%s8150_s9 + $0x58] sm:$0xff]   ;;  %v5848_v27 = vld [vmem:[%s8150_s9 + $0x28] sm:$0xff]  }
 0x4c2   : > { %v3487_v10 = vpop.f32.mrf.mxu0  ;;  %v5841_v58 = vld [vmem:[%s8150_s9 + $0x50] sm:$0xff]  }
 0x4c3   : > { %v3658_v41 = vmax.f32 %v3637_v43, %v3638_v32  ;;  %v3599_v17 = vadd.f32 %v3598_v11, %v3486_v62  ;;  %v3488_v8 = vadd.f32 %v3487_v10, %v3375_v60  ;;  %v3639_v33 = vmax.f32 %v3597_v23, 0.0  ;;  %v5844_v60 = vld [vmem:[%s8150_s9 + $0x38] sm:$0xff]   ;;  %v5850_v43 = vld [vmem:[%s8150_s9 + $0x20] sm:$0xff]   ;;  %v5854_v23 = vld [vmem:[%s8150_s9 + $0x10] sm:$0xff]  }
 0x4c4   : > { %v3489_v40 = vpop.f32.mrf.mxu0  ;;  %v5852_v32 = vld [vmem:[%s8150_s9 + $0x18] sm:$0xff]   ;;  %v5856_v62 = vld [vmem:[%s8150_s9 + $0x8] sm:$0xff]   ;;  %v5858_v10 = vld [vmem:[%s8150_s9] sm:$0xff]  }
 0x4c5   : > { %v3668_v38 = vpack.c.bf16 %v3658_v41, %v3657_v9  ;;  %v3640_v35 = vmax.f32 %v3599_v17, 0.0  ;;  %v3601_v31 = vadd.f32 %v3600_v45, %v3488_v8  ;;  %v3490_v52 = vadd.f32 %v3489_v40, %v3377_v20  ;;  %v5835_v9 = vld [vmem:[%s8149_s8 + $0x10] ss:$0 sps:$4 sm:$0xff]   ;;  %v5843_v20 = vld [vmem:[%s8150_s9 + $0x40] sm:$0xff]   ;;  %v5860_v40 = vld [vmem:[%s8150_s9 + $0xf8] sm:$0xff]  }
 0x4c6   : > { %v3493_v14 = vpop.f32.mrf.mxu0 }
 0x4c7   : > { %v3659_v36 = vmax.f32 %v3639_v33, %v3640_v35  ;;  %v3603_v50 = vadd.f32 %v3602_v48, %v3490_v52  ;;  %v3494_v3 = vadd.f32 %v3493_v14, %v3381_v25  ;;  %v3641_v49 = vmax.f32 %v3601_v31, 0.0  ;;  %v5846_v48 = vld [vmem:[%s8150_s9 + $0x30] sm:$0xff]  }
 0x4c8   : > { %v3495_v54 = vpop.f32.mrf.mxu0 }
 0x4c9   : > { %v3642_v57 = vmax.f32 %v3603_v50, 0.0  ;;  %v3607_v59 = vadd.f32 %v3606_v26, %v3494_v3  ;;  %v3496_v11 = vadd.f32 %v3495_v54, %v3383_v30  ;;  %v5842_v26 = vld [vmem:[%s8150_s9 + $0x48] sm:$0xff]   ;;  %v5862_v50 = vld [vmem:[%s8150_s9 + $0xf0] sm:$0xff]  }
 0x4ca   : > { %v3497_v16 = vpop.f32.mrf.mxu0  ;;  %v5847_v54 = vld [vmem:[%s8150_s9 + $0xb0] sm:$0xff]  }
 0x4cb   : > { %v3660_v15 = vmax.f32 %v3641_v49, %v3642_v57  ;;  %v3609_v63 = vadd.f32 %v3608_v6, %v3496_v11  ;;  %v3498_v7 = vadd.f32 %v3497_v16, %v3385_v12  ;;  %v3643_v19 = vmax.f32 %v3607_v59, 0.0  ;;  %v5845_v6 = vld [vmem:[%s8150_s9 + $0xb8] sm:$0xff]   ;;  %v5864_v59 = vld [vmem:[%s8150_s9 + $0xe8] sm:$0xff]  }
 0x4cc   : > { %v3499_v4 = vpop.f32.mrf.mxu0  ;;  %v5849_v16 = vld [vmem:[%s8150_s9 + $0xa8] sm:$0xff]  }
 0x4cd   : > { %v3669_v39 = vpack.c.bf16 %v3660_v15, %v3659_v36  ;;  %v3644_v56 = vmax.f32 %v3609_v63, 0.0  ;;  %v3611_v2 = vadd.f32 %v3610_v13, %v3498_v7  ;;  %v3500_v28 = vadd.f32 %v3499_v4, %v3387_v42  ;;  %v5866_v63 = vld [vmem:[%s8150_s9 + $0xe0] sm:$0xff]  }
 0x4ce   : > { %v5851_v4 = vld [vmem:[%s8150_s9 + $0xa0] sm:$0xff]  }
 0x4cf   : > { %v3661_v5 = vmax.f32 %v3643_v19, %v3644_v56  ;;  %v3613_v45 = vadd.f32 %v3612_v47, %v3500_v28  ;;  %v3645_v22 = vmax.f32 %v3611_v2, 0.0  ;;  %v5868_v2 = vld [vmem:[%s8150_s9 + $0xd8] sm:$0xff]  }
 0x4d1   : > { %v3646_v61 = vmax.f32 %v3613_v45, 0.0 }
 0x4d3   : > { %v3662_v0 = vmax.f32 %v3645_v22, %v3646_v61  ;;  %v5870_v61 = vld [vmem:[%s8150_s9 + $0xd0] sm:$0xff]  }
 0x4d5   : > { %v3670_v46 = vpack.c.bf16 %v3662_v0, %v3661_v5  ;;  %v5853_v5 = vld [vmem:[%s8150_s9 + $0x98] sm:$0xff]   ;;  %v5855_v0 = vld [vmem:[%s8150_s9 + $0x90] sm:$0xff]  }
 0x4d7   : > { %5280 = vmatpush3.bf16.msra.mxu0 %v3670_v46  ;;  %5308 = vmatpush3.bf16.msra.mxu1 %v3670_v46  ;;  %v5872_v46 = vld [vmem:[%s8150_s9 + $0xc8] sm:$0xff]  }
 0x4d8   : > { %5281 = vmatprep.subr.bf16.mxu0 %v8244_v24  ;;  %5309 = vmatprep.subr.bf16.mxu1 %v8244_v24 }
 0x4db   : > { %5282 = vmatpush3.bf16.msra.mxu0 %v3669_v39  ;;  %5310 = vmatpush3.bf16.msra.mxu1 %v3669_v39 }
 0x4dc   : > { %5283 = vmatprep.subr.bf16.mxu0 %v8244_v24  ;;  %5311 = vmatprep.subr.bf16.mxu1 %v8244_v24 }
 0x4df   : > { %5284 = vmatpush3.bf16.msra.mxu0 %v3668_v38  ;;  %5312 = vmatpush3.bf16.msra.mxu1 %v3668_v38 }
 0x4e0   : > { %5285 = vmatprep.subr.bf16.mxu0 %v8244_v24  ;;  %5313 = vmatprep.subr.bf16.mxu1 %v8244_v24 }
 0x4e3   : > { %5286 = vmatpush3.bf16.msra.mxu0 %v7776_v29  ;;  %5314 = vmatpush3.bf16.msra.mxu1 %v7776_v29  ;;  %v5838_v29 = vld [vmem:[%s8150_s9 + $0x68] sm:$0xff]  }
 0x4e4   : > { %5287 = vmatprep.subr.bf16.mxu0 %v8244_v24  ;;  %5315 = vmatprep.subr.bf16.mxu1 %v8244_v24 }
 0x4e7   : > { %5288 = vmatpush3.bf16.msra.mxu0 %v7765_v18  ;;  %5316 = vmatpush3.bf16.msra.mxu1 %v7765_v18  ;;  %v5833_v18 = vld [vmem:[%s8149_s8 + $0x8] sm:$0xff]  }
 0x4e8   : > { %5289 = vmatprep.subr.bf16.mxu0 %v8244_v24  ;;  %5317 = vmatprep.subr.bf16.mxu1 %v8244_v24 }
 0x4eb   : > { %5290 = vmatpush3.bf16.msra.mxu0 %v7751_v51  ;;  %5318 = vmatpush3.bf16.msra.mxu1 %v7751_v51  ;;  %v5832_v51 = vld [vmem:[%s8148_s7 + $0x8] sm:$0xff]  }
 0x4ec   : > { %5291 = vmatprep.subr.bf16.mxu0 %v8244_v24  ;;  %5319 = vmatprep.subr.bf16.mxu1 %v8244_v24 }
 0x4ef   : > { %5292 = vmatpush3.bf16.msra.mxu0 %v7737_v55  ;;  %5320 = vmatpush3.bf16.msra.mxu1 %v7737_v55  ;;  %v5836_v55 = vld [vmem:[%s8150_s9 + $0x78] sm:$0xff]  }
 0x4f0   : > { %5293 = vmatprep.subr.bf16.mxu0 %v8244_v24  ;;  %5321 = vmatprep.subr.bf16.mxu1 %v8244_v24 }
 0x4f3   : > { %5294 = vmatpush3.bf16.msra.mxu0 %v7721_v21  ;;  %5322 = vmatpush3.bf16.msra.mxu1 %v7721_v21  ;;  %v5837_v21 = vld [vmem:[%s8150_s9 + $0x70] sm:$0xff]  }
 0x4f4   : > { %5335 = vmatprep.subr.bf16.mxu0 %v8244_v24  ;;  %5355 = vmatprep.subr.bf16.mxu1 %v8244_v24 }
 0x4f6   : > { %5296 = vmatmul.mubr.bf16.vlgmr.msra.gmra.mxu0 %v5830_v37  ;;  %5324 = vmatmul.mubr.bf16.vlgmr.msra.gmra.mxu1 %v5831_v34  ;;  %v5857_v37 = vld [vmem:[%s8150_s9 + $0x88] sm:$0xff]  }
 0x4f7   : > { %5299 = vmatprep.mubr.msk.bf16.mxu0 %vm5956_vm4, %v8244_v24  ;;  %5327 = vmatprep.mubr.msk.bf16.mxu1 %vm5956_vm4, %v8244_v24 }
 0x4f8   : > { %5336 = vmatpush3.bf16.msra.mxu0 %v5836_v55  ;;  %5356 = vmatpush3.bf16.msra.mxu1 %v5844_v60  ;;  %v5874_v55 = vld [vmem:[%s8150_s9 + $0xc0] sm:$0xff]  }
 0x4f9   : > { %5337 = vmatprep.subr.bf16.mxu0 %v8244_v24  ;;  %5357 = vmatprep.subr.bf16.mxu1 %v8244_v24  ;;  %v5867_v60 = vld [vmem:[%s8150_s9 + $0x120] sm:$0xff]  }
 0x4fc   : > { %5338 = vmatpush3.bf16.msra.mxu0 %v5837_v21  ;;  %5358 = vmatpush3.bf16.msra.mxu1 %v5846_v48  ;;  %v5869_v48 = vld [vmem:[%s8150_s9 + $0x118] sm:$0xff]  }
 0x4fd   : > { %5339 = vmatprep.subr.bf16.mxu0 %v8244_v24  ;;  %5359 = vmatprep.subr.bf16.mxu1 %v8244_v24 }
 0x4fe   : > { %5300 = vmatmul.mubr.bf16.gmra.mxu0 %v5832_v51  ;;  %5328 = vmatmul.mubr.bf16.gmra.mxu1 %v5833_v18  ;;  %v5859_v51 = vld [vmem:[%s8150_s9 + $0x80] sm:$0xff]  }
 0x4ff   : > { %5303 = vmatprep.mubr.msk.bf16.mxu0 %vm5956_vm4, %v8244_v24  ;;  %5331 = vmatprep.mubr.msk.bf16.mxu1 %vm5956_vm4, %v8244_v24 }
 0x500   : > { %5340 = vmatpush3.bf16.msra.mxu0 %v5838_v29  ;;  %5360 = vmatpush3.bf16.msra.mxu1 %v5848_v27  ;;  %v5876_v29 = vld [vmem:[%s8152_s11 + $0x38] sm:$0xff]   ;;  %v5871_v27 = vld [vmem:[%s8150_s9 + $0x110] sm:$0xff]  }
 0x501   : > { %5341 = vmatprep.subr.bf16.mxu0 %v8244_v24  ;;  %5361 = vmatprep.subr.bf16.mxu1 %v8244_v24 }
 0x504   : > { %5342 = vmatpush3.bf16.msra.mxu0 %v5839_v1  ;;  %5362 = vmatpush3.bf16.msra.mxu1 %v5850_v43  ;;  %v5873_v43 = vld [vmem:[%s8150_s9 + $0x108] sm:$0xff]  }
 0x505   : > { %5343 = vmatprep.subr.bf16.mxu0 %v8244_v24  ;;  %5363 = vmatprep.subr.bf16.mxu1 %v8244_v24 }
 0x506   : > { %5304 = vmatmul.mubr.bf16.gmra.mxu0 %v5834_v53  ;;  %5332 = vmatmul.mubr.bf16.gmra.mxu1 %v5835_v9  ;;  %v5861_v53 = vld [vmem:[%s8150_s9 + $0x138] sm:$0xff]   ;;  %v5877_v9 = vld [vmem:[%s8152_s11 + $0x30] sm:$0xff]  }
 0x507   : > { %5351 = vmatprep.mubr.msk.bf16.mxu0 %vm5956_vm4, %v8244_v24  ;;  %5371 = vmatprep.mubr.msk.bf16.mxu1 %vm5956_vm4, %v8244_v24 }
 0x508   : > { %5344 = vmatpush3.bf16.msra.mxu0 %v5840_v44  ;;  %5364 = vmatpush3.bf16.msra.mxu1 %v5852_v32  ;;  %v5863_v44 = vld [vmem:[%s8150_s9 + $0x130] sm:$0xff]  }
 0x509   : > { %5345 = vmatprep.subr.bf16.mxu0 %v8244_v24  ;;  %5365 = vmatprep.subr.bf16.mxu1 %v8244_v24 }
 0x50c   : > { %5346 = vmatpush3.bf16.msra.mxu0 %v5841_v58  ;;  %5366 = vmatpush3.bf16.msra.mxu1 %v5854_v23  ;;  %v5865_v58 = vld [vmem:[%s8150_s9 + $0x128] sm:$0xff]   ;;  %v5875_v23 = vld [vmem:[%s8150_s9 + $0x100] sm:$0xff]  }
 0x50d   : > { %5347 = vmatprep.subr.bf16.mxu0 %v8244_v24  ;;  %5367 = vmatprep.subr.bf16.mxu1 %v8244_v24 }
 0x510   : > { %5368 = vmatpush3.bf16.msra.mxu1 %v5856_v62  ;;  %5348 = vmatpush3.bf16.msra.mxu0 %v5842_v26  ;;  %v5878_v26 = vld [vmem:[%s8152_s11 + $0x28] sm:$0xff]  }
 0x511   : > { %5369 = vmatprep.subr.bf16.mxu1 %v8244_v24  ;;  %5349 = vmatprep.subr.bf16.mxu0 %v8244_v24 }
 0x514   : > { %5370 = vmatpush3.bf16.msra.mxu1 %v5858_v10  ;;  %5350 = vmatpush3.bf16.msra.mxu0 %v5843_v20  ;;  %v5879_v10 = vld [vmem:[%s8152_s11 + $0x20] sm:$0xff]   ;;  %v5880_v20 = vld [vmem:[%s8152_s11 + $0x18] sm:$0xff]  }
 0x515   : > { %5395 = vmatprep.subr.bf16.mxu1 %v8244_v24  ;;  %5375 = vmatprep.subr.bf16.mxu0 %v8244_v24 }
 0x5b6   : > { %v3726_v41 = vpop.f32.mrf.mxu0  ;;  %v3803_v17 = vpop.f32.mrf.mxu1 }
 0x5b7   : > { %v3825_v8 = vmax.f32 %v3726_v41, %v3803_v17  ;;  %v5881_v41 = vld [vmem:[%s8152_s11 + $0x10] sm:$0xff]   ;;  %v5882_v17 = vld [vmem:[%s8152_s11 + $0x8] sm:$0xff]  }
 0x5b8   : > { %v5297_v25 = vpop.f32.mrf.mxu0  ;;  %v5325_v33 = vpop.f32.mrf.mxu1 }
 0x5b9   : > { %v3830_v38 = vpack.c.bf16 %v3825_v8, %v3825_v8  ;;  %v5883_v8 = vld [vmem:[%s8152_s11] sm:$0xff]   ;;  %v5884_v25 = vld [vmem:[%s8154_s13 + $0x38] sm:$0xff]   ;;  %v5885_v33 = vld [vmem:[%s8154_s13 + $0x30] sm:$0xff]  }
 0x5ba   : > { %v3729_v35 = vpop.f32.mrf.mxu0  ;;  %v3806_v31 = vpop.f32.mrf.mxu1 }
 0x5bb   : > { %v3826_v52 = vmax.f32 %v3729_v35, %v3806_v31  ;;  %5372 = vmatmul.mubr.bf16.vlgmr.msra.gmra.mxu1 %v3830_v38  ;;  %v5887_v38 = vld [vmem:[%s8154_s13 + $0x20] sm:$0xff]   ;;  %v5888_v35 = vld [vmem:[%s8154_s13 + $0x18] sm:$0xff]   ;;  %v5889_v31 = vld [vmem:[%s8154_s13 + $0x10] sm:$0xff]  }
 0x5bc   : > { %v5298_v14 = vpop.f32.mrf.mxu0  ;;  %v5326_v30 = vpop.f32.mrf.mxu1  ;;  %5396 = vmatpush3.bf16.msra.mxu1 %v5860_v40  ;;  %5411 = vmatprep.mubr.msk.bf16.mxu1 %vm5956_vm4, %v8244_v24  ;;  %v5886_v40 = vld [vmem:[%s8154_s13 + $0x28] sm:$0xff]  }
 0x5bd   : > { %v3847_v36 = vpack.c.bf16 %v3826_v52, %v3826_v52  ;;  %5397 = vmatprep.subr.bf16.mxu1 %v8244_v24 }
 0x5be   : > { %v3734_v3 = vpop.f32.mrf.mxu0  ;;  %v3811_v12 = vpop.f32.mrf.mxu1 }
 0x5bf   : > { %5352 = vmatmul.mubr.bf16.vlgmr.msra.gmra.mxu0 %v3847_v36  ;;  %v3827_v21 = vmax.f32 %v3734_v3, %v3811_v12 }
 0x5c0   : > { %5376 = vmatpush3.bf16.msra.mxu0 %v5845_v6  ;;  %5391 = vmatprep.mubr.msk.bf16.mxu0 %vm5956_vm4, %v8244_v24  ;;  %v5301_v49 = vpop.f32.mrf.mxu0  ;;  %v5329_v57 = vpop.f32.mrf.mxu1 }
 0x5c1   : > { %5377 = vmatprep.subr.bf16.mxu0 %v8244_v24  ;;  %5398 = vmatpush3.bf16.msra.mxu1 %v5862_v50  ;;  %v4041_v1 = vpack.c.bf16 %v3827_v21, %v3827_v21 }
 0x5c2   : > { %5399 = vmatprep.subr.bf16.mxu1 %v8244_v24  ;;  %v3737_v11 = vpop.f32.mrf.mxu0  ;;  %v3814_v13 = vpop.f32.mrf.mxu1 }
 0x5c3   : > { %v3828_v34 = vmax.f32 %v3737_v11, %v3814_v13 }
 0x5c4   : > { %5378 = vmatpush3.bf16.msra.mxu0 %v5847_v54  ;;  %v5302_v42 = vpop.f32.mrf.mxu0  ;;  %v5330_v15 = vpop.f32.mrf.mxu1 }
 0x5c5   : > { %5379 = vmatprep.subr.bf16.mxu0 %v8244_v24  ;;  %5400 = vmatpush3.bf16.msra.mxu1 %v5864_v59  ;;  %v4148_v18 = vpack.c.bf16 %v3828_v34, %v3828_v34 }
 0x5c6   : > { %5401 = vmatprep.subr.bf16.mxu1 %v8244_v24  ;;  %v7942_v7 = vpop.f32.mrf.mxu0  ;;  %v7944_v19 = vpop.f32.mrf.mxu1 }
 0x5c7   : > { %v3829_v32 = vmax.f32 %v7942_v7, %v7944_v19 }
 0x5c8   : > { %5380 = vmatpush3.bf16.msra.mxu0 %v5849_v16  ;;  %v5305_v39 = vpop.f32.mrf.mxu0  ;;  %v5333_v56 = vpop.f32.mrf.mxu1 }
 0x5c9   : > { %5381 = vmatprep.subr.bf16.mxu0 %v8244_v24  ;;  %5402 = vmatpush3.bf16.msra.mxu1 %v5866_v63  ;;  %v4255_v62 = vpack.c.bf16 %v3829_v32, %v3829_v32 }
 0x5ca   : > { %5403 = vmatprep.subr.bf16.mxu1 %v8244_v24  ;;  %v3745_v28 = vpop.f32.mrf.mxu0  ;;  %v3822_v47 = vpop.f32.mrf.mxu1 }
 0x5cc   : > { %5382 = vmatpush3.bf16.msra.mxu0 %v5851_v4  ;;  %v5306_v45 = vpop.f32.mrf.mxu0  ;;  %v5334_v22 = vpop.f32.mrf.mxu1  ;;  %v4995_v4 = vld [vmem:[%s8151_s10] ss:$0 sm:$0xff] }
 0x5cd   : > { %5383 = vmatprep.subr.bf16.mxu0 %v8244_v24  ;;  %5404 = vmatpush3.bf16.msra.mxu1 %v5868_v2  ;;  %v5890_v22 = vld [vmem:[%s8154_s13 + $0x8] sm:$0xff]  }
 0x5ce   : > { %5405 = vmatprep.subr.bf16.mxu1 %v8244_v24 }
 0x5d0   : > { %5384 = vmatpush3.bf16.msra.mxu0 %v5853_v5 }
 0x5d1   : > { %5385 = vmatprep.subr.bf16.mxu0 %v8244_v24  ;;  %5406 = vmatpush3.bf16.msra.mxu1 %v5870_v61  ;;  %v5891_v61 = vld [vmem:[%s8154_s13] sm:$0xff]  }
 0x5d2   : > { %5407 = vmatprep.subr.bf16.mxu1 %v8244_v24 }
 0x5d4   : > { %5386 = vmatpush3.bf16.msra.mxu0 %v5855_v0  ;;  %v4996_v0 = vld [vmem:[%s8153_s12] ss:$0 sm:$0xff] }
 0x5d5   : > { %5387 = vmatprep.subr.bf16.mxu0 %v8244_v24  ;;  %5408 = vmatpush3.bf16.msra.mxu1 %v5872_v46 }
 0x5d6   : > { %5409 = vmatprep.subr.bf16.mxu1 %v8244_v24 }
 0x5d8   : > { %5388 = vmatpush3.bf16.msra.mxu0 %v5857_v37 }
 0x5d9   : > { %5389 = vmatprep.subr.bf16.mxu0 %v8244_v24  ;;  %5410 = vmatpush3.bf16.msra.mxu1 %v5874_v55 }
 0x5da   : > { %5435 = vmatprep.subr.bf16.mxu1 %v8244_v24 }
 0x5dc   : > { %5390 = vmatpush3.bf16.msra.mxu0 %v5859_v51  ;;  %5412 = vmatmul.mubr.bf16.vlgmr.msra.gmra.mxu1 %v4148_v18 }
 0x5dd   : > { %5415 = vmatprep.subr.bf16.mxu0 %v8244_v24  ;;  %5436 = vmatpush3.bf16.msra.mxu1 %v5876_v29 }
 0x5de   : > { %5437 = vmatprep.subr.bf16.mxu1 %v8244_v24  ;;  %5451 = vmatprep.mubr.msk.bf16.mxu1 %vm5956_vm4, %v8244_v24 }
 0x5df   : > { %5392 = vmatmul.mubr.bf16.vlgmr.msra.gmra.mxu0 %v4041_v1 }
 0x5e0   : > { %5416 = vmatpush3.bf16.msra.mxu0 %v5861_v53  ;;  %5431 = vmatprep.mubr.msk.bf16.mxu0 %vm5956_vm4, %v8244_v24 }
 0x5e1   : > { %5417 = vmatprep.subr.bf16.mxu0 %v8244_v24  ;;  %5438 = vmatpush3.bf16.msra.mxu1 %v5877_v9 }
 0x5e2   : > { %5439 = vmatprep.subr.bf16.mxu1 %v8244_v24 }
 0x5e4   : > { %5418 = vmatpush3.bf16.msra.mxu0 %v5863_v44 }
 0x5e5   : > { %5419 = vmatprep.subr.bf16.mxu0 %v8244_v24  ;;  %5440 = vmatpush3.bf16.msra.mxu1 %v5878_v26 }
 0x5e6   : > { %5441 = vmatprep.subr.bf16.mxu1 %v8244_v24 }
 0x5e8   : > { %5420 = vmatpush3.bf16.msra.mxu0 %v5865_v58 }
 0x5e9   : > { %5421 = vmatprep.subr.bf16.mxu0 %v8244_v24  ;;  %5442 = vmatpush3.bf16.msra.mxu1 %v5879_v10 }
 0x5ea   : > { %5443 = vmatprep.subr.bf16.mxu1 %v8244_v24 }
 0x5ec   : > { %5422 = vmatpush3.bf16.msra.mxu0 %v5867_v60 }
 0x5ed   : > { %5423 = vmatprep.subr.bf16.mxu0 %v8244_v24  ;;  %5444 = vmatpush3.bf16.msra.mxu1 %v5880_v20 }
 0x5ee   : > { %5445 = vmatprep.subr.bf16.mxu1 %v8244_v24 }
 0x5f0   : > { %5424 = vmatpush3.bf16.msra.mxu0 %v5869_v48 }
 0x5f1   : > { %5425 = vmatprep.subr.bf16.mxu0 %v8244_v24  ;;  %5446 = vmatpush3.bf16.msra.mxu1 %v5881_v41 }
 0x5f2   : > { %5447 = vmatprep.subr.bf16.mxu1 %v8244_v24 }
 0x5f4   : > { %5426 = vmatpush3.bf16.msra.mxu0 %v5871_v27 }
 0x5f5   : > { %5427 = vmatprep.subr.bf16.mxu0 %v8244_v24  ;;  %5448 = vmatpush3.bf16.msra.mxu1 %v5882_v17 }
 0x5f6   : > { %5449 = vmatprep.subr.bf16.mxu1 %v8244_v24 }
 0x5f8   : > { %5428 = vmatpush3.bf16.msra.mxu0 %v5873_v43 }
 0x5f9   : > { %5429 = vmatprep.subr.bf16.mxu0 %v8244_v24  ;;  %5450 = vmatpush3.bf16.msra.mxu1 %v5883_v8 }
 0x5fc   : > { %5430 = vmatpush3.bf16.msra.mxu0 %v5875_v23 }
 0x5fd   : > { %5455 = vmatprep.subr.bf16.mxu0 %v8244_v24 }
 0x5ff   : > { %5432 = vmatmul.mubr.bf16.vlgmr.msra.gmra.mxu0 %v4255_v62 }
 0x600   : > { %5471 = vmatprep.mubr.msk.bf16.mxu0 %vm5956_vm4, %v8244_v24  ;;  %5456 = vmatpush3.bf16.msra.mxu0 %v5884_v25 }
 0x601   : > { %5457 = vmatprep.subr.bf16.mxu0 %v8244_v24 }
 0x604   : > { %5458 = vmatpush3.bf16.msra.mxu0 %v5885_v33 }
 0x605   : > { %5459 = vmatprep.subr.bf16.mxu0 %v8244_v24 }
 0x608   : > { %5460 = vmatpush3.bf16.msra.mxu0 %v5886_v40 }
 0x609   : > { %5461 = vmatprep.subr.bf16.mxu0 %v8244_v24 }
 0x60c   : > { %5462 = vmatpush3.bf16.msra.mxu0 %v5887_v38 }
 0x60d   : > { %5463 = vmatprep.subr.bf16.mxu0 %v8244_v24 }
 0x610   : > { %5464 = vmatpush3.bf16.msra.mxu0 %v5888_v35 }
 0x611   : > { %5465 = vmatprep.subr.bf16.mxu0 %v8244_v24 }
 0x614   : > { %5466 = vmatpush3.bf16.msra.mxu0 %v5889_v31 }
 0x615   : > { %5467 = vmatprep.subr.bf16.mxu0 %v8244_v24 }
 0x618   : > { %5468 = vmatpush3.bf16.msra.mxu0 %v5890_v22 }
 0x619   : > { %5469 = vmatprep.subr.bf16.mxu0 %v8244_v24  ;;  %v5005_v24 = vld [vmem:[%s8155_s14] ss:$0 sm:$0xff] }
 0x61c   : > { %5470 = vmatpush3.bf16.msra.mxu0 %v5891_v61 }
 0x67b   : > { %v4035_v52 = vpop.f32.mrf.mxu1 }
 0x67d   : > { %v5373_v6 = vpop.f32.mrf.mxu1 }
 0x67f   : > { %v3947_v14 = vpop.f32.mrf.mxu0  ;;  %v4038_v30 = vpop.f32.mrf.mxu1 }
 0x680   : > { %v4036_v15 = vadd.f32 %v4035_v52, %v3947_v14 }
 0x681   : > { %v5353_v36 = vpop.f32.mrf.mxu0  ;;  %v5374_v50 = vpop.f32.mrf.mxu1 }
 0x683   : > { %v3950_v3 = vpop.f32.mrf.mxu0 }
 0x685   : > { %v5354_v12 = vpop.f32.mrf.mxu0 }
 0x69c   : > { %v4248_v54 = vpop.f32.mrf.mxu1 }
 0x69e   : > { %v5413_v49 = vpop.f32.mrf.mxu1 }
 0x69f   : > { %v4141_v57 = vpop.f32.mrf.mxu0 }
 0x6a0   : > { %v4251_v59 = vpop.f32.mrf.mxu1  ;;  %v4147_v63 = vadd.f32 %v4141_v57, %v4036_v15 }
 0x6a1   : > { %v5393_v11 = vpop.f32.mrf.mxu0 }
 0x6a2   : > { %v5414_v13 = vpop.f32.mrf.mxu1  ;;  %v4254_v7 = vadd.f32 %v4248_v54, %v4147_v63 }
 0x6a3   : > { %v4144_v16 = vpop.f32.mrf.mxu0 }
 0x6a5   : > { %v5394_v42 = vpop.f32.mrf.mxu0 }
 0x6bf   : > { %v4355_v19 = vpop.f32.mrf.mxu0 }
 0x6c0   : > { %v4361_v39 = vadd.f32 %v4355_v19, %v4254_v7 }
 0x6c1   : > { %v5433_v56 = vpop.f32.mrf.mxu0 }
 0x6c2   : > { %v4369_v2 = vadd.f32 %v4995_v4, %v4361_v39 }
 0x6c3   : > { %v4358_v28 = vpop.f32.mrf.mxu0 }
 0x6c4   : > { %v4370_v47 = vmax.f32 %v4369_v2, 0.0 }
 0x6c5   : > { %v5434_v5 = vpop.f32.mrf.mxu0 }
 0x6c6   : > { %v4371_v45 = vpack.c.bf16 %v4370_v47, %v4370_v47 }
 0x6c8   : > { %5452 = vmatmul.mubr.bf16.vlgmr.msra.gmra.mxu1 %v4371_v45 }
 0x788   : > { %v4477_v46 = vpop.f32.mrf.mxu1 }
 0x789   : > { %v4478_v37 = vadd.f32 %v4996_v0, %v4477_v46 }
 0x78a   : > { %v5453_v34 = vpop.f32.mrf.mxu1 }
 0x78b   : > { %v4483_v55 = vmax.f32 %v4478_v37, 0.0 }
 0x78c   : > { %v4480_v21 = vpop.f32.mrf.mxu1 }
 0x78d   : > { %v4484_v51 = vpack.c.bf16 %v4483_v55, %v4483_v55 }
 0x78e   : > { %v5454_v18 = vpop.f32.mrf.mxu1 }
 0x78f   : > { %5472 = vmatmul.mubr.bf16.vlgmr.msra.gmra.mxu0 %v4484_v51 }
 0x84f   : > { %v4590_v29 = vpop.f32.mrf.mxu0 }
 0x850   : > { %v4591_v1 = vadd.f32 %v5005_v24, %v4590_v29 }
 0x851   : > { %v5473_v53 = vpop.f32.mrf.mxu0 }
 0x852   : > { %4596 = vst [vmem:[%s490_s23] sm:$0xff] %v4591_v1 }
 0x853   : > { %v4593_v9 = vpop.f32.mrf.mxu0 }
 0x854   : > { %5905 = shalt.err (!%p5902_p3)
}
 0x855   : > { %s5906_s17 = scalar_lea.hbm %s8100_s24, 128  ;;  %s5910_s26 = scalar_lea.hbm %s8156_s15, 256 }
 0x856   : > { %p5907_p4 = scmp.ne.s32.totalorder %s8100_s24, %s5906_s17  ;;  %p5911_p9 = scmp.lt.s32.totalorder %s8100_s24, %s8156_s15 }
 0x857   : > { %p5912_p10 = scmp.lt.s32.totalorder %s5910_s26, %s5906_s17 }
 0x858   : > { %p5908_p7 = pnand %p5907_p4, %p6076_p5 }
 0x859   : > { %p5913_p11 = por %p5912_p10, %p5911_p9 }
 0x85a   : > { %p5909_p8 = pneg %p5908_p7 }
 0x85c   : > { %p5914_p12 = pnand %p5913_p11, %p5909_p8 }
 0x85e   : > { %5917 = shalt.err (!%p5914_p12)
}
 0x85f   : > { %5476 = dma.vmem_to_hbm [thread:$0]  (%p6076_p5), %s8102_s25, 128, %s8100_s24, %s4598_s18   ;;  %v5474_v44 = vpop.f32.mrf.mxu0 }
 0x860 PF: > { %s8245_s20 = sld [smem:[#allocation5_spill]]  ;;  %p5482_p13 = scmp.ge.s32.totalorder %s5952_s21, 2 }
 0x862   : > { %p5479_p0 = pnand %p5482_p13, %p6080_p6 }
 0x864   : > { %p5480_p1 = pneg %p5479_p0 }
 0x866   : > { %s4623_s30 = sand.u32 1, %s8245_s20  }
 0x867   : > { %s4624_s16 = scalar_lea.sflag [#allocation3], %s4623_s30 }
 0x868   : > { %5935 = dma.done.wait (%p5480_p1), %s4624_s16, 128  }
 0x869   : > { %5937 = vsyncadd (%p5480_p1), %s4624_s16, 4294967168  ;;  %s8247_s21 = sld [smem:[#allocation7_spill]]  ;;  %s8250_s18 = smov %s5944_s19 }
 0x86a   : > { %s8248_s17 = sld [smem:[#allocation6_spill]] }
 0x86b   : > { %s8249_s20 = sld [smem:[#allocation8_spill]] }
 0x86f   : > { %p25_p2 = scmp.ge.s32.totalorder %s8247_s21, 4  }
 0x870   : > { %s8251_s19 = smov %s8248_s17 }
 0x871   :  { %27 = sbr.rel (!%p25_p2) target bundleno = 3 (0x3), region = 119 }
 0x876   :  { %4629 = vsyncpa [#allocation3], 1 }
 0x877   :  { %4631 = vsyncpa [#allocation3 + $0x1], 1 }

</bundles_post_ra>
